<compile_context>
chip_gen: v7x
topology: tpu7x:2x2x1
jax: 0.10.0
libtpu: 0.0.40
codegen_flags: <defaults>
</compile_context>

<pallas_src>
import functools

import jax
import jax.numpy as jnp
from jax import lax
from jax.experimental import pallas as pl
from jax.experimental.pallas import tpu as pltpu

_SEQ_ALIGN = 16          # bf16 sublane tile
_LN_EPS = 1e-6           # DINOv2 / HF LayerNorm eps


def _default_vmem_limit():
    # v5e/v6e have 128 MiB VMEM per core, v7x only 64 MiB -- derive a limit
    # with headroom instead of hard-coding one generation's budget.
    try:
        cap = pltpu.get_tpu_info().vmem_capacity_bytes
    except Exception:
        cap = 64 * 1024 * 1024
    return int(max(32 * 1024 * 1024, min(cap * 3 // 4, 96 * 1024 * 1024)))


_VMEM_LIMIT = _default_vmem_limit()


def _pick_tile(dim, target, multiple):
    """Largest divisor of `dim` that is <= target and a multiple of `multiple`.

    Wrappers keep the token axis 16-aligned and feature axes 128-aligned, so a
    divisor always exists; the full-extent fallback only fires for odd dims."""
    if dim <= target:
        return dim
    t = (min(target, dim) // multiple) * multiple
    while t >= multiple:
        if dim % t == 0:
            return t
        t -= multiple
    return dim


def _pick_row_tile(M, target, multiple=_SEQ_ALIGN):
    """Row tile that exposes >= 2 blocks on the parallel row axis (v7x 2 TCs)."""
    tm = _pick_tile(M, target, multiple)
    if tm == M and M >= 2 * multiple and (M // 2) % multiple == 0:
        tm = M // 2
    return tm


# --------------------------- exact (erf) GELU -------------------------------

def _erf_approx(x):
    # Abramowitz & Stegun 7.1.26, |err| < 1.5e-7 -- exact-erf GELU semantics
    # (PyTorch nn.GELU default) built from VPU/EUP-friendly ops.
    t = 1.0 / (1.0 + 0.3275911 * jnp.abs(x))
    poly = t * (0.254829592 + t * (-0.284496736 + t * (1.421413741
               + t * (-1.453152027 + t * 1.061405429))))
    y = 1.0 - poly * jnp.exp(-x * x)
    return jnp.where(x < 0.0, -y, y)


def _gelu_exact(x):
    return 0.5 * x * (1.0 + _erf_approx(x * 0.7071067811865476))


# ------------------------- tiled matmul (+bias/act/res) ---------------------

def _matmul_onepass_kernel(x_ref, w_ref, b_ref, *rest, activation, has_residual):
    # Single K step: no f32 VMEM accumulator round trip.
    if has_residual:
        r_ref, o_ref = rest
    else:
        (o_ref,) = rest
        r_ref = None
    y = jnp.dot(x_ref[...], w_ref[...], preferred_element_type=jnp.float32)
    y = y + b_ref[...].astype(jnp.float32)
    if activation == "gelu":
        y = _gelu_exact(y)
    if r_ref is not None:
        y = y + r_ref[...].astype(jnp.float32)
    o_ref[...] = y.astype(o_ref.dtype)


def _matmul_kernel(x_ref, w_ref, b_ref, *rest, activation, has_residual):
    # K-tiled path with a resident f32 accumulator (used only for large K).
    if has_residual:
        r_ref, o_ref, acc_ref = rest
    else:
        o_ref, acc_ref = rest
        r_ref = None

    k = pl.program_id(2)

    @pl.when(k == 0)
    def _init():
        acc_ref[...] = jnp.zeros_like(acc_ref)

    acc_ref[...] += jnp.dot(x_ref[...], w_ref[...],
                            preferred_element_type=jnp.float32)

    @pl.when(k == pl.num_programs(2) - 1)
    def _finalize():
        y = acc_ref[...] + b_ref[...].astype(jnp.float32)
        if activation == "gelu":
            y = _gelu_exact(y)
        if r_ref is not None:
            y = y + r_ref[...].astype(jnp.float32)
        o_ref[...] = y.astype(o_ref.dtype)


def linear(x, w, b, *, residual=None, activation=None, out_dtype=jnp.bfloat16,
           tm_target=256, tn_target=512, tk_target=512):
    M, K = x.shape
    _, N = w.shape
    tm = _pick_row_tile(M, tm_target)
    tn = _pick_tile(N, tn_target, 128)
    tk = _pick_tile(K, tk_target, 128)
    kt = K // tk
    has_res = residual is not None

    cost = pl.CostEstimate(
        flops=2 * M * N * K,
        transcendentals=(M * N if activation == "gelu" else 0),
        bytes_accessed=2 * (M * K + K * N + M * N)
        + (2 * M * N if has_res else 0) + 4 * N)

    if kt == 1:
        in_specs = [
            pl.BlockSpec((tm, K), lambda i, j: (i, 0)),
            pl.BlockSpec((K, tn), lambda i, j: (0, j)),
            pl.BlockSpec((1, tn), lambda i, j: (0, j)),
        ]
        args = [x, w, b]
        if has_res:
            in_specs.append(pl.BlockSpec((tm, tn), lambda i, j: (i, j)))
            args.append(residual)
        return pl.pallas_call(
            functools.partial(_matmul_onepass_kernel, activation=activation,
                              has_residual=has_res),
            out_shape=jax.ShapeDtypeStruct((M, N), out_dtype),
            grid=(M // tm, N // tn),
            in_specs=in_specs,
            out_specs=pl.BlockSpec((tm, tn), lambda i, j: (i, j)),
            compiler_params=pltpu.CompilerParams(
                dimension_semantics=("parallel", "parallel"),
                vmem_limit_bytes=_VMEM_LIMIT),
            cost_estimate=cost,
        )(*args)

    in_specs = [
        pl.BlockSpec((tm, tk), lambda i, j, k: (i, k)),
        pl.BlockSpec((tk, tn), lambda i, j, k: (k, j)),
        pl.BlockSpec((1, tn), lambda i, j, k: (0, j)),
    ]
    args = [x, w, b]
    if has_res:
        in_specs.append(pl.BlockSpec((tm, tn), lambda i, j, k: (i, j)))
        args.append(residual)
    return pl.pallas_call(
        functools.partial(_matmul_kernel, activation=activation,
                          has_residual=has_res),
        out_shape=jax.ShapeDtypeStruct((M, N), out_dtype),
        grid=(M // tm, N // tn, kt),
        in_specs=in_specs,
        out_specs=pl.BlockSpec((tm, tn), lambda i, j, k: (i, j)),
        scratch_shapes=[pltpu.VMEM((tm, tn), jnp.float32)],
        compiler_params=pltpu.CompilerParams(
            dimension_semantics=("parallel", "parallel", "arbitrary"),
            vmem_limit_bytes=_VMEM_LIMIT),
        cost_estimate=cost,
    )(*args)


# -------------------- LayerNorm fused into the consuming matmul -------------

def _ln_matmul_kernel(x_ref, g_ref, bt_ref, w_ref, b_ref, o_ref, *,
                      activation, eps):
    x = x_ref[...].astype(jnp.float32)
    mu = jnp.mean(x, axis=-1, keepdims=True)
    var = jnp.mean(jnp.square(x - mu), axis=-1, keepdims=True)
    xn = (x - mu) * lax.rsqrt(var + eps)
    xn = xn * g_ref[...] + bt_ref[...]
    y = jnp.dot(xn.astype(w_ref.dtype), w_ref[...],
                preferred_element_type=jnp.float32)
    y = y + b_ref[...].astype(jnp.float32)
    if activation == "gelu":
        # TODO(synk): on v5e consider the tanh-form GELU (EUP slot) if the
        # exact-erf polynomial turns out to be the binding VALU cost.
        y = _gelu_exact(y)
    o_ref[...] = y.astype(o_ref.dtype)


def ln_linear(x, gamma, beta, w, b, *, activation=None, eps=_LN_EPS,
              out_dtype=jnp.bfloat16, tm_target=256, tn_target=2048):
    # tn_target is large enough that N=3D / N=mlp_dim fit in ONE N tile, so the
    # LayerNorm over the full K row is computed once per row tile.  For very
    # large DINOv2 configs on v7x (64 MiB VMEM) cap tn around 1536-2048.
    M, K = x.shape
    _, N = w.shape
    tm = _pick_row_tile(M, tm_target)
    tn = _pick_tile(N, tn_target, 128)
    grid = (M // tm, N // tn)
    cost = pl.CostEstimate(
        flops=2 * M * N * K + 8 * M * K,
        transcendentals=(M * N if activation == "gelu" else 0) + M,
        bytes_accessed=2 * (M * K + K * N + M * N) + 8 * K + 4 * N)
    return pl.pallas_call(
        functools.partial(_ln_matmul_kernel, activation=activation, eps=eps),
        out_shape=jax.ShapeDtypeStruct((M, N), out_dtype),
        grid=grid,
        in_specs=[
            pl.BlockSpec((tm, K), lambda i, j: (i, 0)),
            pl.BlockSpec((1, K), lambda i, j: (0, 0)),
            pl.BlockSpec((1, K), lambda i, j: (0, 0)),
            pl.BlockSpec((K, tn), lambda i, j: (0, j)),
            pl.BlockSpec((1, tn), lambda i, j: (0, j)),
        ],
        out_specs=pl.BlockSpec((tm, tn), lambda i, j: (i, j)),
        compiler_params=pltpu.CompilerParams(
            dimension_semantics=("parallel", "parallel"),
            vmem_limit_bytes=_VMEM_LIMIT),
        cost_estimate=cost,
    )(x, gamma, beta, w, b)


# ------------------------------ standalone LayerNorm ------------------------

def _layernorm_kernel(x_ref, g_ref, b_ref, o_ref, *, eps):
    x = x_ref[...].astype(jnp.float32)
    mu = jnp.mean(x, axis=-1, keepdims=True)
    var = jnp.mean(jnp.square(x - mu), axis=-1, keepdims=True)
    y = (x - mu) * lax.rsqrt(var + eps)
    o_ref[...] = (y * g_ref[...] + b_ref[...]).astype(o_ref.dtype)


def layernorm(x, gamma, beta, *, eps=_LN_EPS, out_dtype=jnp.bfloat16,
              tm_target=256):
    M, K = x.shape
    tm = _pick_row_tile(M, tm_target)
    return pl.pallas_call(
        functools.partial(_layernorm_kernel, eps=eps),
        out_shape=jax.ShapeDtypeStruct((M, K), out_dtype),
        grid=(M // tm,),
        in_specs=[
            pl.BlockSpec((tm, K), lambda i: (i, 0)),
            pl.BlockSpec((1, K), lambda i: (0, 0)),
            pl.BlockSpec((1, K), lambda i: (0, 0)),
        ],
        out_specs=pl.BlockSpec((tm, K), lambda i: (i, 0)),
        compiler_params=pltpu.CompilerParams(
            dimension_semantics=("parallel",),
            vmem_limit_bytes=_VMEM_LIMIT),
    )(x, gamma, beta)


# ------------- patch embed + CLS + pos-emb + pad, all in one GEMM -----------

def _embed_kernel(x_ref, w_ref, pb_ref, o_ref):
    y = jnp.dot(x_ref[...], w_ref[...], preferred_element_type=jnp.float32)
    o_ref[...] = (y + pb_ref[...].astype(jnp.float32)).astype(o_ref.dtype)


def embed_tokens(x, w, pos_bias, *, s_pad, out_dtype=jnp.bfloat16,
                 tn_target=1024):
    """x: [B*s_pad, Cpp] pixel rows (zero rows at CLS/pad positions);
    pos_bias: [s_pad, D] per-row additive term (cls+pos / pos+bias / 0)."""
    M, K = x.shape
    _, N = w.shape
    B = M // s_pad
    tn = _pick_tile(N, tn_target, 128)
    cost = pl.CostEstimate(
        flops=2 * M * N * K, transcendentals=0,
        bytes_accessed=2 * (M * K + K * N + M * N) + 4 * s_pad * N)
    return pl.pallas_call(
        _embed_kernel,
        out_shape=jax.ShapeDtypeStruct((M, N), out_dtype),
        grid=(B, N // tn),
        in_specs=[
            pl.BlockSpec((s_pad, K), lambda b, j: (b, 0)),
            pl.BlockSpec((K, tn), lambda b, j: (0, j)),
            pl.BlockSpec((s_pad, tn), lambda b, j: (0, j)),   # batch-broadcast
        ],
        out_specs=pl.BlockSpec((s_pad, tn), lambda b, j: (b, j)),
        compiler_params=pltpu.CompilerParams(
            dimension_semantics=("parallel", "parallel"),
            vmem_limit_bytes=_VMEM_LIMIT),
        cost_estimate=cost,
    )(x, w, pos_bias)


# ------------- fused LN1 + per-head QKV projection + flash attention --------

def _fused_attn_kernel(xq_ref, xkv_ref, g_ref, bt_ref, wq_ref, wk_ref, wv_ref,
                       bq_ref, bk_ref, bv_ref, *rest, eps, has_mask):
    if has_mask:
        mask_ref, o_ref, q_sc, m_sc, l_sc, acc_sc = rest
    else:
        o_ref, q_sc, m_sc, l_sc, acc_sc = rest
        mask_ref = None

    kv = pl.program_id(3)

    def _ln(rows):
        xf = rows.astype(jnp.float32)
        mu = jnp.mean(xf, axis=-1, keepdims=True)
        var = jnp.mean(jnp.square(xf - mu), axis=-1, keepdims=True)
        return (xf - mu) * lax.rsqrt(var + eps) * g_ref[...] + bt_ref[...]

    @pl.when(kv == 0)
    def _init():
        # Q for this (batch, head, q-tile): computed once, cached in VMEM
        # (1/sqrt(d_head) is folded into Wq at parameter-build time).
        qn = _ln(xq_ref[0])
        q = jnp.dot(qn.astype(wq_ref.dtype), wq_ref[...],
                    preferred_element_type=jnp.float32) + bq_ref[...]
        q_sc[...] = q.astype(q_sc.dtype)
        m_sc[...] = jnp.full_like(m_sc, -jnp.inf)
        l_sc[...] = jnp.zeros_like(l_sc)
        acc_sc[...] = jnp.zeros_like(acc_sc)

    # K/V projection for this kv tile (recomputed per head/q-tile; the 3D-wide
    # qkv intermediate never round-trips through HBM).
    kn = _ln(xkv_ref[0]).astype(wk_ref.dtype)
    k = (jnp.dot(kn, wk_ref[...], preferred_element_type=jnp.float32)
         + bk_ref[...]).astype(jnp.bfloat16)
    v = (jnp.dot(kn, wv_ref[...], preferred_element_type=jnp.float32)
         + bv_ref[...]).astype(jnp.bfloat16)

    s = lax.dot_general(q_sc[...], k, (((1,), (1,)), ((), ())),
                        preferred_element_type=jnp.float32)       # [tq, tkv]
    if has_mask:
        s = s + mask_ref[...]      # additive key-padding bias (0 / -1e30)

    m_prev = m_sc[...]
    m_new = jnp.maximum(m_prev, jnp.max(s, axis=-1, keepdims=True))
    alpha = jnp.exp(m_prev - m_new)
    p = jnp.exp(s - m_new)                                         # f32 stats
    l_sc[...] = alpha * l_sc[...] + jnp.sum(p, axis=-1, keepdims=True)
    acc_sc[...] = alpha * acc_sc[...] + jnp.dot(
        p.astype(jnp.bfloat16), v, preferred_element_type=jnp.float32)
    m_sc[...] = m_new

    @pl.when(kv == pl.num_programs(3) - 1)
    def _finalize():
        inv_l = pl.reciprocal(l_sc[...], approx=True)              # EUP slot
        o_ref[0] = (acc_sc[...] * inv_l).astype(o_ref.dtype)


def fused_ln_attention(x, ln_g, ln_b, w_qkv, b_qkv, key_mask, *, num_heads,
                       eps=_LN_EPS, out_dtype=jnp.bfloat16,
                       q_tile_target=256, kv_tile_target=512):
    """x: [B, S_pad, D]; w_qkv: [D, 3D] (q|k|v head-major); returns [B, S_pad, D]."""
    B, s_pad, D = x.shape
    nh = num_heads
    d_head = D // nh
    # Head columns are sliced straight out of w_qkv by the BlockSpec, so the
    # per-head width must be lane-aligned (group heads for d_head < 128).
    assert d_head % 128 == 0, "d_head must be a multiple of 128 for head slicing"
    tq = _pick_tile(s_pad, q_tile_target, _SEQ_ALIGN)
    tkv = _pick_tile(s_pad, kv_tile_target, 128)   # 128-mult or full -> mask lane-legal
    n_q = s_pad // tq
    n_kv = s_pad // tkv
    grid = (B, nh, n_q, n_kv)
    has_mask = key_mask is not None

    in_specs = [
        pl.BlockSpec((1, tq, D), lambda b, h, qi, kv: (b, qi, 0)),        # x (q rows)
        pl.BlockSpec((1, tkv, D), lambda b, h, qi, kv: (b, kv, 0)),       # x (kv rows)
        pl.BlockSpec((1, D), lambda b, h, qi, kv: (0, 0)),                # ln gamma
        pl.BlockSpec((1, D), lambda b, h, qi, kv: (0, 0)),                # ln beta
        pl.BlockSpec((D, d_head), lambda b, h, qi, kv: (0, h)),           # Wq_h
        pl.BlockSpec((D, d_head), lambda b, h, qi, kv: (0, nh + h)),      # Wk_h
        pl.BlockSpec((D, d_head), lambda b, h, qi, kv: (0, 2 * nh + h)),  # Wv_h
        pl.BlockSpec((1, d_head), lambda b, h, qi, kv: (0, h)),           # bq_h
        pl.BlockSpec((1, d_head), lambda b, h, qi, kv: (0, nh + h)),      # bk_h
        pl.BlockSpec((1, d_head), lambda b, h, qi, kv: (0, 2 * nh + h)),  # bv_h
    ]
    args = [x, x, ln_g, ln_b, w_qkv, w_qkv, w_qkv, b_qkv, b_qkv, b_qkv]
    if has_mask:
        in_specs.append(pl.BlockSpec((1, tkv), lambda b, h, qi, kv: (0, kv)))
        args.append(key_mask)

    cost = pl.CostEstimate(
        flops=int(2 * B * s_pad * D * D                    # Q projection
                  + 4 * B * s_pad * D * D * n_q            # K/V (recomputed per q tile)
                  + 4 * B * nh * s_pad * s_pad * d_head),  # QK^T + PV
        transcendentals=int(B * nh * n_q * s_pad * (s_pad + 2)),
        bytes_accessed=int(2 * B * s_pad * D * (2 + nh * n_q)
                           + 2 * 3 * D * D * B + 2 * B * s_pad * D))

    return pl.pallas_call(
        functools.partial(_fused_attn_kernel, eps=eps, has_mask=has_mask),
        out_shape=jax.ShapeDtypeStruct((B, s_pad, D), out_dtype),
        grid=grid,
        in_specs=in_specs,
        out_specs=pl.BlockSpec((1, tq, d_head), lambda b, h, qi, kv: (b, qi, h)),
        scratch_shapes=[
            pltpu.VMEM((tq, d_head), jnp.bfloat16),   # cached Q
            pltpu.VMEM((tq, 1), jnp.float32),         # m (running max)
            pltpu.VMEM((tq, 1), jnp.float32),         # l (running denom)
            pltpu.VMEM((tq, d_head), jnp.float32),    # acc
        ],
        compiler_params=pltpu.CompilerParams(
            dimension_semantics=("parallel", "parallel", "parallel",
                                 "arbitrary"),
            vmem_limit_bytes=_VMEM_LIMIT),
        cost_estimate=cost,
    )(*args)


# -------------------------- parameter construction --------------------------

def init_params(key, *, channels, patch, hidden, num_layers, num_heads,
                mlp_dim, num_patches, num_register_tokens):
    d_head = hidden // num_heads
    scale = 1.0 / float(d_head) ** 0.5
    keys = iter(jax.random.split(key, 4 + 6 * num_layers))
    bf = jnp.bfloat16

    def nrm(shape, std=0.02):
        return jax.random.normal(next(keys), shape, jnp.float32) * std

    params = {
        "patch_w": nrm((channels * patch * patch, hidden)).astype(bf),
        "patch_b": jnp.zeros((1, hidden), jnp.float32),
        "cls_token": nrm((1, 1, hidden)).astype(bf),
        "pos_emb": nrm((1, num_patches + 1, hidden)).astype(bf),
        # nn.Parameter(torch.randn(1, R, hidden)) -> standard normal, f32.
        "register_tokens": jax.random.normal(
            next(keys), (1, num_register_tokens, hidden), jnp.float32),
        "final_ln_g": jnp.ones((1, hidden), jnp.float32),
        "final_ln_b": jnp.zeros((1, hidden), jnp.float32),
        "layers": [],
    }
    for _ in range(num_layers):
        # NOTE: 1/sqrt(d_head) folded into Wq here; apply the same fold when
        # loading real DINOv2/HF checkpoints.
        wq = nrm((hidden, hidden)) * scale
        wk = nrm((hidden, hidden))
        wv = nrm((hidden, hidden))
        params["layers"].append({
            "ln1_g": jnp.ones((1, hidden), jnp.float32),
            "ln1_b": jnp.zeros((1, hidden), jnp.float32),
            "w_qkv": jnp.concatenate([wq, wk, wv], axis=1).astype(bf),
            "b_qkv": jnp.zeros((1, 3 * hidden), jnp.float32),
            "wo": nrm((hidden, hidden)).astype(bf),
            "bo": jnp.zeros((1, hidden), jnp.float32),
            "ln2_g": jnp.ones((1, hidden), jnp.float32),
            "ln2_b": jnp.zeros((1, hidden), jnp.float32),
            "w1": nrm((hidden, mlp_dim)).astype(bf),
            "b1": jnp.zeros((1, mlp_dim), jnp.float32),
            "w2": nrm((mlp_dim, hidden)).astype(bf),
            "b2": jnp.zeros((1, hidden), jnp.float32),
        })
    return params


# -------------------------------- forward pass ------------------------------

def register_vit_forward(params, pixel_values, *, patch, num_heads,
                         num_register_tokens, return_hidden=False):
    B, C, H, W = pixel_values.shape
    Hp, Wp = H // patch, W // patch
    P = Hp * Wp
    Cpp = C * patch * patch
    D = params["patch_w"].shape[1]
    S = P + 1
    S_pad = ((S + _SEQ_ALIGN - 1) // _SEQ_ALIGN) * _SEQ_ALIGN
    M = B * S_pad

    # Patch extraction (Conv2d kernel=stride=patch == unfold + GEMM).  The rows
    # are padded so the patch-embed GEMM writes tokens at their final
    # [B, S_pad, D] positions: row 0 -> CLS, rows 1..P -> patches, rest -> 0.
    x = pixel_values.reshape(B, C, Hp, patch, Wp, patch)
    x = x.transpose(0, 2, 4, 1, 3, 5).reshape(B, P, Cpp)
    x = jnp.pad(x, ((0, 0), (1, S_pad - 1 - P), (0, 0)))
    x = x.reshape(M, Cpp).astype(jnp.bfloat16)

    # Per-row additive term (parameter-sized): row 0 = cls + pos_emb[0],
    # rows 1..P = pos_emb[1:] + conv bias, padded rows stay exactly 0.
    pos_bias = jnp.zeros((S_pad, D), jnp.float32)
    pos_bias = pos_bias.at[0].set(params["cls_token"][0, 0].astype(jnp.float32)
                                  + params["pos_emb"][0, 0].astype(jnp.float32))
    pos_bias = pos_bias.at[1:S].set(params["pos_emb"][0, 1:].astype(jnp.float32)
                                    + params["patch_b"][0])

    tokens = embed_tokens(x, params["patch_w"], pos_bias,
                          s_pad=S_pad).reshape(B, S_pad, D)

    # Additive key-padding bias; skipped at trace time when no padding exists.
    key_mask = None
    if S_pad != S:
        key_mask = jnp.where(jnp.arange(S_pad) < S, 0.0, -1e30)
        key_mask = key_mask.astype(jnp.float32).reshape(1, S_pad)

    for lyr in params["layers"]:
        flat = tokens.reshape(M, D)
        # 1) fused LN1 + per-head QKV + flash attention (qkv stays in VMEM).
        attn = fused_ln_attention(tokens, lyr["ln1_g"], lyr["ln1_b"],
                                  lyr["w_qkv"], lyr["b_qkv"], key_mask,
                                  num_heads=num_heads)
        # 2) output projection + residual (single-K fast path).
        tokens = linear(attn.reshape(M, D), lyr["wo"], lyr["bo"],
                        residual=flat).reshape(B, S_pad, D)

        flat2 = tokens.reshape(M, D)
        # 3) LN2 + fc1 + exact-erf GELU, one N tile (LN computed once per row tile).
        h = ln_linear(flat2, lyr["ln2_g"], lyr["ln2_b"],
                      lyr["w1"], lyr["b1"], activation="gelu")
        # 4) fc2 + residual (K fits one tile at these sizes -> no f32 acc).
        tokens = linear(h, lyr["w2"], lyr["b2"], residual=flat2,
                        tk_target=1024).reshape(B, S_pad, D)

    last_hidden = layernorm(tokens.reshape(M, D), params["final_ln_g"],
                            params["final_ln_b"])
    last_hidden = last_hidden.reshape(B, S_pad, D)[:, :S, :]

    # RegisterViT.forward: extended = cat([last_hidden, register_tokens]);
    # extended[:, -R:, :] is exactly the expanded register tokens, so the
    # pooled output (projector = Identity) is their mean -- a 4x256 reduction
    # done with plain jnp (a dedicated kernel costs more than the op).
    regs = params["register_tokens"][0, -num_register_tokens:, :]
    pooled = jnp.broadcast_to(regs.mean(axis=0), (B, D)).astype(jnp.float32)

    if return_hidden:
        return pooled, last_hidden
    return pooled


# ------------------------- pure-JAX reference (f32) --------------------------

def reference_forward(params, pixel_values, *, patch, num_heads):
    f32 = jnp.float32
    B, C, H, W = pixel_values.shape
    Hp, Wp = H // patch, W // patch
    D = params["patch_w"].shape[1]
    d_head = D // num_heads

    def ln(x, g, b):
        mu = x.mean(-1, keepdims=True)
        var = ((x - mu) ** 2).mean(-1, keepdims=True)
        return (x - mu) * lax.rsqrt(var + _LN_EPS) * g + b

    x = pixel_values.reshape(B, C, Hp, patch, Wp, patch)
    x = x.transpose(0, 2, 4, 1, 3, 5).reshape(B, Hp * Wp, C * patch * patch)
    tok = x.astype(f32) @ params["patch_w"].astype(f32) + params["patch_b"]
    cls = jnp.broadcast_to(params["cls_token"].astype(f32), (B, 1, D))
    tok = jnp.concatenate([cls, tok], axis=1) + params["pos_emb"].astype(f32)
    S = tok.shape[1]

    for lyr in params["layers"]:
        h = ln(tok, lyr["ln1_g"], lyr["ln1_b"])
        qkv = h @ lyr["w_qkv"].astype(f32) + lyr["b_qkv"]
        q, k, v = jnp.split(qkv, 3, axis=-1)

        def heads(t):
            return t.reshape(B, S, num_heads, d_head).transpose(0, 2, 1, 3)

        q, k, v = heads(q), heads(k), heads(v)
        s = jnp.einsum("bhqd,bhkd->bhqk", q, k)   # scale folded into w_qkv
        p = jax.nn.softmax(s, axis=-1)
        o = jnp.einsum("bhqk,bhkd->bhqd", p, v)
        o = o.transpose(0, 2, 1, 3).reshape(B, S, D)
        tok = tok + o @ lyr["wo"].astype(f32) + lyr["bo"]

        h2 = ln(tok, lyr["ln2_g"], lyr["ln2_b"])
        m = _gelu_exact(h2 @ lyr["w1"].astype(f32) + lyr["b1"])
        tok = tok + m @ lyr["w2"].astype(f32) + lyr["b2"]

    return ln(tok, params["final_ln_g"], params["final_ln_b"])


# ------------------------------------ main -----------------------------------

if __name__ == "__main__":
    key = jax.random.PRNGKey(0)
    pkey, xkey = jax.random.split(key)

    B, C, H, W = 2, 3, 32, 32
    patch = 8
    hidden = 256            # lane-aligned (multiple of 128)
    num_heads = 2           # head_dim = 128 -> lane-aligned head slicing
    num_layers = 2
    mlp_dim = 4 * hidden
    num_register_tokens = 4
    num_patches = (H // patch) * (W // patch)
    S = num_patches + 1

    params = init_params(
        pkey, channels=C, patch=patch, hidden=hidden, num_layers=num_layers,
        num_heads=num_heads, mlp_dim=mlp_dim, num_patches=num_patches,
        num_register_tokens=num_register_tokens)

    pixel_values = jax.random.normal(xkey, (B, C, H, W), jnp.float32)

    fwd = jax.jit(functools.partial(
        register_vit_forward, patch=patch, num_heads=num_heads,
        num_register_tokens=num_register_tokens, return_hidden=True))
    pooled, last_hidden = fwd(params, pixel_values)
    pooled = jax.block_until_ready(pooled)
    last_hidden = jax.block_until_ready(last_hidden)

    assert pooled.shape == (B, hidden), pooled.shape
    assert pooled.dtype == jnp.float32, pooled.dtype
    assert last_hidden.shape == (B, S, hidden), last_hidden.shape

    # Module semantics: output == mean of the (expanded) register tokens.
    expected = jnp.broadcast_to(params["register_tokens"].mean(axis=1),
                                (B, hidden))
    assert jnp.allclose(pooled, expected, atol=1e-5), "register-mean mismatch"

    # Cross-check the Pallas encoder (bf16 matmuls / f32 accum) against a
    # pure-JAX f32 reference using the same parameters.
    ref_last = reference_forward(params, pixel_values, patch=patch,
                                 num_heads=num_heads)
    err = float(jnp.max(jnp.abs(last_hidden.astype(jnp.float32) - ref_last)))
    assert err < 0.25, f"encoder mismatch vs pure-JAX reference: max|err|={err}"

    print("KERNEL_OK")
</pallas_src>

<mosaic_0001>
module attributes {stable_mosaic.version = 11 : i64} {
  func.func @_matmul_onepass_kernel(%arg0: i32, %arg1: i32, %arg2: memref<32x256xbf16, #tpu.memory_space<vmem>>, %arg3: memref<256x256xbf16, #tpu.memory_space<vmem>>, %arg4: memref<1x256xf32, #tpu.memory_space<vmem>>, %arg5: memref<32x256xbf16, #tpu.memory_space<vmem>>, %arg6: memref<32x256xbf16, #tpu.memory_space<vmem>>) attributes {dimension_semantics = [#tpu.dimension_semantics<parallel>, #tpu.dimension_semantics<parallel>], iteration_bounds = array<i64: 2, 1>, scalar_prefetch = 0 : i64, scratch_operands = 0 : i64, tpu.core_type = #tpu.core_type<tc>, window_params = [{transform_indices = @transform_0, window_bounds = array<i64: 32, 256>}, {transform_indices = @transform_1, window_bounds = array<i64: 256, 256>}, {transform_indices = @transform_2, window_bounds = array<i64: 1, 256>}, {transform_indices = @transform_3, window_bounds = array<i64: 32, 256>}, {transform_indices = @transform_4, window_bounds = array<i64: 32, 256>}]} {
    %c0 = arith.constant 0 : index
    %c0_0 = arith.constant 0 : index
    %0 = vector.load %arg2[%c0, %c0_0] : memref<32x256xbf16, #tpu.memory_space<vmem>>, vector<32x256xbf16>
    %c0_1 = arith.constant 0 : index
    %c0_2 = arith.constant 0 : index
    %1 = vector.load %arg3[%c0_1, %c0_2] : memref<256x256xbf16, #tpu.memory_space<vmem>>, vector<256x256xbf16>
    %cst = arith.constant dense<0.000000e+00> : vector<32x256xf32>
    %2 = tpu.matmul %0, %1, %cst {dimension_numbers = #tpu.dot_dimension_numbers<[1], [0], [0], [1], [0, 0, 1, 1], [], []>} : vector<32x256xbf16>, vector<256x256xbf16>, vector<32x256xf32> -> vector<32x256xf32>
    %c0_3 = arith.constant 0 : index
    %c0_4 = arith.constant 0 : index
    %3 = vector.load %arg4[%c0_3, %c0_4] : memref<1x256xf32, #tpu.memory_space<vmem>>, vector<1x256xf32>
    %4 = vector.broadcast %3 : vector<1x256xf32> to vector<32x256xf32>
    %5 = arith.addf %2, %4 : vector<32x256xf32>
    %c0_5 = arith.constant 0 : index
    %c0_6 = arith.constant 0 : index
    %6 = vector.load %arg5[%c0_5, %c0_6] : memref<32x256xbf16, #tpu.memory_space<vmem>>, vector<32x256xbf16>
    %7 = arith.extf %6 : vector<32x256xbf16> to vector<32x256xf32>
    %8 = arith.addf %5, %7 : vector<32x256xf32>
    %9 = arith.truncf %8 : vector<32x256xf32> to vector<32x256xbf16>
    %c0_7 = arith.constant 0 : index
    %c0_8 = arith.constant 0 : index
    %10 = vector.load %arg6[%c0_7, %c0_8] : memref<32x256xbf16, #tpu.memory_space<vmem>>, vector<32x256xbf16>
    tpu.vector_store %arg6[%c0_7, %c0_8], %9 {strides = array<i32>} : memref<32x256xbf16, #tpu.memory_space<vmem>>, vector<32x256xbf16>,
    return
  }
  func.func @transform_0(%arg0: i32, %arg1: i32) -> (i32, i32) {
    %c0_i32 = arith.constant 0 : i32
    %c0_i32_0 = arith.constant 0 : i32
    return %arg0, %c0_i32 : i32, i32
  }
  func.func @transform_1(%arg0: i32, %arg1: i32) -> (i32, i32) {
    %c0_i32 = arith.constant 0 : i32
    %c0_i32_0 = arith.constant 0 : i32
    return %c0_i32, %arg1 : i32, i32
  }
  func.func @transform_2(%arg0: i32, %arg1: i32) -> (i32, i32) {
    %c0_i32 = arith.constant 0 : i32
    %c0_i32_0 = arith.constant 0 : i32
    return %c0_i32, %arg1 : i32, i32
  }
  func.func @transform_3(%arg0: i32, %arg1: i32) -> (i32, i32) {
    %c0_i32 = arith.constant 0 : i32
    return %arg0, %arg1 : i32, i32
  }
  func.func @transform_4(%arg0: i32, %arg1: i32) -> (i32, i32) {
    %c0_i32 = arith.constant 0 : i32
    return %arg0, %arg1 : i32, i32
  }
}

module attributes {stable_mosaic.version = 11 : i64} {
  func.func @_embed_kernel(%arg0: i32, %arg1: i32, %arg2: memref<32x192xbf16, #tpu.memory_space<vmem>>, %arg3: memref<192x256xbf16, #tpu.memory_space<vmem>>, %arg4: memref<32x256xf32, #tpu.memory_space<vmem>>, %arg5: memref<32x256xbf16, #tpu.memory_space<vmem>>) attributes {dimension_semantics = [#tpu.dimension_semantics<parallel>, #tpu.dimension_semantics<parallel>], iteration_bounds = array<i64: 2, 1>, scalar_prefetch = 0 : i64, scratch_operands = 0 : i64, tpu.core_type = #tpu.core_type<tc>, window_params = [{transform_indices = @transform_0, window_bounds = array<i64: 32, 192>}, {transform_indices = @transform_1, window_bounds = array<i64: 192, 256>}, {transform_indices = @transform_2, window_bounds = array<i64: 32, 256>}, {transform_indices = @transform_3, window_bounds = array<i64: 32, 256>}]} {
    %c0 = arith.constant 0 : index
    %c0_0 = arith.constant 0 : index
    %0 = vector.load %arg2[%c0, %c0_0] : memref<32x192xbf16, #tpu.memory_space<vmem>>, vector<32x192xbf16>
    %c0_1 = arith.constant 0 : index
    %c0_2 = arith.constant 0 : index
    %1 = vector.load %arg3[%c0_1, %c0_2] : memref<192x256xbf16, #tpu.memory_space<vmem>>, vector<192x256xbf16>
    %cst = arith.constant dense<0.000000e+00> : vector<32x256xf32>
    %2 = tpu.matmul %0, %1, %cst {dimension_numbers = #tpu.dot_dimension_numbers<[1], [0], [0], [1], [0, 0, 1, 1], [], []>} : vector<32x192xbf16>, vector<192x256xbf16>, vector<32x256xf32> -> vector<32x256xf32>
    %c0_3 = arith.constant 0 : index
    %c0_4 = arith.constant 0 : index
    %3 = vector.load %arg4[%c0_3, %c0_4] : memref<32x256xf32, #tpu.memory_space<vmem>>, vector<32x256xf32>
    %4 = arith.addf %2, %3 : vector<32x256xf32>
    %5 = arith.truncf %4 : vector<32x256xf32> to vector<32x256xbf16>
    %c0_5 = arith.constant 0 : index
    %c0_6 = arith.constant 0 : index
    %6 = vector.load %arg5[%c0_5, %c0_6] : memref<32x256xbf16, #tpu.memory_space<vmem>>, vector<32x256xbf16>
    tpu.vector_store %arg5[%c0_5, %c0_6], %5 {strides = array<i32>} : memref<32x256xbf16, #tpu.memory_space<vmem>>, vector<32x256xbf16>,
    return
  }
  func.func @transform_0(%arg0: i32, %arg1: i32) -> (i32, i32) {
    %c0_i32 = arith.constant 0 : i32
    %c0_i32_0 = arith.constant 0 : i32
    return %arg0, %c0_i32 : i32, i32
  }
  func.func @transform_1(%arg0: i32, %arg1: i32) -> (i32, i32) {
    %c0_i32 = arith.constant 0 : i32
    %c0_i32_0 = arith.constant 0 : i32
    return %c0_i32, %arg1 : i32, i32
  }
  func.func @transform_2(%arg0: i32, %arg1: i32) -> (i32, i32) {
    %c0_i32 = arith.constant 0 : i32
    %c0_i32_0 = arith.constant 0 : i32
    return %c0_i32, %arg1 : i32, i32
  }
  func.func @transform_3(%arg0: i32, %arg1: i32) -> (i32, i32) {
    %c0_i32 = arith.constant 0 : i32
    return %arg0, %arg1 : i32, i32
  }
}

module attributes {stable_mosaic.version = 11 : i64} {
  func.func @_fused_attn_kernel(%arg0: i32, %arg1: i32, %arg2: i32, %arg3: i32, %arg4: memref<1x32x256xbf16, #tpu.memory_space<vmem>>, %arg5: memref<1x32x256xbf16, #tpu.memory_space<vmem>>, %arg6: memref<1x256xf32, #tpu.memory_space<vmem>>, %arg7: memref<1x256xf32, #tpu.memory_space<vmem>>, %arg8: memref<256x128xbf16, #tpu.memory_space<vmem>>, %arg9: memref<256x128xbf16, #tpu.memory_space<vmem>>, %arg10: memref<256x128xbf16, #tpu.memory_space<vmem>>, %arg11: memref<1x128xf32, #tpu.memory_space<vmem>>, %arg12: memref<1x128xf32, #tpu.memory_space<vmem>>, %arg13: memref<1x128xf32, #tpu.memory_space<vmem>>, %arg14: memref<1x32xf32, #tpu.memory_space<vmem>>, %arg15: memref<1x32x128xbf16, #tpu.memory_space<vmem>>, %arg16: memref<32x128xbf16, #tpu.memory_space<vmem>>, %arg17: memref<32x1xf32, #tpu.memory_space<vmem>>, %arg18: memref<32x1xf32, #tpu.memory_space<vmem>>, %arg19: memref<32x128xf32, #tpu.memory_space<vmem>>) attributes {dimension_semantics = [#tpu.dimension_semantics<parallel>, #tpu.dimension_semantics<parallel>, #tpu.dimension_semantics<parallel>, #tpu.dimension_semantics<arbitrary>], iteration_bounds = array<i64: 2, 2, 1, 1>, scalar_prefetch = 0 : i64, scratch_operands = 4 : i64, tpu.core_type = #tpu.core_type<tc>, window_params = [{transform_indices = @transform_0, window_bounds = array<i64: 1, 32, 256>}, {transform_indices = @transform_1, window_bounds = array<i64: 1, 32, 256>}, {pipeline_mode = #tpu.pipeline_mode<synchronous>, transform_indices = @transform_2, window_bounds = array<i64: 1, 256>}, {pipeline_mode = #tpu.pipeline_mode<synchronous>, transform_indices = @transform_3, window_bounds = array<i64: 1, 256>}, {transform_indices = @transform_4, window_bounds = array<i64: 256, 128>}, {transform_indices = @transform_5, window_bounds = array<i64: 256, 128>}, {transform_indices = @transform_6, window_bounds = array<i64: 256, 128>}, {transform_indices = @transform_7, window_bounds = array<i64: 1, 128>}, {transform_indices = @transform_8, window_bounds = array<i64: 1, 128>}, {transform_indices = @transform_9, window_bounds = array<i64: 1, 128>}, {transform_indices = @transform_10, window_bounds = array<i64: 1, 32>}, {transform_indices = @transform_11, window_bounds = array<i64: 1, 32, 128>}]} {
    %c0_i32 = arith.constant 0 : i32
    %0 = arith.cmpi eq, %arg3, %c0_i32 : i32
    %1 = arith.extui %0 : i1 to i32
    %c0_i32_0 = arith.constant 0 : i32
    %2 = arith.cmpi ne, %1, %c0_i32_0 : i32
    scf.if %2 {
      %c0_43 = arith.constant 0 : index
      %c0_44 = arith.constant 0 : index
      %c0_45 = arith.constant 0 : index
      %74 = vector.load %arg4[%c0_43, %c0_44, %c0_45] : memref<1x32x256xbf16, #tpu.memory_space<vmem>>, vector<1x32x256xbf16>
      %75 = vector.shape_cast %74 : vector<1x32x256xbf16> to vector<32x256xbf16>
      %76 = arith.extf %75 : vector<32x256xbf16> to vector<32x256xf32>
      %cst_46 = arith.constant dense<0.000000e+00> : vector<32xf32>
      %77 = vector.multi_reduction <add>, %76, %cst_46 [1] : vector<32x256xf32> to vector<32xf32>
      %78 = vector.shape_cast %77 : vector<32xf32> to vector<32x1xf32>
      %cst_47 = arith.constant 2.560000e+02 : f32
      %79 = vector.broadcast %cst_47 : f32 to vector<32x1xf32>
      %80 = arith.divf %78, %79 : vector<32x1xf32>
      %81 = vector.broadcast %80 : vector<32x1xf32> to vector<32x256xf32>
      %82 = arith.subf %76, %81 : vector<32x256xf32>
      %83 = arith.mulf %82, %82 : vector<32x256xf32>
      %cst_48 = arith.constant dense<0.000000e+00> : vector<32xf32>
      %84 = vector.multi_reduction <add>, %83, %cst_48 [1] : vector<32x256xf32> to vector<32xf32>
      %85 = vector.shape_cast %84 : vector<32xf32> to vector<32x1xf32>
      %cst_49 = arith.constant 2.560000e+02 : f32
      %86 = vector.broadcast %cst_49 : f32 to vector<32x1xf32>
      %87 = arith.divf %85, %86 : vector<32x1xf32>
      %88 = vector.broadcast %80 : vector<32x1xf32> to vector<32x256xf32>
      %89 = arith.subf %76, %88 : vector<32x256xf32>
      %cst_50 = arith.constant 9.99999997E-7 : f32
      %90 = vector.broadcast %cst_50 : f32 to vector<32x1xf32>
      %91 = arith.addf %87, %90 : vector<32x1xf32>
      %92 = math.rsqrt %91 : vector<32x1xf32>
      %93 = vector.broadcast %92 : vector<32x1xf32> to vector<32x256xf32>
      %94 = arith.mulf %89, %93 : vector<32x256xf32>
      %c0_51 = arith.constant 0 : index
      %c0_52 = arith.constant 0 : index
      %95 = vector.load %arg6[%c0_51, %c0_52] : memref<1x256xf32, #tpu.memory_space<vmem>>, vector<1x256xf32>
      %96 = vector.broadcast %95 : vector<1x256xf32> to vector<32x256xf32>
      %97 = arith.mulf %94, %96 : vector<32x256xf32>
      %c0_53 = arith.constant 0 : index
      %c0_54 = arith.constant 0 : index
      %98 = vector.load %arg7[%c0_53, %c0_54] : memref<1x256xf32, #tpu.memory_space<vmem>>, vector<1x256xf32>
      %99 = vector.broadcast %98 : vector<1x256xf32> to vector<32x256xf32>
      %100 = arith.addf %97, %99 : vector<32x256xf32>
      %101 = arith.truncf %100 : vector<32x256xf32> to vector<32x256xbf16>
      %c0_55 = arith.constant 0 : index
      %c0_56 = arith.constant 0 : index
      %102 = vector.load %arg8[%c0_55, %c0_56] : memref<256x128xbf16, #tpu.memory_space<vmem>>, vector<256x128xbf16>
      %cst_57 = arith.constant dense<0.000000e+00> : vector<32x128xf32>
      %103 = tpu.matmul %101, %102, %cst_57 {dimension_numbers = #tpu.dot_dimension_numbers<[1], [0], [0], [1], [0, 0, 1, 1], [], []>} : vector<32x256xbf16>, vector<256x128xbf16>, vector<32x128xf32> -> vector<32x128xf32>
      %c0_58 = arith.constant 0 : index
      %c0_59 = arith.constant 0 : index
      %104 = vector.load %arg11[%c0_58, %c0_59] : memref<1x128xf32, #tpu.memory_space<vmem>>, vector<1x128xf32>
      %105 = vector.broadcast %104 : vector<1x128xf32> to vector<32x128xf32>
      %106 = arith.addf %103, %105 : vector<32x128xf32>
      %107 = arith.truncf %106 : vector<32x128xf32> to vector<32x128xbf16>
      %c0_60 = arith.constant 0 : index
      %c0_61 = arith.constant 0 : index
      %108 = vector.load %arg16[%c0_60, %c0_61] : memref<32x128xbf16, #tpu.memory_space<vmem>>, vector<32x128xbf16>
      tpu.vector_store %arg16[%c0_60, %c0_61], %107 {strides = array<i32>} : memref<32x128xbf16, #tpu.memory_space<vmem>>, vector<32x128xbf16>,
      %cst_62 = arith.constant 0xFF800000 : f32
      %109 = vector.broadcast %cst_62 : f32 to vector<32x1xf32>
      %c0_63 = arith.constant 0 : index
      %c0_64 = arith.constant 0 : index
      %110 = vector.load %arg17[%c0_63, %c0_64] : memref<32x1xf32, #tpu.memory_space<vmem>>, vector<32x1xf32>
      tpu.vector_store %arg17[%c0_63, %c0_64], %109 {strides = array<i32>} : memref<32x1xf32, #tpu.memory_space<vmem>>, vector<32x1xf32>,
      %cst_65 = arith.constant 0.000000e+00 : f32
      %111 = vector.broadcast %cst_65 : f32 to vector<32x1xf32>
      %c0_66 = arith.constant 0 : index
      %c0_67 = arith.constant 0 : index
      %112 = vector.load %arg18[%c0_66, %c0_67] : memref<32x1xf32, #tpu.memory_space<vmem>>, vector<32x1xf32>
      tpu.vector_store %arg18[%c0_66, %c0_67], %111 {strides = array<i32>} : memref<32x1xf32, #tpu.memory_space<vmem>>, vector<32x1xf32>,
      %cst_68 = arith.constant 0.000000e+00 : f32
      %113 = vector.broadcast %cst_68 : f32 to vector<32x128xf32>
      %c0_69 = arith.constant 0 : index
      %c0_70 = arith.constant 0 : index
      %114 = vector.load %arg19[%c0_69, %c0_70] : memref<32x128xf32, #tpu.memory_space<vmem>>, vector<32x128xf32>
      tpu.vector_store %arg19[%c0_69, %c0_70], %113 {strides = array<i32>} : memref<32x128xf32, #tpu.memory_space<vmem>>, vector<32x128xf32>,
    } else {
    }
    %c0 = arith.constant 0 : index
    %c0_1 = arith.constant 0 : index
    %c0_2 = arith.constant 0 : index
    %3 = vector.load %arg5[%c0, %c0_1, %c0_2] : memref<1x32x256xbf16, #tpu.memory_space<vmem>>, vector<1x32x256xbf16>
    %4 = vector.shape_cast %3 : vector<1x32x256xbf16> to vector<32x256xbf16>
    %5 = arith.extf %4 : vector<32x256xbf16> to vector<32x256xf32>
    %cst = arith.constant dense<0.000000e+00> : vector<32xf32>
    %6 = vector.multi_reduction <add>, %5, %cst [1] : vector<32x256xf32> to vector<32xf32>
    %7 = vector.shape_cast %6 : vector<32xf32> to vector<32x1xf32>
    %cst_3 = arith.constant 2.560000e+02 : f32
    %8 = vector.broadcast %cst_3 : f32 to vector<32x1xf32>
    %9 = arith.divf %7, %8 : vector<32x1xf32>
    %10 = vector.broadcast %9 : vector<32x1xf32> to vector<32x256xf32>
    %11 = arith.subf %5, %10 : vector<32x256xf32>
    %12 = arith.mulf %11, %11 : vector<32x256xf32>
    %cst_4 = arith.constant dense<0.000000e+00> : vector<32xf32>
    %13 = vector.multi_reduction <add>, %12, %cst_4 [1] : vector<32x256xf32> to vector<32xf32>
    %14 = vector.shape_cast %13 : vector<32xf32> to vector<32x1xf32>
    %cst_5 = arith.constant 2.560000e+02 : f32
    %15 = vector.broadcast %cst_5 : f32 to vector<32x1xf32>
    %16 = arith.divf %14, %15 : vector<32x1xf32>
    %17 = vector.broadcast %9 : vector<32x1xf32> to vector<32x256xf32>
    %18 = arith.subf %5, %17 : vector<32x256xf32>
    %cst_6 = arith.constant 9.99999997E-7 : f32
    %19 = vector.broadcast %cst_6 : f32 to vector<32x1xf32>
    %20 = arith.addf %16, %19 : vector<32x1xf32>
    %21 = math.rsqrt %20 : vector<32x1xf32>
    %22 = vector.broadcast %21 : vector<32x1xf32> to vector<32x256xf32>
    %23 = arith.mulf %18, %22 : vector<32x256xf32>
    %c0_7 = arith.constant 0 : index
    %c0_8 = arith.constant 0 : index
    %24 = vector.load %arg6[%c0_7, %c0_8] : memref<1x256xf32, #tpu.memory_space<vmem>>, vector<1x256xf32>
    %25 = vector.broadcast %24 : vector<1x256xf32> to vector<32x256xf32>
    %26 = arith.mulf %23, %25 : vector<32x256xf32>
    %c0_9 = arith.constant 0 : index
    %c0_10 = arith.constant 0 : index
    %27 = vector.load %arg7[%c0_9, %c0_10] : memref<1x256xf32, #tpu.memory_space<vmem>>, vector<1x256xf32>
    %28 = vector.broadcast %27 : vector<1x256xf32> to vector<32x256xf32>
    %29 = arith.addf %26, %28 : vector<32x256xf32>
    %30 = arith.truncf %29 : vector<32x256xf32> to vector<32x256xbf16>
    %c0_11 = arith.constant 0 : index
    %c0_12 = arith.constant 0 : index
    %31 = vector.load %arg9[%c0_11, %c0_12] : memref<256x128xbf16, #tpu.memory_space<vmem>>, vector<256x128xbf16>
    %cst_13 = arith.constant dense<0.000000e+00> : vector<32x128xf32>
    %32 = tpu.matmul %30, %31, %cst_13 {dimension_numbers = #tpu.dot_dimension_numbers<[1], [0], [0], [1], [0, 0, 1, 1], [], []>} : vector<32x256xbf16>, vector<256x128xbf16>, vector<32x128xf32> -> vector<32x128xf32>
    %c0_14 = arith.constant 0 : index
    %c0_15 = arith.constant 0 : index
    %33 = vector.load %arg12[%c0_14, %c0_15] : memref<1x128xf32, #tpu.memory_space<vmem>>, vector<1x128xf32>
    %34 = vector.broadcast %33 : vector<1x128xf32> to vector<32x128xf32>
    %35 = arith.addf %32, %34 : vector<32x128xf32>
    %36 = arith.truncf %35 : vector<32x128xf32> to vector<32x128xbf16>
    %c0_16 = arith.constant 0 : index
    %c0_17 = arith.constant 0 : index
    %37 = vector.load %arg10[%c0_16, %c0_17] : memref<256x128xbf16, #tpu.memory_space<vmem>>, vector<256x128xbf16>
    %cst_18 = arith.constant dense<0.000000e+00> : vector<32x128xf32>
    %38 = tpu.matmul %30, %37, %cst_18 {dimension_numbers = #tpu.dot_dimension_numbers<[1], [0], [0], [1], [0, 0, 1, 1], [], []>} : vector<32x256xbf16>, vector<256x128xbf16>, vector<32x128xf32> -> vector<32x128xf32>
    %c0_19 = arith.constant 0 : index
    %c0_20 = arith.constant 0 : index
    %39 = vector.load %arg13[%c0_19, %c0_20] : memref<1x128xf32, #tpu.memory_space<vmem>>, vector<1x128xf32>
    %40 = vector.broadcast %39 : vector<1x128xf32> to vector<32x128xf32>
    %41 = arith.addf %38, %40 : vector<32x128xf32>
    %42 = arith.truncf %41 : vector<32x128xf32> to vector<32x128xbf16>
    %c0_21 = arith.constant 0 : index
    %c0_22 = arith.constant 0 : index
    %43 = vector.load %arg16[%c0_21, %c0_22] : memref<32x128xbf16, #tpu.memory_space<vmem>>, vector<32x128xbf16>
    %cst_23 = arith.constant dense<0.000000e+00> : vector<32x32xf32>
    %44 = tpu.matmul %43, %36, %cst_23 {dimension_numbers = #tpu.dot_dimension_numbers<[1], [1], [0], [0], [0, 0, 1, 0], [], []>} : vector<32x128xbf16>, vector<32x128xbf16>, vector<32x32xf32> -> vector<32x32xf32>
    %c0_24 = arith.constant 0 : index
    %c0_25 = arith.constant 0 : index
    %45 = vector.load %arg14[%c0_24, %c0_25] : memref<1x32xf32, #tpu.memory_space<vmem>>, vector<1x32xf32>
    %46 = vector.broadcast %45 : vector<1x32xf32> to vector<32x32xf32>
    %47 = arith.addf %44, %46 : vector<32x32xf32>
    %c0_26 = arith.constant 0 : index
    %c0_27 = arith.constant 0 : index
    %48 = vector.load %arg17[%c0_26, %c0_27] : memref<32x1xf32, #tpu.memory_space<vmem>>, vector<32x1xf32>
    %cst_28 = arith.constant dense<0xFF800000> : vector<32xf32>
    %49 = vector.multi_reduction <maximumf>, %47, %cst_28 [1] : vector<32x32xf32> to vector<32xf32>
    %50 = vector.shape_cast %49 : vector<32xf32> to vector<32x1xf32>
    %51 = arith.maximumf %48, %50 : vector<32x1xf32>
    %52 = arith.subf %48, %51 : vector<32x1xf32>
    %53 = math.exp %52 : vector<32x1xf32>
    %54 = vector.broadcast %51 : vector<32x1xf32> to vector<32x32xf32>
    %55 = arith.subf %47, %54 : vector<32x32xf32>
    %56 = math.exp %55 : vector<32x32xf32>
    %c0_29 = arith.constant 0 : index
    %c0_30 = arith.constant 0 : index
    %57 = vector.load %arg18[%c0_29, %c0_30] : memref<32x1xf32, #tpu.memory_space<vmem>>, vector<32x1xf32>
    %58 = arith.mulf %53, %57 : vector<32x1xf32>
    %cst_31 = arith.constant dense<0.000000e+00> : vector<32xf32>
    %59 = vector.multi_reduction <add>, %56, %cst_31 [1] : vector<32x32xf32> to vector<32xf32>
    %60 = vector.shape_cast %59 : vector<32xf32> to vector<32x1xf32>
    %61 = arith.addf %58, %60 : vector<32x1xf32>
    %c0_32 = arith.constant 0 : index
    %c0_33 = arith.constant 0 : index
    %62 = vector.load %arg18[%c0_32, %c0_33] : memref<32x1xf32, #tpu.memory_space<vmem>>, vector<32x1xf32>
    tpu.vector_store %arg18[%c0_32, %c0_33], %61 {strides = array<i32>} : memref<32x1xf32, #tpu.memory_space<vmem>>, vector<32x1xf32>,
    %c0_34 = arith.constant 0 : index
    %c0_35 = arith.constant 0 : index
    %63 = vector.load %arg19[%c0_34, %c0_35] : memref<32x128xf32, #tpu.memory_space<vmem>>, vector<32x128xf32>
    %64 = vector.broadcast %53 : vector<32x1xf32> to vector<32x128xf32>
    %65 = arith.mulf %64, %63 : vector<32x128xf32>
    %66 = arith.truncf %56 : vector<32x32xf32> to vector<32x32xbf16>
    %cst_36 = arith.constant dense<0.000000e+00> : vector<32x128xf32>
    %67 = tpu.matmul %66, %42, %cst_36 {dimension_numbers = #tpu.dot_dimension_numbers<[1], [0], [0], [1], [0, 0, 1, 1], [], []>} : vector<32x32xbf16>, vector<32x128xbf16>, vector<32x128xf32> -> vector<32x128xf32>
    %68 = arith.addf %65, %67 : vector<32x128xf32>
    %c0_37 = arith.constant 0 : index
    %c0_38 = arith.constant 0 : index
    %69 = vector.load %arg19[%c0_37, %c0_38] : memref<32x128xf32, #tpu.memory_space<vmem>>, vector<32x128xf32>
    tpu.vector_store %arg19[%c0_37, %c0_38], %68 {strides = array<i32>} : memref<32x128xf32, #tpu.memory_space<vmem>>, vector<32x128xf32>,
    %c0_39 = arith.constant 0 : index
    %c0_40 = arith.constant 0 : index
    %70 = vector.load %arg17[%c0_39, %c0_40] : memref<32x1xf32, #tpu.memory_space<vmem>>, vector<32x1xf32>
    tpu.vector_store %arg17[%c0_39, %c0_40], %51 {strides = array<i32>} : memref<32x1xf32, #tpu.memory_space<vmem>>, vector<32x1xf32>,
    %c0_i32_41 = arith.constant 0 : i32
    %71 = arith.cmpi eq, %arg3, %c0_i32_41 : i32
    %72 = arith.extui %71 : i1 to i32
    %c0_i32_42 = arith.constant 0 : i32
    %73 = arith.cmpi ne, %72, %c0_i32_42 : i32
    scf.if %73 {
      %c0_43 = arith.constant 0 : index
      %c0_44 = arith.constant 0 : index
      %74 = vector.load %arg18[%c0_43, %c0_44] : memref<32x1xf32, #tpu.memory_space<vmem>>, vector<32x1xf32>
      %75 = tpu.reciprocal %74 {approx = true} : vector<32x1xf32> -> vector<32x1xf32>
      %c0_45 = arith.constant 0 : index
      %c0_46 = arith.constant 0 : index
      %76 = vector.load %arg19[%c0_45, %c0_46] : memref<32x128xf32, #tpu.memory_space<vmem>>, vector<32x128xf32>
      %77 = vector.broadcast %75 : vector<32x1xf32> to vector<32x128xf32>
      %78 = arith.mulf %76, %77 : vector<32x128xf32>
      %79 = arith.truncf %78 : vector<32x128xf32> to vector<32x128xbf16>
      %c0_47 = arith.constant 0 : index
      %c0_48 = arith.constant 0 : index
      %c0_49 = arith.constant 0 : index
      %80 = vector.load %arg15[%c0_47, %c0_48, %c0_49] : memref<1x32x128xbf16, #tpu.memory_space<vmem>>, vector<1x32x128xbf16>
      %81 = vector.shape_cast %80 : vector<1x32x128xbf16> to vector<32x128xbf16>
      %82 = vector.shape_cast %79 : vector<32x128xbf16> to vector<1x32x128xbf16>
      tpu.vector_store %arg15[%c0_47, %c0_48, %c0_49], %82 {strides = array<i32>} : memref<1x32x128xbf16, #tpu.memory_space<vmem>>, vector<1x32x128xbf16>,
    } else {
    }
    return
  }
  func.func @transform_0(%arg0: i32, %arg1: i32, %arg2: i32, %arg3: i32) -> (i32, i32, i32) {
    %c0_i32 = arith.constant 0 : i32
    %c0_i32_0 = arith.constant 0 : i32
    return %arg0, %arg2, %c0_i32 : i32, i32, i32
  }
  func.func @transform_1(%arg0: i32, %arg1: i32, %arg2: i32, %arg3: i32) -> (i32, i32, i32) {
    %c0_i32 = arith.constant 0 : i32
    %c0_i32_0 = arith.constant 0 : i32
    return %arg0, %arg3, %c0_i32 : i32, i32, i32
  }
  func.func @transform_2(%arg0: i32, %arg1: i32, %arg2: i32, %arg3: i32) -> (i32, i32) {
    %c0_i32 = arith.constant 0 : i32
    %c0_i32_0 = arith.constant 0 : i32
    %c0_i32_1 = arith.constant 0 : i32
    return %c0_i32, %c0_i32_0 : i32, i32
  }
  func.func @transform_3(%arg0: i32, %arg1: i32, %arg2: i32, %arg3: i32) -> (i32, i32) {
    %c0_i32 = arith.constant 0 : i32
    %c0_i32_0 = arith.constant 0 : i32
    %c0_i32_1 = arith.constant 0 : i32
    return %c0_i32, %c0_i32_0 : i32, i32
  }
  func.func @transform_4(%arg0: i32, %arg1: i32, %arg2: i32, %arg3: i32) -> (i32, i32) {
    %c0_i32 = arith.constant 0 : i32
    %c0_i32_0 = arith.constant 0 : i32
    return %c0_i32, %arg1 : i32, i32
  }
  func.func @transform_5(%arg0: i32, %arg1: i32, %arg2: i32, %arg3: i32) -> (i32, i32) {
    %c2_i32 = arith.constant 2 : i32
    %0 = arith.addi %c2_i32, %arg1 : i32
    %c0_i32 = arith.constant 0 : i32
    %c0_i32_0 = arith.constant 0 : i32
    return %c0_i32, %0 : i32, i32
  }
  func.func @transform_6(%arg0: i32, %arg1: i32, %arg2: i32, %arg3: i32) -> (i32, i32) {
    %c4_i32 = arith.constant 4 : i32
    %0 = arith.addi %c4_i32, %arg1 : i32
    %c0_i32 = arith.constant 0 : i32
    %c0_i32_0 = arith.constant 0 : i32
    return %c0_i32, %0 : i32, i32
  }
  func.func @transform_7(%arg0: i32, %arg1: i32, %arg2: i32, %arg3: i32) -> (i32, i32) {
    %c0_i32 = arith.constant 0 : i32
    %c0_i32_0 = arith.constant 0 : i32
    return %c0_i32, %arg1 : i32, i32
  }
  func.func @transform_8(%arg0: i32, %arg1: i32, %arg2: i32, %arg3: i32) -> (i32, i32) {
    %c2_i32 = arith.constant 2 : i32
    %0 = arith.addi %c2_i32, %arg1 : i32
    %c0_i32 = arith.constant 0 : i32
    %c0_i32_0 = arith.constant 0 : i32
    return %c0_i32, %0 : i32, i32
  }
  func.func @transform_9(%arg0: i32, %arg1: i32, %arg2: i32, %arg3: i32) -> (i32, i32) {
    %c4_i32 = arith.constant 4 : i32
    %0 = arith.addi %c4_i32, %arg1 : i32
    %c0_i32 = arith.constant 0 : i32
    %c0_i32_0 = arith.constant 0 : i32
    return %c0_i32, %0 : i32, i32
  }
  func.func @transform_10(%arg0: i32, %arg1: i32, %arg2: i32, %arg3: i32) -> (i32, i32) {
    %c0_i32 = arith.constant 0 : i32
    %c0_i32_0 = arith.constant 0 : i32
    return %c0_i32, %arg3 : i32, i32
  }
  func.func @transform_11(%arg0: i32, %arg1: i32, %arg2: i32, %arg3: i32) -> (i32, i32, i32) {
    %c0_i32 = arith.constant 0 : i32
    return %arg0, %arg2, %arg1 : i32, i32, i32
  }
}

module attributes {stable_mosaic.version = 11 : i64} {
  func.func @_ln_matmul_kernel(%arg0: i32, %arg1: i32, %arg2: memref<32x256xbf16, #tpu.memory_space<vmem>>, %arg3: memref<1x256xf32, #tpu.memory_space<vmem>>, %arg4: memref<1x256xf32, #tpu.memory_space<vmem>>, %arg5: memref<256x1024xbf16, #tpu.memory_space<vmem>>, %arg6: memref<1x1024xf32, #tpu.memory_space<vmem>>, %arg7: memref<32x1024xbf16, #tpu.memory_space<vmem>>) attributes {dimension_semantics = [#tpu.dimension_semantics<parallel>, #tpu.dimension_semantics<parallel>], iteration_bounds = array<i64: 2, 1>, scalar_prefetch = 0 : i64, scratch_operands = 0 : i64, tpu.core_type = #tpu.core_type<tc>, window_params = [{transform_indices = @transform_0, window_bounds = array<i64: 32, 256>}, {pipeline_mode = #tpu.pipeline_mode<synchronous>, transform_indices = @transform_1, window_bounds = array<i64: 1, 256>}, {pipeline_mode = #tpu.pipeline_mode<synchronous>, transform_indices = @transform_2, window_bounds = array<i64: 1, 256>}, {transform_indices = @transform_3, window_bounds = array<i64: 256, 1024>}, {transform_indices = @transform_4, window_bounds = array<i64: 1, 1024>}, {transform_indices = @transform_5, window_bounds = array<i64: 32, 1024>}]} {
    %c0 = arith.constant 0 : index
    %c0_0 = arith.constant 0 : index
    %0 = vector.load %arg2[%c0, %c0_0] : memref<32x256xbf16, #tpu.memory_space<vmem>>, vector<32x256xbf16>
    %1 = arith.extf %0 : vector<32x256xbf16> to vector<32x256xf32>
    %cst = arith.constant dense<0.000000e+00> : vector<32xf32>
    %2 = vector.multi_reduction <add>, %1, %cst [1] : vector<32x256xf32> to vector<32xf32>
    %3 = vector.shape_cast %2 : vector<32xf32> to vector<32x1xf32>
    %cst_1 = arith.constant 2.560000e+02 : f32
    %4 = vector.broadcast %cst_1 : f32 to vector<32x1xf32>
    %5 = arith.divf %3, %4 : vector<32x1xf32>
    %6 = vector.broadcast %5 : vector<32x1xf32> to vector<32x256xf32>
    %7 = arith.subf %1, %6 : vector<32x256xf32>
    %8 = arith.mulf %7, %7 : vector<32x256xf32>
    %cst_2 = arith.constant dense<0.000000e+00> : vector<32xf32>
    %9 = vector.multi_reduction <add>, %8, %cst_2 [1] : vector<32x256xf32> to vector<32xf32>
    %10 = vector.shape_cast %9 : vector<32xf32> to vector<32x1xf32>
    %cst_3 = arith.constant 2.560000e+02 : f32
    %11 = vector.broadcast %cst_3 : f32 to vector<32x1xf32>
    %12 = arith.divf %10, %11 : vector<32x1xf32>
    %13 = vector.broadcast %5 : vector<32x1xf32> to vector<32x256xf32>
    %14 = arith.subf %1, %13 : vector<32x256xf32>
    %cst_4 = arith.constant 9.99999997E-7 : f32
    %15 = vector.broadcast %cst_4 : f32 to vector<32x1xf32>
    %16 = arith.addf %12, %15 : vector<32x1xf32>
    %17 = math.rsqrt %16 : vector<32x1xf32>
    %18 = vector.broadcast %17 : vector<32x1xf32> to vector<32x256xf32>
    %19 = arith.mulf %14, %18 : vector<32x256xf32>
    %c0_5 = arith.constant 0 : index
    %c0_6 = arith.constant 0 : index
    %20 = vector.load %arg3[%c0_5, %c0_6] : memref<1x256xf32, #tpu.memory_space<vmem>>, vector<1x256xf32>
    %21 = vector.broadcast %20 : vector<1x256xf32> to vector<32x256xf32>
    %22 = arith.mulf %19, %21 : vector<32x256xf32>
    %c0_7 = arith.constant 0 : index
    %c0_8 = arith.constant 0 : index
    %23 = vector.load %arg4[%c0_7, %c0_8] : memref<1x256xf32, #tpu.memory_space<vmem>>, vector<1x256xf32>
    %24 = vector.broadcast %23 : vector<1x256xf32> to vector<32x256xf32>
    %25 = arith.addf %22, %24 : vector<32x256xf32>
    %26 = arith.truncf %25 : vector<32x256xf32> to vector<32x256xbf16>
    %c0_9 = arith.constant 0 : index
    %c0_10 = arith.constant 0 : index
    %27 = vector.load %arg5[%c0_9, %c0_10] : memref<256x1024xbf16, #tpu.memory_space<vmem>>, vector<256x1024xbf16>
    %cst_11 = arith.constant dense<0.000000e+00> : vector<32x1024xf32>
    %28 = tpu.matmul %26, %27, %cst_11 {dimension_numbers = #tpu.dot_dimension_numbers<[1], [0], [0], [1], [0, 0, 1, 1], [], []>} : vector<32x256xbf16>, vector<256x1024xbf16>, vector<32x1024xf32> -> vector<32x1024xf32>
    %c0_12 = arith.constant 0 : index
    %c0_13 = arith.constant 0 : index
    %29 = vector.load %arg6[%c0_12, %c0_13] : memref<1x1024xf32, #tpu.memory_space<vmem>>, vector<1x1024xf32>
    %30 = vector.broadcast %29 : vector<1x1024xf32> to vector<32x1024xf32>
    %31 = arith.addf %28, %30 : vector<32x1024xf32>
    %cst_14 = arith.constant 5.000000e-01 : f32
    %32 = vector.broadcast %cst_14 : f32 to vector<32x1024xf32>
    %33 = arith.mulf %32, %31 : vector<32x1024xf32>
    %cst_15 = arith.constant 0.707106769 : f32
    %34 = vector.broadcast %cst_15 : f32 to vector<32x1024xf32>
    %35 = arith.mulf %31, %34 : vector<32x1024xf32>
    %36 = math.absf %35 : vector<32x1024xf32>
    %cst_16 = arith.constant 0.327591091 : f32
    %37 = vector.broadcast %cst_16 : f32 to vector<32x1024xf32>
    %38 = arith.mulf %37, %36 : vector<32x1024xf32>
    %cst_17 = arith.constant 1.000000e+00 : f32
    %39 = vector.broadcast %cst_17 : f32 to vector<32x1024xf32>
    %40 = arith.addf %39, %38 : vector<32x1024xf32>
    %cst_18 = arith.constant 1.000000e+00 : f32
    %41 = vector.broadcast %cst_18 : f32 to vector<32x1024xf32>
    %42 = arith.divf %41, %40 : vector<32x1024xf32>
    %cst_19 = arith.constant 1.06140542 : f32
    %43 = vector.broadcast %cst_19 : f32 to vector<32x1024xf32>
    %44 = arith.mulf %42, %43 : vector<32x1024xf32>
    %cst_20 = arith.constant -1.45315206 : f32
    %45 = vector.broadcast %cst_20 : f32 to vector<32x1024xf32>
    %46 = arith.addf %45, %44 : vector<32x1024xf32>
    %47 = arith.mulf %42, %46 : vector<32x1024xf32>
    %cst_21 = arith.constant 1.42141378 : f32
    %48 = vector.broadcast %cst_21 : f32 to vector<32x1024xf32>
    %49 = arith.addf %48, %47 : vector<32x1024xf32>
    %50 = arith.mulf %42, %49 : vector<32x1024xf32>
    %cst_22 = arith.constant -0.284496725 : f32
    %51 = vector.broadcast %cst_22 : f32 to vector<32x1024xf32>
    %52 = arith.addf %51, %50 : vector<32x1024xf32>
    %53 = arith.mulf %42, %52 : vector<32x1024xf32>
    %cst_23 = arith.constant 0.254829586 : f32
    %54 = vector.broadcast %cst_23 : f32 to vector<32x1024xf32>
    %55 = arith.addf %54, %53 : vector<32x1024xf32>
    %56 = arith.mulf %42, %55 : vector<32x1024xf32>
    %cst_24 = arith.constant 0.000000e+00 : f32
    %57 = vector.broadcast %cst_24 : f32 to vector<32x1024xf32>
    %58 = arith.subf %57, %35 : vector<32x1024xf32>
    %59 = arith.mulf %58, %35 : vector<32x1024xf32>
    %60 = math.exp %59 : vector<32x1024xf32>
    %61 = arith.mulf %56, %60 : vector<32x1024xf32>
    %cst_25 = arith.constant 1.000000e+00 : f32
    %62 = vector.broadcast %cst_25 : f32 to vector<32x1024xf32>
    %63 = arith.subf %62, %61 : vector<32x1024xf32>
    %cst_26 = arith.constant 0.000000e+00 : f32
    %64 = vector.broadcast %cst_26 : f32 to vector<32x1024xf32>
    %65 = arith.cmpf olt, %35, %64 : vector<32x1024xf32>
    %cst_27 = arith.constant 0.000000e+00 : f32
    %66 = vector.broadcast %cst_27 : f32 to vector<32x1024xf32>
    %67 = arith.subf %66, %63 : vector<32x1024xf32>
    %68 = arith.select %65, %67, %63 : vector<32x1024xi1>, vector<32x1024xf32>
    %cst_28 = arith.constant 1.000000e+00 : f32
    %69 = vector.broadcast %cst_28 : f32 to vector<32x1024xf32>
    %70 = arith.addf %69, %68 : vector<32x1024xf32>
    %71 = arith.mulf %33, %70 : vector<32x1024xf32>
    %72 = arith.truncf %71 : vector<32x1024xf32> to vector<32x1024xbf16>
    %c0_29 = arith.constant 0 : index
    %c0_30 = arith.constant 0 : index
    %73 = vector.load %arg7[%c0_29, %c0_30] : memref<32x1024xbf16, #tpu.memory_space<vmem>>, vector<32x1024xbf16>
    tpu.vector_store %arg7[%c0_29, %c0_30], %72 {strides = array<i32>} : memref<32x1024xbf16, #tpu.memory_space<vmem>>, vector<32x1024xbf16>,
    return
  }
  func.func @transform_0(%arg0: i32, %arg1: i32) -> (i32, i32) {
    %c0_i32 = arith.constant 0 : i32
    %c0_i32_0 = arith.constant 0 : i32
    return %arg0, %c0_i32 : i32, i32
  }
  func.func @transform_1(%arg0: i32, %arg1: i32) -> (i32, i32) {
    %c0_i32 = arith.constant 0 : i32
    %c0_i32_0 = arith.constant 0 : i32
    %c0_i32_1 = arith.constant 0 : i32
    return %c0_i32, %c0_i32_0 : i32, i32
  }
  func.func @transform_2(%arg0: i32, %arg1: i32) -> (i32, i32) {
    %c0_i32 = arith.constant 0 : i32
    %c0_i32_0 = arith.constant 0 : i32
    %c0_i32_1 = arith.constant 0 : i32
    return %c0_i32, %c0_i32_0 : i32, i32
  }
  func.func @transform_3(%arg0: i32, %arg1: i32) -> (i32, i32) {
    %c0_i32 = arith.constant 0 : i32
    %c0_i32_0 = arith.constant 0 : i32
    return %c0_i32, %arg1 : i32, i32
  }
  func.func @transform_4(%arg0: i32, %arg1: i32) -> (i32, i32) {
    %c0_i32 = arith.constant 0 : i32
    %c0_i32_0 = arith.constant 0 : i32
    return %c0_i32, %arg1 : i32, i32
  }
  func.func @transform_5(%arg0: i32, %arg1: i32) -> (i32, i32) {
    %c0_i32 = arith.constant 0 : i32
    return %arg0, %arg1 : i32, i32
  }
}

module attributes {stable_mosaic.version = 11 : i64} {
  func.func @_matmul_onepass_kernel(%arg0: i32, %arg1: i32, %arg2: memref<32x1024xbf16, #tpu.memory_space<vmem>>, %arg3: memref<1024x256xbf16, #tpu.memory_space<vmem>>, %arg4: memref<1x256xf32, #tpu.memory_space<vmem>>, %arg5: memref<32x256xbf16, #tpu.memory_space<vmem>>, %arg6: memref<32x256xbf16, #tpu.memory_space<vmem>>) attributes {dimension_semantics = [#tpu.dimension_semantics<parallel>, #tpu.dimension_semantics<parallel>], iteration_bounds = array<i64: 2, 1>, scalar_prefetch = 0 : i64, scratch_operands = 0 : i64, tpu.core_type = #tpu.core_type<tc>, window_params = [{transform_indices = @transform_0, window_bounds = array<i64: 32, 1024>}, {transform_indices = @transform_1, window_bounds = array<i64: 1024, 256>}, {transform_indices = @transform_2, window_bounds = array<i64: 1, 256>}, {transform_indices = @transform_3, window_bounds = array<i64: 32, 256>}, {transform_indices = @transform_4, window_bounds = array<i64: 32, 256>}]} {
    %c0 = arith.constant 0 : index
    %c0_0 = arith.constant 0 : index
    %0 = vector.load %arg2[%c0, %c0_0] : memref<32x1024xbf16, #tpu.memory_space<vmem>>, vector<32x1024xbf16>
    %c0_1 = arith.constant 0 : index
    %c0_2 = arith.constant 0 : index
    %1 = vector.load %arg3[%c0_1, %c0_2] : memref<1024x256xbf16, #tpu.memory_space<vmem>>, vector<1024x256xbf16>
    %cst = arith.constant dense<0.000000e+00> : vector<32x256xf32>
    %2 = tpu.matmul %0, %1, %cst {dimension_numbers = #tpu.dot_dimension_numbers<[1], [0], [0], [1], [0, 0, 1, 1], [], []>} : vector<32x1024xbf16>, vector<1024x256xbf16>, vector<32x256xf32> -> vector<32x256xf32>
    %c0_3 = arith.constant 0 : index
    %c0_4 = arith.constant 0 : index
    %3 = vector.load %arg4[%c0_3, %c0_4] : memref<1x256xf32, #tpu.memory_space<vmem>>, vector<1x256xf32>
    %4 = vector.broadcast %3 : vector<1x256xf32> to vector<32x256xf32>
    %5 = arith.addf %2, %4 : vector<32x256xf32>
    %c0_5 = arith.constant 0 : index
    %c0_6 = arith.constant 0 : index
    %6 = vector.load %arg5[%c0_5, %c0_6] : memref<32x256xbf16, #tpu.memory_space<vmem>>, vector<32x256xbf16>
    %7 = arith.extf %6 : vector<32x256xbf16> to vector<32x256xf32>
    %8 = arith.addf %5, %7 : vector<32x256xf32>
    %9 = arith.truncf %8 : vector<32x256xf32> to vector<32x256xbf16>
    %c0_7 = arith.constant 0 : index
    %c0_8 = arith.constant 0 : index
    %10 = vector.load %arg6[%c0_7, %c0_8] : memref<32x256xbf16, #tpu.memory_space<vmem>>, vector<32x256xbf16>
    tpu.vector_store %arg6[%c0_7, %c0_8], %9 {strides = array<i32>} : memref<32x256xbf16, #tpu.memory_space<vmem>>, vector<32x256xbf16>,
    return
  }
  func.func @transform_0(%arg0: i32, %arg1: i32) -> (i32, i32) {
    %c0_i32 = arith.constant 0 : i32
    %c0_i32_0 = arith.constant 0 : i32
    return %arg0, %c0_i32 : i32, i32
  }
  func.func @transform_1(%arg0: i32, %arg1: i32) -> (i32, i32) {
    %c0_i32 = arith.constant 0 : i32
    %c0_i32_0 = arith.constant 0 : i32
    return %c0_i32, %arg1 : i32, i32
  }
  func.func @transform_2(%arg0: i32, %arg1: i32) -> (i32, i32) {
    %c0_i32 = arith.constant 0 : i32
    %c0_i32_0 = arith.constant 0 : i32
    return %c0_i32, %arg1 : i32, i32
  }
  func.func @transform_3(%arg0: i32, %arg1: i32) -> (i32, i32) {
    %c0_i32 = arith.constant 0 : i32
    return %arg0, %arg1 : i32, i32
  }
  func.func @transform_4(%arg0: i32, %arg1: i32) -> (i32, i32) {
    %c0_i32 = arith.constant 0 : i32
    return %arg0, %arg1 : i32, i32
  }
}

module attributes {stable_mosaic.version = 11 : i64} {
  func.func @_layernorm_kernel(%arg0: i32, %arg1: memref<32x256xbf16, #tpu.memory_space<vmem>>, %arg2: memref<1x256xf32, #tpu.memory_space<vmem>>, %arg3: memref<1x256xf32, #tpu.memory_space<vmem>>, %arg4: memref<32x256xbf16, #tpu.memory_space<vmem>>) attributes {dimension_semantics = [#tpu.dimension_semantics<parallel>], iteration_bounds = array<i64: 2>, scalar_prefetch = 0 : i64, scratch_operands = 0 : i64, tpu.core_type = #tpu.core_type<tc>, window_params = [{transform_indices = @transform_0, window_bounds = array<i64: 32, 256>}, {pipeline_mode = #tpu.pipeline_mode<synchronous>, transform_indices = @transform_1, window_bounds = array<i64: 1, 256>}, {pipeline_mode = #tpu.pipeline_mode<synchronous>, transform_indices = @transform_2, window_bounds = array<i64: 1, 256>}, {transform_indices = @transform_3, window_bounds = array<i64: 32, 256>}]} {
    %c0 = arith.constant 0 : index
    %c0_0 = arith.constant 0 : index
    %0 = vector.load %arg1[%c0, %c0_0] : memref<32x256xbf16, #tpu.memory_space<vmem>>, vector<32x256xbf16>
    %1 = arith.extf %0 : vector<32x256xbf16> to vector<32x256xf32>
    %cst = arith.constant dense<0.000000e+00> : vector<32xf32>
    %2 = vector.multi_reduction <add>, %1, %cst [1] : vector<32x256xf32> to vector<32xf32>
    %3 = vector.shape_cast %2 : vector<32xf32> to vector<32x1xf32>
    %cst_1 = arith.constant 2.560000e+02 : f32
    %4 = vector.broadcast %cst_1 : f32 to vector<32x1xf32>
    %5 = arith.divf %3, %4 : vector<32x1xf32>
    %6 = vector.broadcast %5 : vector<32x1xf32> to vector<32x256xf32>
    %7 = arith.subf %1, %6 : vector<32x256xf32>
    %8 = arith.mulf %7, %7 : vector<32x256xf32>
    %cst_2 = arith.constant dense<0.000000e+00> : vector<32xf32>
    %9 = vector.multi_reduction <add>, %8, %cst_2 [1] : vector<32x256xf32> to vector<32xf32>
    %10 = vector.shape_cast %9 : vector<32xf32> to vector<32x1xf32>
    %cst_3 = arith.constant 2.560000e+02 : f32
    %11 = vector.broadcast %cst_3 : f32 to vector<32x1xf32>
    %12 = arith.divf %10, %11 : vector<32x1xf32>
    %13 = vector.broadcast %5 : vector<32x1xf32> to vector<32x256xf32>
    %14 = arith.subf %1, %13 : vector<32x256xf32>
    %cst_4 = arith.constant 9.99999997E-7 : f32
    %15 = vector.broadcast %cst_4 : f32 to vector<32x1xf32>
    %16 = arith.addf %12, %15 : vector<32x1xf32>
    %17 = math.rsqrt %16 : vector<32x1xf32>
    %18 = vector.broadcast %17 : vector<32x1xf32> to vector<32x256xf32>
    %19 = arith.mulf %14, %18 : vector<32x256xf32>
    %c0_5 = arith.constant 0 : index
    %c0_6 = arith.constant 0 : index
    %20 = vector.load %arg2[%c0_5, %c0_6] : memref<1x256xf32, #tpu.memory_space<vmem>>, vector<1x256xf32>
    %21 = vector.broadcast %20 : vector<1x256xf32> to vector<32x256xf32>
    %22 = arith.mulf %19, %21 : vector<32x256xf32>
    %c0_7 = arith.constant 0 : index
    %c0_8 = arith.constant 0 : index
    %23 = vector.load %arg3[%c0_7, %c0_8] : memref<1x256xf32, #tpu.memory_space<vmem>>, vector<1x256xf32>
    %24 = vector.broadcast %23 : vector<1x256xf32> to vector<32x256xf32>
    %25 = arith.addf %22, %24 : vector<32x256xf32>
    %26 = arith.truncf %25 : vector<32x256xf32> to vector<32x256xbf16>
    %c0_9 = arith.constant 0 : index
    %c0_10 = arith.constant 0 : index
    %27 = vector.load %arg4[%c0_9, %c0_10] : memref<32x256xbf16, #tpu.memory_space<vmem>>, vector<32x256xbf16>
    tpu.vector_store %arg4[%c0_9, %c0_10], %26 {strides = array<i32>} : memref<32x256xbf16, #tpu.memory_space<vmem>>, vector<32x256xbf16>,
    return
  }
  func.func @transform_0(%arg0: i32) -> (i32, i32) {
    %c0_i32 = arith.constant 0 : i32
    %c0_i32_0 = arith.constant 0 : i32
    return %arg0, %c0_i32 : i32, i32
  }
  func.func @transform_1(%arg0: i32) -> (i32, i32) {
    %c0_i32 = arith.constant 0 : i32
    %c0_i32_0 = arith.constant 0 : i32
    %c0_i32_1 = arith.constant 0 : i32
    return %c0_i32, %c0_i32_0 : i32, i32
  }
  func.func @transform_2(%arg0: i32) -> (i32, i32) {
    %c0_i32 = arith.constant 0 : i32
    %c0_i32_0 = arith.constant 0 : i32
    %c0_i32_1 = arith.constant 0 : i32
    return %c0_i32, %c0_i32_0 : i32, i32
  }
  func.func @transform_3(%arg0: i32) -> (i32, i32) {
    %c0_i32 = arith.constant 0 : i32
    %c0_i32_0 = arith.constant 0 : i32
    return %arg0, %c0_i32 : i32, i32
  }
}

</mosaic_0001>

<bundles_post_ra>
// kernel: register_vit_forward.10
= control target key start
LH: loop header
LB: loop body
LE: loop exit
PB: predicated region body
PF: predicated region fallthrough
CT: control target
= control target key end

     0   :  { %s812_s12 = smov 0   ;;  %s814_s13 = smov 0   ;;  %s954_s0 = inlined_call_operand.vmem [shape: bf16[64,192], index: 0, kind: input, shape index: {}]   ;;  %s955_s1 = inlined_call_operand.vmem [shape: bf16[192,256], index: 1, kind: input, shape index: {}]   ;;  %s956_s2 = inlined_call_operand.vmem [shape: f32[32,256], index: 2, kind: input, shape index: {}]   ;;  %s957_s3 = inlined_call_operand.vmem [shape: bf16[64,256], index: 3, kind: output, shape index: {}]  }
   0x1   :  { %s816_s14 = smov 0  }
   0x2 LB: > { %s25_s15 = sadd.s32 1, %s786_s13  ;;  %p629_p0 = scmp.ge.s32.totalorder %s790_s14, 1  ;;  %s790_s14 = sphi %s816_s14, %s13_s14   ;;  %s786_s13 = sphi %s814_s13, %s959_s13   ;;  %s782_s12 = sphi %s812_s12, %s958_s12  }
   0x3   : > { %p27_p1 = scmp.ge.s32.totalorder %s25_s15, 2  ;;  %p175_p2 = scmp.lt.s32.totalorder %s790_s14, 3 }
   0x5   : > { %s961_s15 = smov (%p27_p1, %s25_s15), 0  ;;  %p176_p3 = pnand %p629_p0, %p175_p2 }
   0x6   : > { %v726_v0 = vld [vmem:[%s955_s1 + $0x4] ss:$8 sps:$4 sm:$0xff] (!%p176_p3)   ;;  %s630_s18 = sshll.u32 (!%p176_p3), %s782_s12, 2  ;;  %v728_v1 = vld [vmem:[%s955_s1] ss:$8 sps:$4 sm:$0xff] (!%p176_p3)   ;;  %vm421_vm0 = vcmask (!%p176_p3), 523264  }
   0x7   : > { %179 = sbr.rel (%p176_p3) target bundleno = 275 (0x113), region = 32  ;;  %428 = vmatprep.subr.bf16.mxu0 (!%p176_p3), %v726_v0  ;;  %678 = vmatprep.subr.bf16.mxu1 (!%p176_p3), %v726_v0  ;;  %v729_v2 = vld [vmem:[%s955_s1 + $0x14] ss:$8 sps:$4 sm:$0xff] (!%p176_p3)   ;;  %v731_v3 = vld [vmem:[%s955_s1 + $0x10] ss:$8 sps:$4 sm:$0xff] (!%p176_p3)   ;;  %p216_p4 = scmp.lt.s32.totalorder (!%p176_p3), %s630_s18, 7 }
   0x8   : > { %429 = vmatpush1.bf16.msra.mxu0 (!%p176_p3), %v728_v1  ;;  %690 = vmatpush1.bf16.msra.mxu1 (!%p176_p3), %v728_v1  ;;  %v732_v4 = vld [vmem:[%s955_s1 + $0x24] ss:$8 sps:$4 sm:$0xff] (!%p176_p3)   ;;  %v734_v5 = vld [vmem:[%s955_s1 + $0x20] ss:$8 sps:$4 sm:$0xff] (!%p176_p3)   ;;  %v735_v6 = vld [vmem:[%s955_s1 + $0x34] ss:$8 sps:$4 sm:$0xff] (!%p176_p3)  }
   0x9   : > { %430 = vmatprep.subr.bf16.mxu0 (!%p176_p3), %v729_v2  ;;  %679 = vmatprep.subr.bf16.mxu1 (!%p176_p3), %v729_v2  ;;  %v737_v7 = vld [vmem:[%s955_s1 + $0x30] ss:$8 sps:$4 sm:$0xff] (!%p176_p3)   ;;  %v738_v8 = vld [vmem:[%s955_s1 + $0x44] ss:$8 sps:$4 sm:$0xff] (!%p176_p3)   ;;  %v740_v9 = vld [vmem:[%s955_s1 + $0x40] ss:$8 sps:$4 sm:$0xff] (!%p176_p3)  }
   0xa   : > { %v741_v10 = vld [vmem:[%s955_s1 + $0x54] ss:$8 sps:$4 sm:$0xff] (!%p176_p3)   ;;  %v743_v13 = vld [vmem:[%s955_s1 + $0x50] ss:$8 sps:$4 sm:$0xff] (!%p176_p3)   ;;  %v744_v14 = vld [vmem:[%s955_s1 + $0x64] ss:$8 sps:$4 sm:$0xff] (!%p176_p3)  }
   0xb   : > { %v746_v15 = vld [vmem:[%s955_s1 + $0x60] ss:$8 sps:$4 sm:$0xff] (!%p176_p3)   ;;  %v747_v16 = vld [vmem:[%s955_s1 + $0x74] ss:$8 sps:$4 sm:$0xff] (!%p176_p3)   ;;  %v749_v17 = vld [vmem:[%s955_s1 + $0x70] ss:$8 sps:$4 sm:$0xff] (!%p176_p3)  }
   0xc   : > { %431 = vmatpush1.bf16.msra.mxu0 (!%p176_p3), %v731_v3  ;;  %691 = vmatpush1.bf16.msra.mxu1 (!%p176_p3), %v731_v3  ;;  %v750_v18 = vld [vmem:[%s955_s1 + $0x84] ss:$8 sps:$4 sm:$0xff] (!%p176_p3)   ;;  %v752_v19 = vld [vmem:[%s955_s1 + $0x80] ss:$8 sps:$4 sm:$0xff] (!%p176_p3)   ;;  %v753_v20 = vld [vmem:[%s955_s1 + $0x94] ss:$8 sps:$4 sm:$0xff] (!%p176_p3)  }
   0xd   : > { %432 = vmatprep.subr.bf16.mxu0 (!%p176_p3), %v732_v4  ;;  %680 = vmatprep.subr.bf16.mxu1 (!%p176_p3), %v732_v4  ;;  %v755_v21 = vld [vmem:[%s955_s1 + $0x90] ss:$8 sps:$4 sm:$0xff] (!%p176_p3)   ;;  %v756_v22 = vld [vmem:[%s955_s1 + $0xa4] ss:$8 sps:$4 sm:$0xff] (!%p176_p3)   ;;  %v758_v23 = vld [vmem:[%s955_s1 + $0xa0] ss:$8 sps:$4 sm:$0xff] (!%p176_p3)  }
   0xe   : > { %s963_s18 = smov (!%p216_p4, %s630_s18), 7  ;;  %v759_v24 = vld [vmem:[%s955_s1 + $0xb4] ss:$8 sps:$4 sm:$0xff]   ;;  %v761_v25 = vld [vmem:[%s955_s1 + $0xb0] ss:$8 sps:$4 sm:$0xff]   ;;  %v275_v28 = vld [vmem:[%s956_s2] sm:$0xff] }
   0xf   : > { %s672_s6 = sshll.u32 %s963_s18, 3  ;;  %v279_v29 = vld [vmem:[%s956_s2 + $0x20] sm:$0xff]  ;;  %v276_v30 = vld [vmem:[%s956_s2 + $0x8] sm:$0xff]  ;;  %v277_v34 = vld [vmem:[%s956_s2 + $0x10] sm:$0xff] }
  0x10   : > { %433 = vmatpush1.bf16.msra.mxu0 %v734_v5  ;;  %692 = vmatpush1.bf16.msra.mxu1 %v734_v5  ;;  %s865_s11 = scalar_lea.vmem %s954_s0, %s672_s6  ;;  %v280_v31 = vld [vmem:[%s956_s2 + $0x28] sm:$0xff]  ;;  %v281_v35 = vld [vmem:[%s956_s2 + $0x30] sm:$0xff]  ;;  %v278_v40 = vld [vmem:[%s956_s2 + $0x18] sm:$0xff]  ;;  %s243_s21 = scalar_lea.vmem %s957_s3, %s672_s6 }
  0x11   : > { %434 = vmatprep.subr.bf16.mxu0 %v735_v6  ;;  %681 = vmatprep.subr.bf16.mxu1 %v735_v6  ;;  %v764_v11 = vld [vmem:[%s865_s11 + $0x4] ss:$8 sps:$4 sm:$0xff]   ;;  %v767_v12 = vld [vmem:[%s865_s11 + $0x14] ss:$8 sps:$4 sm:$0xff]   ;;  %v762_v26 = vld [vmem:[%s865_s11] ss:$8 sps:$4 sm:$0xff]  }
  0x12   : > { %664 = vmatprep.mubr.msk.bf16.mxu0 %vm421_vm0, %v764_v11  ;;  %665 = vmatprep.mubr.msk.bf16.mxu1 %vm421_vm0, %v767_v12  ;;  %v765_v27 = vld [vmem:[%s865_s11 + $0x10] ss:$8 sps:$4 sm:$0xff]  }
  0x13   : > { %v282_v41 = vld [vmem:[%s956_s2 + $0x38] sm:$0xff] }
  0x14   : > { %435 = vmatpush1.bf16.msra.mxu0 %v737_v7  ;;  %693 = vmatpush1.bf16.msra.mxu1 %v737_v7 }
  0x15   : > { %436 = vmatprep.subr.bf16.mxu0 %v738_v8  ;;  %682 = vmatprep.subr.bf16.mxu1 %v738_v8 }
  0x18   : > { %437 = vmatpush1.bf16.msra.mxu0 %v740_v9  ;;  %694 = vmatpush1.bf16.msra.mxu1 %v740_v9 }
  0x19   : > { %438 = vmatprep.subr.bf16.mxu0 %v741_v10  ;;  %683 = vmatprep.subr.bf16.mxu1 %v741_v10 }
  0x1c   : > { %439 = vmatpush1.bf16.msra.mxu0 %v743_v13  ;;  %695 = vmatpush1.bf16.msra.mxu1 %v743_v13 }
  0x1d   : > { %440 = vmatprep.subr.bf16.mxu0 %v744_v14  ;;  %684 = vmatprep.subr.bf16.mxu1 %v744_v14 }
  0x20   : > { %441 = vmatpush1.bf16.msra.mxu0 %v746_v15  ;;  %696 = vmatpush1.bf16.msra.mxu1 %v746_v15 }
  0x21   : > { %442 = vmatprep.subr.bf16.mxu0 %v747_v16  ;;  %685 = vmatprep.subr.bf16.mxu1 %v747_v16 }
  0x24   : > { %443 = vmatpush1.bf16.msra.mxu0 %v749_v17  ;;  %697 = vmatpush1.bf16.msra.mxu1 %v749_v17 }
  0x25   : > { %444 = vmatprep.subr.bf16.mxu0 %v750_v18  ;;  %686 = vmatprep.subr.bf16.mxu1 %v750_v18 }
  0x28   : > { %445 = vmatpush1.bf16.msra.mxu0 %v752_v19  ;;  %698 = vmatpush1.bf16.msra.mxu1 %v752_v19 }
  0x29   : > { %446 = vmatprep.subr.bf16.mxu0 %v753_v20  ;;  %687 = vmatprep.subr.bf16.mxu1 %v753_v20 }
  0x2c   : > { %447 = vmatpush1.bf16.msra.mxu0 %v755_v21  ;;  %699 = vmatpush1.bf16.msra.mxu1 %v755_v21 }
  0x2d   : > { %448 = vmatprep.subr.bf16.mxu0 %v756_v22  ;;  %688 = vmatprep.subr.bf16.mxu1 %v756_v22 }
  0x30   : > { %449 = vmatpush1.bf16.msra.mxu0 %v758_v23  ;;  %700 = vmatpush1.bf16.msra.mxu1 %v758_v23 }
  0x31   : > { %450 = vmatprep.subr.bf16.mxu0 %v759_v24  ;;  %689 = vmatprep.subr.bf16.mxu1 %v759_v24 }
  0x34   : > { %451 = vmatpush1.bf16.msra.mxu0 %v761_v25  ;;  %701 = vmatpush1.bf16.msra.mxu1 %v761_v25 }
  0x37   : > { %461 = vmatmul.mubr.bf16.vlgmr.msra.gmra.mrb[0].mxu0 %v762_v26  ;;  %471 = vmatmul.mubr.bf16.vlgmr.msra.gmra.mrb[0].mxu1 %v765_v27 }
 0x10a   : > { %v462_v32 = vpop.f32.mrb[0].mxu0  ;;  %v472_v33 = vpop.f32.mrb[0].mxu1 }
 0x10b   : > { %v463_v36 = vadd.f32 %v462_v32, %v275_v28  ;;  %v473_v37 = vadd.f32 %v472_v33, %v279_v29  ;;  %v464_v38 = vpop.f32.mrb[1].mxu0  ;;  %v474_v39 = vpop.f32.mrb[1].mxu1 }
 0x10c   : > { %v465_v42 = vadd.f32 %v464_v38, %v276_v30  ;;  %v475_v43 = vadd.f32 %v474_v39, %v280_v31  ;;  %v466_v44 = vpop.f32.mrb[2].mxu0  ;;  %v476_v45 = vpop.f32.mrb[2].mxu1 }
 0x10d   : > { %v467_v46 = vadd.f32 %v466_v44, %v277_v34  ;;  %v477_v47 = vadd.f32 %v476_v45, %v281_v35  ;;  %v468_v48 = vpop.f32.mrb[3].mxu0  ;;  %v478_v49 = vpop.f32.mrb[3].mxu1 }
 0x10e   : > { %v674_v50 = vpack.c.bf16 %v465_v42, %v463_v36  ;;  %v676_v51 = vpack.c.bf16 %v475_v43, %v473_v37  ;;  %v469_v52 = vadd.f32 %v468_v48, %v278_v40  ;;  %v479_v53 = vadd.f32 %v478_v49, %v282_v41 }
 0x110   : > { %505 = vst [vmem:[%s243_s21] sm:$0xff] %v674_v50  ;;  %v675_v54 = vpack.c.bf16 %v469_v52, %v467_v46  ;;  %v677_v55 = vpack.c.bf16 %v479_v53, %v477_v47  ;;  %507 = vst [vmem:[%s243_s21 + $0x10] sm:$0xff] %v676_v51 }
 0x112   : > { %506 = vst [vmem:[%s243_s21 + $0x8] sm:$0xff] %v675_v54  ;;  %508 = vst [vmem:[%s243_s21 + $0x18] sm:$0xff] %v677_v55 }
 0x113 PF: > { %s13_s14 = sadd.s32 1, %s790_s14   ;;  %s958_s12 = smov %s786_s13 }
 0x114   : > { %p10_p5 = scmp.ge.s32.totalorder %s13_s14, 4   ;;  %s959_s13 = smov %s961_s15 }
 0x116   :  { %12 = sbr.rel (!%p10_p5) target bundleno = 2 (0x2), region = 68 }

// kernel: register_vit_forward.12
= control target key start
LH: loop header
LB: loop body
LE: loop exit
PB: predicated region body
PF: predicated region fallthrough
CT: control target
= control target key end

     0   :  { %s993_s15 = smov 0   ;;  %s995_s16 = smov 0   ;;  %s1142_s0 = inlined_call_operand.vmem [shape: bf16[64,256], index: 0, kind: input, shape index: {}]   ;;  %s1143_s1 = inlined_call_operand.vmem [shape: bf16[256,256], index: 1, kind: input, shape index: {}]   ;;  %s1144_s2 = inlined_call_operand.vmem [shape: f32[1,256], index: 2, kind: input, shape index: {}]   ;;  %s1145_s3 = inlined_call_operand.vmem [shape: bf16[64,256], index: 3, kind: input, shape index: {}]   ;;  %s1146_s4 = inlined_call_operand.vmem [shape: bf16[64,256], index: 4, kind: output, shape index: {}]  }
   0x1   :  { %s997_s17 = smov 0  }
   0x2 LB: > { %s26_s18 = sadd.s32 1, %s962_s16  ;;  %p775_p0 = scmp.ge.s32.totalorder %s966_s17, 1  ;;  %s966_s17 = sphi %s997_s17, %s14_s17   ;;  %s962_s16 = sphi %s995_s16, %s1148_s16   ;;  %s958_s15 = sphi %s993_s15, %s1147_s15  }
   0x3   : > { %p28_p1 = scmp.ge.s32.totalorder %s26_s18, 2  ;;  %p218_p2 = scmp.lt.s32.totalorder %s966_s17, 3 }
   0x5   : > { %s1150_s18 = smov (%p28_p1, %s26_s18), 0  ;;  %p219_p3 = pnand %p775_p0, %p218_p2 }
   0x6   : > { %v890_v0 = vld [vmem:[%s1143_s1 + $0x4] ss:$8 sps:$4 sm:$0xff] (!%p219_p3)   ;;  %v892_v1 = vld [vmem:[%s1143_s1] ss:$8 sps:$4 sm:$0xff] (!%p219_p3)   ;;  %v893_v2 = vld [vmem:[%s1143_s1 + $0x14] ss:$8 sps:$4 sm:$0xff] (!%p219_p3)   ;;  %v349_v36 = vlaneseq (!%p219_p3) }
   0x7   : > { %222 = sbr.rel (%p219_p3) target bundleno = 293 (0x125), region = 36  ;;  %539 = vmatprep.subr.bf16.mxu0 (!%p219_p3), %v890_v0  ;;  %834 = vmatprep.subr.bf16.mxu1 (!%p219_p3), %v890_v0  ;;  %v895_v3 = vld [vmem:[%s1143_s1 + $0x10] ss:$8 sps:$4 sm:$0xff] (!%p219_p3)   ;;  %v896_v4 = vld [vmem:[%s1143_s1 + $0x24] ss:$8 sps:$4 sm:$0xff] (!%p219_p3)   ;;  %s776_s29 = sshll.u32 (!%p219_p3), %s958_s15, 2 }
   0x8   : > { %540 = vmatpush1.bf16.msra.mxu0 (!%p219_p3), %v892_v1  ;;  %850 = vmatpush1.bf16.msra.mxu1 (!%p219_p3), %v892_v1  ;;  %v898_v5 = vld [vmem:[%s1143_s1 + $0x20] ss:$8 sps:$4 sm:$0xff] (!%p219_p3)   ;;  %v899_v6 = vld [vmem:[%s1143_s1 + $0x34] ss:$8 sps:$4 sm:$0xff] (!%p219_p3)   ;;  %p270_p4 = scmp.lt.s32.totalorder (!%p219_p3), %s776_s29, 7  ;;  %v350_v37 = vshrl.u32 (!%p219_p3), %v349_v36, 7 }
   0x9   : > { %541 = vmatprep.subr.bf16.mxu0 (!%p219_p3), %v893_v2  ;;  %835 = vmatprep.subr.bf16.mxu1 (!%p219_p3), %v893_v2  ;;  %v901_v7 = vld [vmem:[%s1143_s1 + $0x30] ss:$8 sps:$4 sm:$0xff] (!%p219_p3)   ;;  %v902_v8 = vld [vmem:[%s1143_s1 + $0x44] ss:$8 sps:$4 sm:$0xff] (!%p219_p3)   ;;  %v904_v9 = vld [vmem:[%s1143_s1 + $0x40] ss:$8 sps:$4 sm:$0xff] (!%p219_p3)  }
   0xa   : > { %v905_v10 = vld [vmem:[%s1143_s1 + $0x54] ss:$8 sps:$4 sm:$0xff] (!%p219_p3)   ;;  %v907_v11 = vld [vmem:[%s1143_s1 + $0x50] ss:$8 sps:$4 sm:$0xff] (!%p219_p3)   ;;  %v908_v12 = vld [vmem:[%s1143_s1 + $0x64] ss:$8 sps:$4 sm:$0xff] (!%p219_p3)  }
   0xb   : > { %v910_v14 = vld [vmem:[%s1143_s1 + $0x60] ss:$8 sps:$4 sm:$0xff] (!%p219_p3)   ;;  %v911_v16 = vld [vmem:[%s1143_s1 + $0x74] ss:$8 sps:$4 sm:$0xff] (!%p219_p3)   ;;  %v913_v17 = vld [vmem:[%s1143_s1 + $0x70] ss:$8 sps:$4 sm:$0xff] (!%p219_p3)  }
   0xc   : > { %542 = vmatpush1.bf16.msra.mxu0 (!%p219_p3), %v895_v3  ;;  %851 = vmatpush1.bf16.msra.mxu1 (!%p219_p3), %v895_v3  ;;  %v914_v18 = vld [vmem:[%s1143_s1 + $0x84] ss:$8 sps:$4 sm:$0xff] (!%p219_p3)   ;;  %v916_v19 = vld [vmem:[%s1143_s1 + $0x80] ss:$8 sps:$4 sm:$0xff] (!%p219_p3)   ;;  %v917_v20 = vld [vmem:[%s1143_s1 + $0x94] ss:$8 sps:$4 sm:$0xff] (!%p219_p3)  }
   0xd   : > { %543 = vmatprep.subr.bf16.mxu0 (!%p219_p3), %v896_v4  ;;  %836 = vmatprep.subr.bf16.mxu1 (!%p219_p3), %v896_v4  ;;  %v919_v21 = vld [vmem:[%s1143_s1 + $0x90] ss:$8 sps:$4 sm:$0xff] (!%p219_p3)   ;;  %v920_v22 = vld [vmem:[%s1143_s1 + $0xa4] ss:$8 sps:$4 sm:$0xff] (!%p219_p3)   ;;  %v922_v23 = vld [vmem:[%s1143_s1 + $0xa0] ss:$8 sps:$4 sm:$0xff] (!%p219_p3)  }
   0xe   : > { %s1152_s29 = smov (!%p270_p4, %s776_s29), 7  ;;  %v923_v24 = vld [vmem:[%s1143_s1 + $0xb4] ss:$8 sps:$4 sm:$0xff]   ;;  %v925_v25 = vld [vmem:[%s1143_s1 + $0xb0] ss:$8 sps:$4 sm:$0xff]   ;;  %v351_v38 = vsub.s32 0, %v350_v37 }
   0xf   : > { %s1047_s19 = sshll.u32 %s1152_s29, 3  ;;  %v926_v26 = vld [vmem:[%s1143_s1 + $0xc4] ss:$8 sps:$4 sm:$0xff]   ;;  %v928_v27 = vld [vmem:[%s1143_s1 + $0xc0] ss:$8 sps:$4 sm:$0xff]   ;;  %v355_v40 = vsub.s32 1, %v350_v37 }
  0x10   : > { %544 = vmatpush1.bf16.msra.mxu0 %v898_v5  ;;  %852 = vmatpush1.bf16.msra.mxu1 %v898_v5  ;;  %s1056_s24 = scalar_lea.vmem %s1142_s0, %s1047_s19  ;;  %v929_v28 = vld [vmem:[%s1143_s1 + $0xd4] ss:$8 sps:$4 sm:$0xff]   ;;  %v931_v29 = vld [vmem:[%s1143_s1 + $0xd0] ss:$8 sps:$4 sm:$0xff]   ;;  %v932_v30 = vld [vmem:[%s1143_s1 + $0xe4] ss:$8 sps:$4 sm:$0xff]   ;;  %s296_s25 = scalar_lea.vmem %s1145_s3, %s1047_s19 }
  0x11   : > { %545 = vmatprep.subr.bf16.mxu0 %v899_v6  ;;  %837 = vmatprep.subr.bf16.mxu1 %v899_v6  ;;  %v940_v13 = vld [vmem:[%s1056_s24 + $0x4] ss:$8 sps:$4 sm:$0xff]   ;;  %v943_v15 = vld [vmem:[%s1056_s24 + $0x14] ss:$8 sps:$4 sm:$0xff]   ;;  %v934_v31 = vld [vmem:[%s1143_s1 + $0xe0] ss:$8 sps:$4 sm:$0xff]   ;;  %s308_s29 = scalar_lea.vmem %s1146_s4, %s1047_s19 }
  0x12   : > { %571 = vmatprep.mubr.bf16.mxu0 %v940_v13  ;;  %581 = vmatprep.mubr.bf16.mxu1 %v943_v15  ;;  %v935_v32 = vld [vmem:[%s1143_s1 + $0xf4] ss:$8 sps:$4 sm:$0xff]   ;;  %v937_v33 = vld [vmem:[%s1143_s1 + $0xf0] ss:$8 sps:$4 sm:$0xff]   ;;  %v938_v34 = vld [vmem:[%s1056_s24] ss:$8 sps:$4 sm:$0xff]  }
  0x13   : > { %v941_v35 = vld [vmem:[%s1056_s24 + $0x10] ss:$8 sps:$4 sm:$0xff]   ;;  %v347_v39 = vld [vmem:[%s1144_s2] sm:$0x3]  ;;  %v593_v45 = vld [vmem:[%s296_s25 + $0x8] sm:$0xff] }
  0x14   : > { %546 = vmatpush1.bf16.msra.mxu0 %v901_v7  ;;  %853 = vmatpush1.bf16.msra.mxu1 %v901_v7  ;;  %v592_v41 = vld [vmem:[%s296_s25] sm:$0xff]  ;;  %v594_v42 = vld [vmem:[%s296_s25 + $0x10] sm:$0xff]  ;;  %v352_v43 = vrot.slane %v347_v39, %v351_v38  ;;  %v356_v44 = vrot.slane %v347_v39, %v355_v40  ;;  %v595_v46 = vld [vmem:[%s296_s25 + $0x18] sm:$0xff]  ;;  %v598_v57 = vunpack.c.l.bf16 %v593_v45  ;;  %v599_v63 = vunpack.c.h.bf16 %v593_v45 }
  0x15   : > { %547 = vmatprep.subr.bf16.mxu0 %v902_v8  ;;  %838 = vmatprep.subr.bf16.mxu1 %v902_v8  ;;  %v596_v47 = vunpack.c.l.bf16 %v592_v41  ;;  %v600_v48 = vunpack.c.l.bf16 %v594_v42  ;;  %v597_v51 = vunpack.c.h.bf16 %v592_v41  ;;  %v601_v52 = vunpack.c.h.bf16 %v594_v42 }
  0x16   : > { %v602_v58 = vunpack.c.l.bf16 %v595_v46  ;;  %v603_v0 = vunpack.c.h.bf16 %v595_v46 }
  0x18   : > { %548 = vmatpush1.bf16.msra.mxu0 %v904_v9  ;;  %854 = vmatpush1.bf16.msra.mxu1 %v904_v9 }
  0x19   : > { %549 = vmatprep.subr.bf16.mxu0 %v905_v10  ;;  %839 = vmatprep.subr.bf16.mxu1 %v905_v10 }
  0x1c   : > { %550 = vmatpush1.bf16.msra.mxu0 %v907_v11  ;;  %855 = vmatpush1.bf16.msra.mxu1 %v907_v11 }
  0x1d   : > { %551 = vmatprep.subr.bf16.mxu0 %v908_v12  ;;  %840 = vmatprep.subr.bf16.mxu1 %v908_v12 }
  0x20   : > { %552 = vmatpush1.bf16.msra.mxu0 %v910_v14  ;;  %856 = vmatpush1.bf16.msra.mxu1 %v910_v14 }
  0x21   : > { %553 = vmatprep.subr.bf16.mxu0 %v911_v16  ;;  %841 = vmatprep.subr.bf16.mxu1 %v911_v16 }
  0x24   : > { %554 = vmatpush1.bf16.msra.mxu0 %v913_v17  ;;  %857 = vmatpush1.bf16.msra.mxu1 %v913_v17 }
  0x25   : > { %555 = vmatprep.subr.bf16.mxu0 %v914_v18  ;;  %842 = vmatprep.subr.bf16.mxu1 %v914_v18 }
  0x28   : > { %556 = vmatpush1.bf16.msra.mxu0 %v916_v19  ;;  %858 = vmatpush1.bf16.msra.mxu1 %v916_v19 }
  0x29   : > { %557 = vmatprep.subr.bf16.mxu0 %v917_v20  ;;  %843 = vmatprep.subr.bf16.mxu1 %v917_v20 }
  0x2c   : > { %558 = vmatpush1.bf16.msra.mxu0 %v919_v21  ;;  %859 = vmatpush1.bf16.msra.mxu1 %v919_v21 }
  0x2d   : > { %559 = vmatprep.subr.bf16.mxu0 %v920_v22  ;;  %844 = vmatprep.subr.bf16.mxu1 %v920_v22 }
  0x30   : > { %560 = vmatpush1.bf16.msra.mxu0 %v922_v23  ;;  %860 = vmatpush1.bf16.msra.mxu1 %v922_v23 }
  0x31   : > { %561 = vmatprep.subr.bf16.mxu0 %v923_v24  ;;  %845 = vmatprep.subr.bf16.mxu1 %v923_v24 }
  0x34   : > { %562 = vmatpush1.bf16.msra.mxu0 %v925_v25  ;;  %861 = vmatpush1.bf16.msra.mxu1 %v925_v25 }
  0x35   : > { %563 = vmatprep.subr.bf16.mxu0 %v926_v26  ;;  %846 = vmatprep.subr.bf16.mxu1 %v926_v26 }
  0x38   : > { %564 = vmatpush1.bf16.msra.mxu0 %v928_v27  ;;  %862 = vmatpush1.bf16.msra.mxu1 %v928_v27 }
  0x39   : > { %565 = vmatprep.subr.bf16.mxu0 %v929_v28  ;;  %847 = vmatprep.subr.bf16.mxu1 %v929_v28 }
  0x3c   : > { %566 = vmatpush1.bf16.msra.mxu0 %v931_v29  ;;  %863 = vmatpush1.bf16.msra.mxu1 %v931_v29 }
  0x3d   : > { %567 = vmatprep.subr.bf16.mxu0 %v932_v30  ;;  %848 = vmatprep.subr.bf16.mxu1 %v932_v30 }
  0x40   : > { %568 = vmatpush1.bf16.msra.mxu0 %v934_v31  ;;  %864 = vmatpush1.bf16.msra.mxu1 %v934_v31 }
  0x41   : > { %569 = vmatprep.subr.bf16.mxu0 %v935_v32  ;;  %849 = vmatprep.subr.bf16.mxu1 %v935_v32 }
  0x44   : > { %570 = vmatpush1.bf16.msra.mxu0 %v937_v33  ;;  %865 = vmatpush1.bf16.msra.mxu1 %v937_v33 }
  0x47   : > { %572 = vmatmul.mubr.bf16.vlgmr.msra.gmra.mrb[0].mxu0 %v938_v34  ;;  %582 = vmatmul.mubr.bf16.vlgmr.msra.gmra.mrb[0].mxu1 %v941_v35 }
 0x11a   : > { %v573_v49 = vpop.f32.mrb[0].mxu0  ;;  %v583_v50 = vpop.f32.mrb[0].mxu1 }
 0x11b   : > { %v574_v53 = vadd.f32 %v573_v49, %v352_v43  ;;  %v584_v54 = vadd.f32 %v583_v50, %v352_v43  ;;  %v575_v55 = vpop.f32.mrb[1].mxu0  ;;  %v585_v56 = vpop.f32.mrb[1].mxu1 }
 0x11c   : > { %v576_v59 = vadd.f32 %v575_v55, %v356_v44  ;;  %v586_v60 = vadd.f32 %v585_v56, %v356_v44  ;;  %v577_v61 = vpop.f32.mrb[2].mxu0  ;;  %v587_v62 = vpop.f32.mrb[2].mxu1 }
 0x11d   : > { %v604_v1 = vadd.f32 %v596_v47, %v574_v53  ;;  %v608_v2 = vadd.f32 %v600_v48, %v584_v54  ;;  %v578_v3 = vadd.f32 %v577_v61, %v352_v43  ;;  %v588_v4 = vadd.f32 %v587_v62, %v352_v43  ;;  %v579_v5 = vpop.f32.mrb[3].mxu0  ;;  %v589_v6 = vpop.f32.mrb[3].mxu1 }
 0x11e   : > { %v605_v7 = vadd.f32 %v597_v51, %v576_v59  ;;  %v609_v8 = vadd.f32 %v601_v52, %v586_v60  ;;  %v580_v9 = vadd.f32 %v579_v5, %v356_v44  ;;  %v590_v10 = vadd.f32 %v589_v6, %v356_v44 }
 0x11f   : > { %v606_v11 = vadd.f32 %v598_v57, %v578_v3  ;;  %v610_v12 = vadd.f32 %v602_v58, %v588_v4 }
 0x120   : > { %v830_v13 = vpack.c.bf16 %v605_v7, %v604_v1  ;;  %v832_v14 = vpack.c.bf16 %v609_v8, %v608_v2  ;;  %v607_v15 = vadd.f32 %v599_v63, %v580_v9  ;;  %v611_v16 = vadd.f32 %v603_v0, %v590_v10 }
 0x122   : > { %636 = vst [vmem:[%s308_s29] sm:$0xff] %v830_v13  ;;  %v831_v17 = vpack.c.bf16 %v607_v15, %v606_v11  ;;  %v833_v18 = vpack.c.bf16 %v611_v16, %v610_v12  ;;  %638 = vst [vmem:[%s308_s29 + $0x10] sm:$0xff] %v832_v14 }
 0x124   : > { %637 = vst [vmem:[%s308_s29 + $0x8] sm:$0xff] %v831_v17  ;;  %639 = vst [vmem:[%s308_s29 + $0x18] sm:$0xff] %v833_v18 }
 0x125 PF: > { %s14_s17 = sadd.s32 1, %s966_s17   ;;  %s1147_s15 = smov %s962_s16 }
 0x126   : > { %p11_p5 = scmp.ge.s32.totalorder %s14_s17, 4   ;;  %s1148_s16 = smov %s1150_s18 }
 0x128   :  { %13 = sbr.rel (!%p11_p5) target bundleno = 2 (0x2), region = 75 }

// kernel: register_vit_forward.11
= control target key start
LH: loop header
LB: loop body
LE: loop exit
PB: predicated region body
PF: predicated region fallthrough
CT: control target
= control target key end

     0   :  { %s3791_s0 = inlined_call_operand.vmem [shape: bf16[2,32,256], index: 0, kind: input, shape index: {}, may-alias: {0,1}]   ;;  %s3792_s1 = inlined_call_operand.vmem [shape: bf16[2,32,256], index: 1, kind: input, shape index: {}, may-alias: {0,1}]   ;;  %s3793_s2 = inlined_call_operand.vmem [shape: f32[1,256], index: 2, kind: input, shape index: {}]   ;;  %s3794_s3 = inlined_call_operand.vmem [shape: f32[1,256], index: 3, kind: input, shape index: {}]   ;;  %s3795_s4 = inlined_call_operand.vmem [shape: bf16[256,768], index: 4, kind: input, shape index: {}, may-alias: {4,5,6}]   ;;  %s3796_s5 = inlined_call_operand.vmem [shape: bf16[256,768], index: 5, kind: input, shape index: {}, may-alias: {4,5,6}]   ;;  %s3797_s6 = inlined_call_operand.vmem [shape: bf16[256,768], index: 6, kind: input, shape index: {}, may-alias: {4,5,6}]   ;;  %s3798_s7 = inlined_call_operand.vmem [shape: f32[1,768], index: 7, kind: input, shape index: {}, may-alias: {7,8,9}]   ;;  %s3799_s8 = inlined_call_operand.vmem [shape: f32[1,768], index: 8, kind: input, shape index: {}, may-alias: {7,8,9}]   ;;  %s3800_s9 = inlined_call_operand.vmem [shape: f32[1,768], index: 9, kind: input, shape index: {}, may-alias: {7,8,9}]   ;;  %s3801_s10 = inlined_call_operand.vmem [shape: f32[1,32], index: 10, kind: input, shape index: {}]   ;;  %s3802_s11 = inlined_call_operand.vmem [shape: bf16[2,32,256], index: 11, kind: output, shape index: {}]  }
   0x1   :  { %3808 = sst [smem:[#allocation14_spill]] %s3791_s0 }
   0x2   :  { %3809 = sst [smem:[#allocation15_spill]] %s3792_s1 }
   0x3   :  { %3810 = sst [smem:[#allocation16_spill]] %s3793_s2 }
   0x4   :  { %3811 = sst [smem:[#allocation17_spill]] %s3794_s3 }
   0x5   :  { %3812 = sst [smem:[#allocation18_spill]] %s3798_s7 }
   0x6   :  { %3813 = sst [smem:[#allocation19_spill]] %s3799_s8 }
   0x7   :  { %3814 = sst [smem:[#allocation20_spill]] %s3800_s9 }
   0x8   :  { %3815 = sst [smem:[#allocation21_spill]] %s3801_s10 }
   0x9   :  { %3816 = sst [smem:[#allocation22_spill]] %s3802_s11 }
   0xa   :  { %s3129_s17 = smov 0   ;;  %s3131_s18 = smov 0  }
   0xb   :  { %s3133_s19 = smov 0   ;;  %s3135_s20 = smov 0  }
   0xc   :  { %s3137_s21 = smov 0   ;;  %s3139_s22 = smov 0  }
   0xd   :  { %s3141_s23 = smov 0   ;;  %s3143_s24 = smov 0  }
   0xe   :  { %s3145_s25 = smov 0   ;;  %s3147_s26 = smov 0  }
   0xf   :  { %s3149_s27 = smov 0   ;;  %s3151_s28 = smov 0  }
  0x10   :  { %s3153_s29 = smov 0  }
  0x11 LB: > { %3817 = sst [smem:[#allocation10_spill]] %s3032_s21  ;;  %s43_s12 = sadd.s32 1, %s3056_s27  ;;  %s3064_s29 = sphi %s3153_s29, %s21_s29   ;;  %s3060_s28 = sphi %s3151_s28, %s3853_s28   ;;  %s3056_s27 = sphi %s3149_s27, %s3852_s27   ;;  %s3052_s26 = sphi %s3147_s26, %s3851_s26   ;;  %s3048_s25 = sphi %s3145_s25, %s3850_s25   ;;  %s3044_s24 = sphi %s3143_s24, %s3849_s24   ;;  %s3040_s23 = sphi %s3141_s23, %s3848_s23   ;;  %s3036_s22 = sphi %s3139_s22, %s3847_s22   ;;  %s3032_s21 = sphi %s3137_s21, %s3846_s21   ;;  %s3028_s20 = sphi %s3135_s20, %s3845_s20   ;;  %s3024_s19 = sphi %s3133_s19, %s3844_s19   ;;  %s3020_s18 = sphi %s3131_s18, %s3843_s18   ;;  %s3016_s17 = sphi %s3129_s17, %s3842_s17  }
  0x12   : > { %3818 = sst [smem:[#allocation11_spill]] %s3040_s23  ;;  %p45_p0 = scmp.ge.s32.totalorder %s43_s12, 2 }
  0x13   : > { %3819 = sst [smem:[#allocation12_spill]] %s3048_s25  ;;  %s47_s13 = sadd.s32 1, %s3060_s28 }
  0x14   : > { %s152_s14 = sadd.s32 1, %s3044_s24  ;;  %p159_p1 = scmp.ne.s32.totalorder %s3044_s24, %s3040_s23 }
  0x15   : > { %s3855_s12 = smov (%p45_p0, %s43_s12), 0  ;;  %s3857_s13 = smov (!%p45_p0, %s47_s13), %s3060_s28 }
  0x16   : > { %s149_s15 = ssub.s32 %s3056_s27, %s3855_s12  ;;  %p160_p2 = scmp.eq.s32.totalorder %s3064_s29, 0 }
  0x17   : > { %p49_p3 = scmp.ge.s32.totalorder %s3857_s13, 2  ;;  %p150_p4 = scmp.eq.s32.totalorder %s149_s15, 0 }
  0x18   : > { %p3208_p5 = por %p160_p2, %p159_p1  ;;  %s175_s30 = sadd.s32 2, %s3056_s27 }
  0x19   : > { %s3859_s13 = smov (%p49_p3, %s3857_s13), 0  ;;  %s176_s10 = sadd.s32 2, %s3855_s12 }
  0x1a   : > { %s3216_s11 = scalar_select %p150_p4, %s3044_s24, %s152_s14  }
  0x1b   : > { %s180_s9 = sadd.s32 1, %s3036_s22  ;;  %s177_s7 = ssub.s32 %s175_s30, %s176_s10 }
  0x1c   : > { %3821 = sst [smem:[#allocation13_spill]] %s3216_s11  ;;  %p187_p6 = scmp.ne.s32.totalorder %s3036_s22, %s3032_s21 }
  0x1d   : > { %p178_p7 = scmp.eq.s32.totalorder %s177_s7, 0  ;;  %s203_s8 = sadd.s32 4, %s3056_s27 }
  0x1e   : > { %p3225_p8 = por %p187_p6, %p160_p2  ;;  %s204_s3 = sadd.s32 4, %s3855_s12 }
  0x1f   : > { %s3231_s14 = scalar_select %p178_p7, %s3036_s22, %s180_s9  }
  0x20   : > { %s205_s11 = ssub.s32 %s203_s8, %s204_s3  ;;  %s208_s2 = sadd.s32 1, %s3028_s20 }
  0x21   : > { %p206_p9 = scmp.eq.s32.totalorder %s205_s11, 0  ;;  %p215_p10 = scmp.ne.s32.totalorder %s3028_s20, %s3024_s19 }
  0x22   : > { %s339_s10 = ssub.s32 %s3060_s28, %s3859_s13  ;;  %s346_s30 = sadd.s32 1, %s3020_s18 }
  0x23   : > { %s3240_s23 = scalar_select %p206_p9, %s3028_s20, %s208_s2  }
  0x24   : > { %p3244_p11 = por %p215_p10, %p160_p2  ;;  %s343_s21 = sor.u32 %s339_s10, %s149_s15 }
  0x25   : > { %p344_p12 = scmp.eq.s32.totalorder %s343_s21, 0  ;;  %p356_p13 = scmp.ne.s32.totalorder %s3020_s18, %s3016_s17 }
  0x26   : > { %s3824_s0 = sadd.s32 4294967295, %s3064_s29   ;;  %p2497_p3 = scmp.ge.s32.totalorder %s3064_s29, 4 }
  0x27   : > { %p357_p0 = scmp.eq.s32.totalorder %s3824_s0, 3 }
  0x28   : > { %s3253_s9 = scalar_select %p344_p12, %s3020_s18, %s346_s30  }
  0x29   : > { %p3255_p1 = por %p357_p0, %p356_p13  ;;  %391 = sbr.rel (%p2497_p3) target bundleno = 123 (0x7b), region = 28 }
  0x30   : > { %422 = sbr.rel (!%p3208_p5) target bundleno = 73 (0x49), region = 40  ;;  %s424_s2 = sand.u32 (%p3208_p5), 1, %s3044_s24  }
  0x31   : > { %s2499_s8 = sshll.u32 (%p3208_p5), %s3056_s27, 2  ;;  %s2498_s11 = sshll.u32 (%p3208_p5), %s424_s2, 7 }
  0x32   : > { %s3267_s0 = scalar_lea.vmem (%p3208_p5), %s3795_s4, %s2499_s8  ;;  %s3271_s16 = scalar_lea.vmem (%p3208_p5), [#allocation6], %s2498_s11 }
  0x33   : > { %v444_v0 = vld [vmem:[%s3267_s0] sm:$0xf] (%p3208_p5)  ;;  %v446_v1 = vld [vmem:[%s3267_s0 + $0x18] sm:$0xf] (%p3208_p5)  ;;  %v448_v2 = vld [vmem:[%s3267_s0 + $0x30] sm:$0xf] (%p3208_p5) }
  0x34   : > { %445 = vst [vmem:[%s3271_s16] sm:$0xf] (%p3208_p5), %v444_v0  ;;  %447 = vst [vmem:[%s3271_s16 + $0x4] sm:$0xf] (%p3208_p5), %v446_v1  ;;  %v450_v3 = vld [vmem:[%s3267_s0 + $0x48] sm:$0xf] (%p3208_p5) }
  0x35   : > { %v452_v4 = vld [vmem:[%s3267_s0 + $0x60] sm:$0xf] (%p3208_p5)  ;;  %449 = vst [vmem:[%s3271_s16 + $0x8] sm:$0xf] (%p3208_p5), %v448_v2  ;;  %451 = vst [vmem:[%s3271_s16 + $0xc] sm:$0xf] (%p3208_p5), %v450_v3 }
  0x36   : > { %453 = vst [vmem:[%s3271_s16 + $0x10] sm:$0xf] (%p3208_p5), %v452_v4  ;;  %v454_v5 = vld [vmem:[%s3267_s0 + $0x78] sm:$0xf] (%p3208_p5)  ;;  %v456_v6 = vld [vmem:[%s3267_s0 + $0x90] sm:$0xf] (%p3208_p5) }
  0x37   : > { %v458_v7 = vld [vmem:[%s3267_s0 + $0xa8] sm:$0xf]  ;;  %455 = vst [vmem:[%s3271_s16 + $0x14] sm:$0xf] %v454_v5  ;;  %457 = vst [vmem:[%s3271_s16 + $0x18] sm:$0xf] %v456_v6 }
  0x38   : > { %459 = vst [vmem:[%s3271_s16 + $0x1c] sm:$0xf] %v458_v7  ;;  %v460_v8 = vld [vmem:[%s3267_s0 + $0xc0] sm:$0xf]  ;;  %v462_v9 = vld [vmem:[%s3267_s0 + $0xd8] sm:$0xf] }
  0x39   : > { %v464_v10 = vld [vmem:[%s3267_s0 + $0xf0] sm:$0xf]  ;;  %461 = vst [vmem:[%s3271_s16 + $0x20] sm:$0xf] %v460_v8  ;;  %463 = vst [vmem:[%s3271_s16 + $0x24] sm:$0xf] %v462_v9 }
  0x3a   : > { %465 = vst [vmem:[%s3271_s16 + $0x28] sm:$0xf] %v464_v10  ;;  %v466_v11 = vld [vmem:[%s3267_s0 + $0x108] sm:$0xf]  ;;  %v468_v12 = vld [vmem:[%s3267_s0 + $0x120] sm:$0xf] }
  0x3b   : > { %v470_v13 = vld [vmem:[%s3267_s0 + $0x138] sm:$0xf]  ;;  %467 = vst [vmem:[%s3271_s16 + $0x2c] sm:$0xf] %v466_v11  ;;  %469 = vst [vmem:[%s3271_s16 + $0x30] sm:$0xf] %v468_v12 }
  0x3c   : > { %471 = vst [vmem:[%s3271_s16 + $0x34] sm:$0xf] %v470_v13  ;;  %v472_v14 = vld [vmem:[%s3267_s0 + $0x150] sm:$0xf]  ;;  %v474_v15 = vld [vmem:[%s3267_s0 + $0x168] sm:$0xf] }
  0x3d   : > { %v476_v16 = vld [vmem:[%s3267_s0 + $0x180] sm:$0xf]  ;;  %473 = vst [vmem:[%s3271_s16 + $0x38] sm:$0xf] %v472_v14  ;;  %475 = vst [vmem:[%s3271_s16 + $0x3c] sm:$0xf] %v474_v15 }
  0x3e   : > { %477 = vst [vmem:[%s3271_s16 + $0x40] sm:$0xf] %v476_v16  ;;  %v478_v17 = vld [vmem:[%s3267_s0 + $0x198] sm:$0xf]  ;;  %v480_v18 = vld [vmem:[%s3267_s0 + $0x1b0] sm:$0xf] }
  0x3f   : > { %v482_v19 = vld [vmem:[%s3267_s0 + $0x1c8] sm:$0xf]  ;;  %479 = vst [vmem:[%s3271_s16 + $0x44] sm:$0xf] %v478_v17  ;;  %481 = vst [vmem:[%s3271_s16 + $0x48] sm:$0xf] %v480_v18 }
  0x40   : > { %483 = vst [vmem:[%s3271_s16 + $0x4c] sm:$0xf] %v482_v19  ;;  %v484_v20 = vld [vmem:[%s3267_s0 + $0x1e0] sm:$0xf]  ;;  %v486_v21 = vld [vmem:[%s3267_s0 + $0x1f8] sm:$0xf] }
  0x41   : > { %v488_v22 = vld [vmem:[%s3267_s0 + $0x210] sm:$0xf]  ;;  %485 = vst [vmem:[%s3271_s16 + $0x50] sm:$0xf] %v484_v20  ;;  %487 = vst [vmem:[%s3271_s16 + $0x54] sm:$0xf] %v486_v21 }
  0x42   : > { %489 = vst [vmem:[%s3271_s16 + $0x58] sm:$0xf] %v488_v22  ;;  %v490_v23 = vld [vmem:[%s3267_s0 + $0x228] sm:$0xf]  ;;  %v492_v24 = vld [vmem:[%s3267_s0 + $0x240] sm:$0xf] }
  0x43   : > { %v494_v25 = vld [vmem:[%s3267_s0 + $0x258] sm:$0xf]  ;;  %491 = vst [vmem:[%s3271_s16 + $0x5c] sm:$0xf] %v490_v23  ;;  %493 = vst [vmem:[%s3271_s16 + $0x60] sm:$0xf] %v492_v24 }
  0x44   : > { %495 = vst [vmem:[%s3271_s16 + $0x64] sm:$0xf] %v494_v25  ;;  %v496_v26 = vld [vmem:[%s3267_s0 + $0x270] sm:$0xf]  ;;  %v498_v27 = vld [vmem:[%s3267_s0 + $0x288] sm:$0xf] }
  0x45   : > { %v500_v28 = vld [vmem:[%s3267_s0 + $0x2a0] sm:$0xf]  ;;  %497 = vst [vmem:[%s3271_s16 + $0x68] sm:$0xf] %v496_v26  ;;  %499 = vst [vmem:[%s3271_s16 + $0x6c] sm:$0xf] %v498_v27 }
  0x46   : > { %501 = vst [vmem:[%s3271_s16 + $0x70] sm:$0xf] %v500_v28  ;;  %v502_v29 = vld [vmem:[%s3267_s0 + $0x2b8] sm:$0xf]  ;;  %v504_v30 = vld [vmem:[%s3267_s0 + $0x2d0] sm:$0xf] }
  0x47   : > { %v506_v31 = vld [vmem:[%s3267_s0 + $0x2e8] sm:$0xf]  ;;  %503 = vst [vmem:[%s3271_s16 + $0x74] sm:$0xf] %v502_v29  ;;  %505 = vst [vmem:[%s3271_s16 + $0x78] sm:$0xf] %v504_v30 }
  0x48   : > { %507 = vst [vmem:[%s3271_s16 + $0x7c] sm:$0xf] %v506_v31 }
  0x49 PF: > { %594 = sbr.rel (!%p3225_p8) target bundleno = 98 (0x62), region = 81  ;;  %s596_s10 = sand.u32 (%p3225_p8), 1, %s3036_s22  }
  0x4a   : > { %s2501_s30 = sshll.u32 (%p3225_p8), %s3056_s27, 2  ;;  %s2500_s2 = sshll.u32 (%p3225_p8), %s596_s10, 7 }
  0x4b   : > { %s3342_s21 = scalar_lea.vmem (%p3225_p8), %s3796_s5, %s2501_s30  ;;  %s3346_s25 = scalar_lea.vmem (%p3225_p8), [#allocation7], %s2500_s2 }
  0x4c   : > { %v2502_v32 = vld [vmem:[%s3342_s21 + $0x8] sm:$0xf] (%p3225_p8)  ;;  %v2503_v33 = vld [vmem:[%s3342_s21 + $0x20] sm:$0xf] (%p3225_p8)  ;;  %v2504_v34 = vld [vmem:[%s3342_s21 + $0x38] sm:$0xf] (%p3225_p8) }
  0x4d   : > { %618 = vst [vmem:[%s3346_s25] sm:$0xf] (%p3225_p8), %v2502_v32  ;;  %620 = vst [vmem:[%s3346_s25 + $0x4] sm:$0xf] (%p3225_p8), %v2503_v33  ;;  %v2505_v35 = vld [vmem:[%s3342_s21 + $0x50] sm:$0xf] (%p3225_p8) }
  0x4e   : > { %v2506_v36 = vld [vmem:[%s3342_s21 + $0x68] sm:$0xf] (%p3225_p8)  ;;  %622 = vst [vmem:[%s3346_s25 + $0x8] sm:$0xf] (%p3225_p8), %v2504_v34  ;;  %624 = vst [vmem:[%s3346_s25 + $0xc] sm:$0xf] (%p3225_p8), %v2505_v35 }
  0x4f   : > { %626 = vst [vmem:[%s3346_s25 + $0x10] sm:$0xf] (%p3225_p8), %v2506_v36  ;;  %v2507_v37 = vld [vmem:[%s3342_s21 + $0x80] sm:$0xf] (%p3225_p8)  ;;  %v2508_v38 = vld [vmem:[%s3342_s21 + $0x98] sm:$0xf] (%p3225_p8) }
  0x50   : > { %v2509_v39 = vld [vmem:[%s3342_s21 + $0xb0] sm:$0xf]  ;;  %628 = vst [vmem:[%s3346_s25 + $0x14] sm:$0xf] %v2507_v37  ;;  %630 = vst [vmem:[%s3346_s25 + $0x18] sm:$0xf] %v2508_v38 }
  0x51   : > { %632 = vst [vmem:[%s3346_s25 + $0x1c] sm:$0xf] %v2509_v39  ;;  %v2510_v40 = vld [vmem:[%s3342_s21 + $0xc8] sm:$0xf]  ;;  %v2511_v41 = vld [vmem:[%s3342_s21 + $0xe0] sm:$0xf] }
  0x52   : > { %v2512_v42 = vld [vmem:[%s3342_s21 + $0xf8] sm:$0xf]  ;;  %634 = vst [vmem:[%s3346_s25 + $0x20] sm:$0xf] %v2510_v40  ;;  %636 = vst [vmem:[%s3346_s25 + $0x24] sm:$0xf] %v2511_v41 }
  0x53   : > { %638 = vst [vmem:[%s3346_s25 + $0x28] sm:$0xf] %v2512_v42  ;;  %v2513_v43 = vld [vmem:[%s3342_s21 + $0x110] sm:$0xf]  ;;  %v2514_v44 = vld [vmem:[%s3342_s21 + $0x128] sm:$0xf] }
  0x54   : > { %v2515_v45 = vld [vmem:[%s3342_s21 + $0x140] sm:$0xf]  ;;  %640 = vst [vmem:[%s3346_s25 + $0x2c] sm:$0xf] %v2513_v43  ;;  %642 = vst [vmem:[%s3346_s25 + $0x30] sm:$0xf] %v2514_v44 }
  0x55   : > { %644 = vst [vmem:[%s3346_s25 + $0x34] sm:$0xf] %v2515_v45  ;;  %v2516_v46 = vld [vmem:[%s3342_s21 + $0x158] sm:$0xf]  ;;  %v2517_v47 = vld [vmem:[%s3342_s21 + $0x170] sm:$0xf] }
  0x56   : > { %v2518_v48 = vld [vmem:[%s3342_s21 + $0x188] sm:$0xf]  ;;  %646 = vst [vmem:[%s3346_s25 + $0x38] sm:$0xf] %v2516_v46  ;;  %648 = vst [vmem:[%s3346_s25 + $0x3c] sm:$0xf] %v2517_v47 }
  0x57   : > { %650 = vst [vmem:[%s3346_s25 + $0x40] sm:$0xf] %v2518_v48  ;;  %v2519_v49 = vld [vmem:[%s3342_s21 + $0x1a0] sm:$0xf]  ;;  %v2520_v50 = vld [vmem:[%s3342_s21 + $0x1b8] sm:$0xf] }
  0x58   : > { %v2521_v51 = vld [vmem:[%s3342_s21 + $0x1d0] sm:$0xf]  ;;  %652 = vst [vmem:[%s3346_s25 + $0x44] sm:$0xf] %v2519_v49  ;;  %654 = vst [vmem:[%s3346_s25 + $0x48] sm:$0xf] %v2520_v50 }
  0x59   : > { %656 = vst [vmem:[%s3346_s25 + $0x4c] sm:$0xf] %v2521_v51  ;;  %v2522_v52 = vld [vmem:[%s3342_s21 + $0x1e8] sm:$0xf]  ;;  %v2523_v53 = vld [vmem:[%s3342_s21 + $0x200] sm:$0xf] }
  0x5a   : > { %v2524_v54 = vld [vmem:[%s3342_s21 + $0x218] sm:$0xf]  ;;  %658 = vst [vmem:[%s3346_s25 + $0x50] sm:$0xf] %v2522_v52  ;;  %660 = vst [vmem:[%s3346_s25 + $0x54] sm:$0xf] %v2523_v53 }
  0x5b   : > { %662 = vst [vmem:[%s3346_s25 + $0x58] sm:$0xf] %v2524_v54  ;;  %v2525_v55 = vld [vmem:[%s3342_s21 + $0x230] sm:$0xf]  ;;  %v2526_v56 = vld [vmem:[%s3342_s21 + $0x248] sm:$0xf] }
  0x5c   : > { %v2527_v57 = vld [vmem:[%s3342_s21 + $0x260] sm:$0xf]  ;;  %664 = vst [vmem:[%s3346_s25 + $0x5c] sm:$0xf] %v2525_v55  ;;  %666 = vst [vmem:[%s3346_s25 + $0x60] sm:$0xf] %v2526_v56 }
  0x5d   : > { %668 = vst [vmem:[%s3346_s25 + $0x64] sm:$0xf] %v2527_v57  ;;  %v2528_v58 = vld [vmem:[%s3342_s21 + $0x278] sm:$0xf]  ;;  %v2529_v59 = vld [vmem:[%s3342_s21 + $0x290] sm:$0xf] }
  0x5e   : > { %v2530_v60 = vld [vmem:[%s3342_s21 + $0x2a8] sm:$0xf]  ;;  %670 = vst [vmem:[%s3346_s25 + $0x68] sm:$0xf] %v2528_v58  ;;  %672 = vst [vmem:[%s3346_s25 + $0x6c] sm:$0xf] %v2529_v59 }
  0x5f   : > { %674 = vst [vmem:[%s3346_s25 + $0x70] sm:$0xf] %v2530_v60  ;;  %v2531_v61 = vld [vmem:[%s3342_s21 + $0x2c0] sm:$0xf]  ;;  %v2532_v62 = vld [vmem:[%s3342_s21 + $0x2d8] sm:$0xf] }
  0x60   : > { %v2533_v63 = vld [vmem:[%s3342_s21 + $0x2f0] sm:$0xf]  ;;  %676 = vst [vmem:[%s3346_s25 + $0x74] sm:$0xf] %v2531_v61  ;;  %678 = vst [vmem:[%s3346_s25 + $0x78] sm:$0xf] %v2532_v62 }
  0x61   : > { %680 = vst [vmem:[%s3346_s25 + $0x7c] sm:$0xf] %v2533_v63 }
  0x62 PF: > { %767 = sbr.rel (!%p3244_p11) target bundleno = 123 (0x7b), region = 122  ;;  %s769_s15 = sand.u32 (%p3244_p11), 1, %s3028_s20  }
  0x63   : > { %s2535_s0 = sshll.u32 (%p3244_p11), %s3056_s27, 2  ;;  %s2534_s16 = sshll.u32 (%p3244_p11), %s769_s15, 7 }
  0x64   : > { %s3417_s2 = scalar_lea.vmem (%p3244_p11), %s3797_s6, %s2535_s0  ;;  %s3421_s7 = scalar_lea.vmem (%p3244_p11), [#allocation8], %s2534_s16 }
  0x65   : > { %v2536_v0 = vld [vmem:[%s3417_s2 + $0x10] sm:$0xf] (%p3244_p11)  ;;  %v2537_v1 = vld [vmem:[%s3417_s2 + $0x28] sm:$0xf] (%p3244_p11)  ;;  %v2538_v2 = vld [vmem:[%s3417_s2 + $0x40] sm:$0xf] (%p3244_p11) }
  0x66   : > { %791 = vst [vmem:[%s3421_s7] sm:$0xf] (%p3244_p11), %v2536_v0  ;;  %793 = vst [vmem:[%s3421_s7 + $0x4] sm:$0xf] (%p3244_p11), %v2537_v1  ;;  %v2539_v3 = vld [vmem:[%s3417_s2 + $0x58] sm:$0xf] (%p3244_p11) }
  0x67   : > { %v2540_v4 = vld [vmem:[%s3417_s2 + $0x70] sm:$0xf] (%p3244_p11)  ;;  %795 = vst [vmem:[%s3421_s7 + $0x8] sm:$0xf] (%p3244_p11), %v2538_v2  ;;  %797 = vst [vmem:[%s3421_s7 + $0xc] sm:$0xf] (%p3244_p11), %v2539_v3 }
  0x68   : > { %799 = vst [vmem:[%s3421_s7 + $0x10] sm:$0xf] (%p3244_p11), %v2540_v4  ;;  %v2541_v5 = vld [vmem:[%s3417_s2 + $0x88] sm:$0xf] (%p3244_p11)  ;;  %v2542_v6 = vld [vmem:[%s3417_s2 + $0xa0] sm:$0xf] (%p3244_p11) }
  0x69   : > { %v2543_v7 = vld [vmem:[%s3417_s2 + $0xb8] sm:$0xf]  ;;  %801 = vst [vmem:[%s3421_s7 + $0x14] sm:$0xf] %v2541_v5  ;;  %803 = vst [vmem:[%s3421_s7 + $0x18] sm:$0xf] %v2542_v6 }
  0x6a   : > { %805 = vst [vmem:[%s3421_s7 + $0x1c] sm:$0xf] %v2543_v7  ;;  %v2544_v8 = vld [vmem:[%s3417_s2 + $0xd0] sm:$0xf]  ;;  %v2545_v9 = vld [vmem:[%s3417_s2 + $0xe8] sm:$0xf] }
  0x6b   : > { %v2546_v10 = vld [vmem:[%s3417_s2 + $0x100] sm:$0xf]  ;;  %807 = vst [vmem:[%s3421_s7 + $0x20] sm:$0xf] %v2544_v8  ;;  %809 = vst [vmem:[%s3421_s7 + $0x24] sm:$0xf] %v2545_v9 }
  0x6c   : > { %811 = vst [vmem:[%s3421_s7 + $0x28] sm:$0xf] %v2546_v10  ;;  %v2547_v11 = vld [vmem:[%s3417_s2 + $0x118] sm:$0xf]  ;;  %v2548_v12 = vld [vmem:[%s3417_s2 + $0x130] sm:$0xf] }
  0x6d   : > { %v2549_v13 = vld [vmem:[%s3417_s2 + $0x148] sm:$0xf]  ;;  %813 = vst [vmem:[%s3421_s7 + $0x2c] sm:$0xf] %v2547_v11  ;;  %815 = vst [vmem:[%s3421_s7 + $0x30] sm:$0xf] %v2548_v12 }
  0x6e   : > { %817 = vst [vmem:[%s3421_s7 + $0x34] sm:$0xf] %v2549_v13  ;;  %v2550_v14 = vld [vmem:[%s3417_s2 + $0x160] sm:$0xf]  ;;  %v2551_v15 = vld [vmem:[%s3417_s2 + $0x178] sm:$0xf] }
  0x6f   : > { %v2552_v16 = vld [vmem:[%s3417_s2 + $0x190] sm:$0xf]  ;;  %819 = vst [vmem:[%s3421_s7 + $0x38] sm:$0xf] %v2550_v14  ;;  %821 = vst [vmem:[%s3421_s7 + $0x3c] sm:$0xf] %v2551_v15 }
  0x70   : > { %823 = vst [vmem:[%s3421_s7 + $0x40] sm:$0xf] %v2552_v16  ;;  %v2553_v17 = vld [vmem:[%s3417_s2 + $0x1a8] sm:$0xf]  ;;  %v2554_v18 = vld [vmem:[%s3417_s2 + $0x1c0] sm:$0xf] }
  0x71   : > { %v2555_v19 = vld [vmem:[%s3417_s2 + $0x1d8] sm:$0xf]  ;;  %825 = vst [vmem:[%s3421_s7 + $0x44] sm:$0xf] %v2553_v17  ;;  %827 = vst [vmem:[%s3421_s7 + $0x48] sm:$0xf] %v2554_v18 }
  0x72   : > { %829 = vst [vmem:[%s3421_s7 + $0x4c] sm:$0xf] %v2555_v19  ;;  %v2556_v20 = vld [vmem:[%s3417_s2 + $0x1f0] sm:$0xf]  ;;  %v2557_v21 = vld [vmem:[%s3417_s2 + $0x208] sm:$0xf] }
  0x73   : > { %v2558_v22 = vld [vmem:[%s3417_s2 + $0x220] sm:$0xf]  ;;  %831 = vst [vmem:[%s3421_s7 + $0x50] sm:$0xf] %v2556_v20  ;;  %833 = vst [vmem:[%s3421_s7 + $0x54] sm:$0xf] %v2557_v21 }
  0x74   : > { %835 = vst [vmem:[%s3421_s7 + $0x58] sm:$0xf] %v2558_v22  ;;  %v2559_v23 = vld [vmem:[%s3417_s2 + $0x238] sm:$0xf]  ;;  %v2560_v24 = vld [vmem:[%s3417_s2 + $0x250] sm:$0xf] }
  0x75   : > { %v2561_v25 = vld [vmem:[%s3417_s2 + $0x268] sm:$0xf]  ;;  %837 = vst [vmem:[%s3421_s7 + $0x5c] sm:$0xf] %v2559_v23  ;;  %839 = vst [vmem:[%s3421_s7 + $0x60] sm:$0xf] %v2560_v24 }
  0x76   : > { %841 = vst [vmem:[%s3421_s7 + $0x64] sm:$0xf] %v2561_v25  ;;  %v2562_v26 = vld [vmem:[%s3417_s2 + $0x280] sm:$0xf]  ;;  %v2563_v27 = vld [vmem:[%s3417_s2 + $0x298] sm:$0xf] }
  0x77   : > { %v2564_v28 = vld [vmem:[%s3417_s2 + $0x2b0] sm:$0xf]  ;;  %843 = vst [vmem:[%s3421_s7 + $0x68] sm:$0xf] %v2562_v26  ;;  %845 = vst [vmem:[%s3421_s7 + $0x6c] sm:$0xf] %v2563_v27 }
  0x78   : > { %847 = vst [vmem:[%s3421_s7 + $0x70] sm:$0xf] %v2564_v28  ;;  %v2565_v29 = vld [vmem:[%s3417_s2 + $0x2c8] sm:$0xf]  ;;  %v2566_v30 = vld [vmem:[%s3417_s2 + $0x2e0] sm:$0xf] }
  0x79   : > { %v2567_v31 = vld [vmem:[%s3417_s2 + $0x2f8] sm:$0xf]  ;;  %849 = vst [vmem:[%s3421_s7 + $0x74] sm:$0xf] %v2565_v29  ;;  %851 = vst [vmem:[%s3421_s7 + $0x78] sm:$0xf] %v2566_v30 }
  0x7a   : > { %853 = vst [vmem:[%s3421_s7 + $0x7c] sm:$0xf] %v2567_v31 }
  0x7b PF: > { %p2568_p2 = scmp.ge.s32.totalorder %s3064_s29, 1  ;;  %p961_p4 = scmp.lt.s32.totalorder %s3064_s29, 5 }
  0x7d   : > { %p962_p5 = pnand %p2568_p2, %p961_p4 }
  0x7e   : > { %p1063_p6 = scmp.lt.s32.totalorder (!%p962_p5), %s3052_s26, 1  ;;  %s3826_s1 = sld [smem:[#allocation15_spill]] (!%p962_p5)  ;;  %vm1417_vm0 = vcmask (!%p962_p5), 7168   ;;  %vm1985_vm1 = vcmask (!%p962_p5), 261120  }
  0x7f   : > { %965 = sbr.rel (%p962_p5) target bundleno = 1521 (0x5f1), region = 175  ;;  %s3827_s10 = sld [smem:[#allocation14_spill]] (!%p962_p5) }
  0x80   : > { %s3828_s2 = sld [smem:[#allocation10_spill]] (!%p962_p5)  ;;  %s3829_s21 = sld [smem:[#allocation11_spill]] (!%p962_p5) }
  0x81   : > { %s982_s16 = sand.u32 (!%p962_p5), 1, %s3024_s19  }
  0x86   : > { %s1064_s8 = scalar_select %p1063_p6, %s3052_s26, 1 }
  0x87   : > { %s975_s7 = sand.u32 1, %s3828_s2   ;;  %s968_s25 = sand.u32 1, %s3829_s21  }
  0x88   : > { %s2640_s11 = sshll.u32 %s1064_s8, 5  ;;  %s2570_s8 = sshll.u32 %s975_s7, 7 }
  0x89   : > { %s1082_s15 = scalar_lea.vmem %s3826_s1, %s2640_s11  ;;  %s1071_s30 = scalar_lea.vmem %s3827_s10, %s2640_s11 }
  0x8a   : > { %v1430_v32 = vld [vmem:[%s1082_s15] sm:$0xff]  ;;  %v3495_v33 = vld [vmem:[%s1082_s15 + $0x8] sm:$0xff]  ;;  %v3499_v42 = vld [vmem:[%s1082_s15 + $0x10] sm:$0xff]  ;;  %s3524_s11 = scalar_lea.vmem [#allocation7], %s2570_s8  ;;  %s2571_s10 = sshll.u32 %s982_s16, 7 }
  0x8b   : > { %v1108_v34 = vld [vmem:[%s1071_s30] sm:$0xff]  ;;  %v1434_v35 = vunpack.c.l.bf16 %v1430_v32  ;;  %v1435_v36 = vunpack.c.h.bf16 %v1430_v32  ;;  %v1436_v37 = vunpack.c.l.bf16 %v3495_v33  ;;  %v1437_v38 = vunpack.c.h.bf16 %v3495_v33  ;;  %v1109_v39 = vld [vmem:[%s1071_s30 + $0x8] sm:$0xff]  ;;  %v3501_v46 = vld [vmem:[%s1082_s15 + $0x18] sm:$0xff]  ;;  %s2569_s15 = sshll.u32 %s968_s25, 7  ;;  %s3830_s7 = sld [smem:[#allocation16_spill]] }
  0x8c   : > { %v1112_v40 = vunpack.c.l.bf16 %v1108_v34  ;;  %v1113_v41 = vunpack.c.h.bf16 %v1108_v34  ;;  %v1114_v44 = vunpack.c.l.bf16 %v1109_v39  ;;  %v1115_v45 = vunpack.c.h.bf16 %v1109_v39  ;;  %v3505_v52 = vld [vmem:[%s1071_s30 + $0x10] sm:$0xff]  ;;  %v3509_v55 = vld [vmem:[%s1071_s30 + $0x18] sm:$0xff]  ;;  %v2874_v0 = vld [vmem:[%s3524_s11 + $0x40] sm:$0xff]   ;;  %s3601_s0 = scalar_lea.vmem [#allocation6], %s2569_s15  ;;  %s3634_s30 = scalar_lea.vmem [#allocation8], %s2571_s10 }
  0x8d   : > { %v1442_v43 = vadd.f32 %v1435_v36, %v1434_v35  ;;  %v1445_v48 = vadd.f32 %v1437_v38, %v1436_v37  ;;  %v1438_v49 = vunpack.c.l.bf16 %v3499_v42  ;;  %v1439_v50 = vunpack.c.h.bf16 %v3499_v42  ;;  %v2875_v1 = vld [vmem:[%s3524_s11] sm:$0xff]   ;;  %2685 = vmatprep.subr.bf16.mxu1 %v2874_v0  ;;  %v2882_v0 = vld [vmem:[%s3524_s11 + $0x50] sm:$0xff]   ;;  %s3831_s15 = sld [smem:[#allocation17_spill]]  ;;  %s3832_s10 = sld [smem:[#allocation12_spill]] }
  0x8e   : > { %v1120_v47 = vadd.f32 %v1113_v41, %v1112_v40  ;;  %v1123_v51 = vadd.f32 %v1115_v45, %v1114_v44  ;;  %v1440_v53 = vunpack.c.l.bf16 %v3501_v46  ;;  %v1441_v54 = vunpack.c.h.bf16 %v3501_v46  ;;  %2686 = vmatpush3.bf16.msra.mxu1 %v2875_v1  ;;  %v2883_v1 = vld [vmem:[%s3524_s11 + $0x10] sm:$0xff]   ;;  %s3834_s16 = sld [smem:[#allocation18_spill]]  ;;  %s3835_s8 = sld [smem:[#allocation20_spill]] }
  0x8f   : > { %1443 = vadd.xlane.f32.xlu0 %v1442_v43  ;;  %v1448_v56 = vadd.f32 %v1439_v50, %v1438_v49  ;;  %v1116_v57 = vunpack.c.l.bf16 %v3505_v52  ;;  %v1117_v58 = vunpack.c.h.bf16 %v3505_v52  ;;  %v1118_v60 = vunpack.c.l.bf16 %v3509_v55 }
  0x90   : > { %1121 = vadd.xlane.f32.xlu1 %v1120_v47  ;;  %v1451_v59 = vadd.f32 %v1441_v54, %v1440_v53  ;;  %v1119_v61 = vunpack.c.h.bf16 %v3509_v55 }
  0x91   : > { %v1126_v62 = vadd.f32 %v1117_v58, %v1116_v57 }
  0x92   : > { %v1129_v63 = vadd.f32 %v1119_v61, %v1118_v60 }
  0x93   : > { %1446 = vadd.xlane.f32.xlu0 %v1445_v48  ;;  %s1089_s19 = sadd.s32 2, %s3832_s10  ;;  %p1086_p8 = scmp.lt.s32.totalorder %s3832_s10, 5 }
  0x94   : > { %1124 = vadd.xlane.f32.xlu1 %v1123_v51  ;;  %p1090_p7 = scmp.lt.s32.totalorder %s1089_s19, 5 }
  0x95   : > { %s1087_s25 = scalar_select %p1086_p8, %s3832_s10, 5 }
  0x96   : > { %s3861_s19 = smov (!%p1090_p7, %s1089_s19), 5 }
  0x97   : > { %1449 = vadd.xlane.f32.xlu0 %v1448_v56  ;;  %s1088_s1 = scalar_lea.vmem %s3834_s16, %s1087_s25  ;;  %s3836_s25 = sld [smem:[#allocation21_spill]] }
  0x98   : > { %1452 = vadd.xlane.f32.xlu1 %v1451_v59  ;;  %v2877_v59 = vld [vmem:[%s3601_s0] sm:$0xff]  }
  0x9b   : > { %1127 = vadd.xlane.f32.xlu0 %v1126_v62  ;;  %v2880_v62 = vld [vmem:[%s3601_s0 + $0x48] sm:$0xff]  }
  0x9c   : > { %1130 = vadd.xlane.f32.xlu1 %v1129_v63  ;;  %v2881_v63 = vld [vmem:[%s3601_s0 + $0x8] sm:$0xff]  }
 0x11c   : > { %v1444_v2 = vpop.xlane.xlu0 %1443 }
 0x11d   : > { %v1455_v3 = vmul.f32 0.00390625, %v1444_v2  ;;  %v1122_v4 = vpop.xlane.xlu1 %1121  ;;  %v2884_v2 = vld [vmem:[%s3601_s0 + $0x50] sm:$0xff]  }
 0x11e   : > { %v1133_v5 = vmul.f32 0.00390625, %v1122_v4  ;;  %v2886_v4 = vld [vmem:[%s3524_s11 + $0x58] sm:$0xff]  }
 0x11f   : > { %v3528_v6 = vsub.f32 %v1434_v35, %v1455_v3  ;;  %v3530_v7 = vsub.f32 %v1435_v36, %v1455_v3  ;;  %v2885_v3 = vld [vmem:[%s3601_s0 + $0x10] sm:$0xff]  }
 0x120   : > { %v1447_v8 = vpop.xlane.xlu0 %1446  ;;  %v3532_v9 = vsub.f32 %v1112_v40, %v1133_v5  ;;  %v3534_v10 = vsub.f32 %v1113_v41, %v1133_v5  ;;  %v2887_v5 = vld [vmem:[%s3524_s11 + $0x18] sm:$0xff]  }
 0x121   : > { %v1456_v11 = vmul.f32 0.00390625, %v1447_v8  ;;  %v1125_v12 = vpop.xlane.xlu1 %1124  ;;  %v1467_v13 = vmul.f32 %v3528_v6, %v3528_v6  ;;  %v1468_v14 = vmul.f32 %v3530_v7, %v3530_v7  ;;  %v2888_v8 = vld [vmem:[%s3601_s0 + $0x58] sm:$0xff]  }
 0x122   : > { %v1134_v15 = vmul.f32 0.00390625, %v1125_v12  ;;  %v1145_v16 = vmul.f32 %v3532_v9, %v3532_v9  ;;  %v1146_v17 = vmul.f32 %v3534_v10, %v3534_v10  ;;  %v2890_v12 = vld [vmem:[%s3524_s11 + $0x60] sm:$0xff]  }
 0x123   : > { %v3544_v18 = vsub.f32 %v1436_v37, %v1456_v11  ;;  %v3546_v19 = vsub.f32 %v1437_v38, %v1456_v11  ;;  %v1475_v20 = vadd.f32 %v1468_v14, %v1467_v13  ;;  %v2889_v11 = vld [vmem:[%s3601_s0 + $0x18] sm:$0xff]   ;;  %v2891_v13 = vld [vmem:[%s3524_s11 + $0x20] sm:$0xff]  }
 0x124   : > { %v1450_v21 = vpop.xlane.xlu0 %1449  ;;  %v3548_v22 = vsub.f32 %v1114_v44, %v1134_v15  ;;  %v3550_v23 = vsub.f32 %v1115_v45, %v1134_v15  ;;  %v1153_v28 = vadd.f32 %v1146_v17, %v1145_v16  ;;  %v2892_v14 = vld [vmem:[%s3601_s0 + $0x60] sm:$0xff]   ;;  %v2894_v16 = vld [vmem:[%s3524_s11 + $0x68] sm:$0xff]  }
 0x125   : > { %v1457_v24 = vmul.f32 0.00390625, %v1450_v21  ;;  %1476 = vadd.xlane.f32.xlu0 %v1475_v20  ;;  %v1453_v25 = vpop.xlane.xlu1 %1452  ;;  %v1469_v26 = vmul.f32 %v3544_v18, %v3544_v18  ;;  %v1470_v27 = vmul.f32 %v3546_v19, %v3546_v19  ;;  %v2893_v15 = vld [vmem:[%s3601_s0 + $0x20] sm:$0xff]   ;;  %v2895_v17 = vld [vmem:[%s3524_s11 + $0x28] sm:$0xff]  }
 0x126   : > { %v1458_v29 = vmul.f32 0.00390625, %v1453_v25  ;;  %v1147_v30 = vmul.f32 %v3548_v22, %v3548_v22  ;;  %v1148_v31 = vmul.f32 %v3550_v23, %v3550_v23  ;;  %v2896_v20 = vld [vmem:[%s3601_s0 + $0x68] sm:$0xff]   ;;  %v2899_v25 = vld [vmem:[%s3524_s11 + $0x30] sm:$0xff]  }
 0x127   : > { %v3560_v32 = vsub.f32 %v1438_v49, %v1457_v24  ;;  %v3562_v33 = vsub.f32 %v1439_v50, %v1457_v24  ;;  %v1478_v34 = vadd.f32 %v1470_v27, %v1469_v26  ;;  %v2897_v21 = vld [vmem:[%s3601_s0 + $0x28] sm:$0xff]   ;;  %v2898_v24 = vld [vmem:[%s3524_s11 + $0x70] sm:$0xff]  }
 0x128   : > { %v1128_v35 = vpop.xlane.xlu0 %1127  ;;  %v3564_v36 = vsub.f32 %v1440_v53, %v1458_v29  ;;  %v3566_v37 = vsub.f32 %v1441_v54, %v1458_v29  ;;  %v1156_v42 = vadd.f32 %v1148_v31, %v1147_v30  ;;  %v2900_v26 = vld [vmem:[%s3601_s0 + $0x70] sm:$0xff]   ;;  %v2903_v29 = vld [vmem:[%s3524_s11 + $0x38] sm:$0xff]  }
 0x129   : > { %v1135_v38 = vmul.f32 0.00390625, %v1128_v35  ;;  %1479 = vadd.xlane.f32.xlu1 %v1478_v34  ;;  %1154 = vadd.xlane.f32.xlu0 %v1153_v28  ;;  %v1131_v39 = vpop.xlane.xlu1 %1130  ;;  %v1471_v40 = vmul.f32 %v3560_v32, %v3560_v32  ;;  %v1472_v41 = vmul.f32 %v3562_v33, %v3562_v33  ;;  %v2901_v27 = vld [vmem:[%s3601_s0 + $0x30] sm:$0xff]   ;;  %v2902_v28 = vld [vmem:[%s3524_s11 + $0x78] sm:$0xff]   ;;  %v2906_v34 = vld [vmem:[%s3634_s30 + $0x40] sm:$0xff]  }
 0x12a   : > { %v1136_v43 = vmul.f32 0.00390625, %v1131_v39  ;;  %v1473_v44 = vmul.f32 %v3564_v36, %v3564_v36  ;;  %v1474_v45 = vmul.f32 %v3566_v37, %v3566_v37  ;;  %v2904_v30 = vld [vmem:[%s3601_s0 + $0x78] sm:$0xff]  }
 0x12b   : > { %v3578_v46 = vsub.f32 %v1116_v57, %v1135_v38  ;;  %v3582_v47 = vsub.f32 %v1117_v58, %v1135_v38  ;;  %v1481_v48 = vadd.f32 %v1472_v41, %v1471_v40  ;;  %v2876_v57 = vld [vmem:[%s3601_s0 + $0x40] sm:$0xff]   ;;  %v2905_v31 = vld [vmem:[%s3601_s0 + $0x38] sm:$0xff]  }
 0x12c   : > { %v3586_v49 = vsub.f32 %v1118_v60, %v1136_v43  ;;  %v3590_v50 = vsub.f32 %v1119_v61, %v1136_v43  ;;  %v1484_v53 = vadd.f32 %v1474_v45, %v1473_v44  ;;  %2657 = vmatprep.subr.bf16.mxu0 %v2876_v57  ;;  %v2878_v60 = vld [vmem:[%s3524_s11 + $0x48] sm:$0xff]  }
 0x12d   : > { %1482 = vadd.xlane.f32.xlu0 %v1481_v48  ;;  %1157 = vadd.xlane.f32.xlu1 %v1156_v42  ;;  %v1149_v51 = vmul.f32 %v3578_v46, %v3578_v46  ;;  %v1150_v52 = vmul.f32 %v3582_v47, %v3582_v47  ;;  %v2879_v61 = vld [vmem:[%s3524_s11 + $0x8] sm:$0xff]   ;;  %v1187_v42 = vlaneseq  ;;  %s3833_s11 = sld [smem:[#allocation19_spill]] }
 0x12e   : > { %v1151_v54 = vmul.f32 %v3586_v49, %v3586_v49  ;;  %v1152_v55 = vmul.f32 %v3590_v50, %v3590_v50  ;;  %2658 = vmatpush3.bf16.msra.mxu0 %v2877_v59  ;;  %2687 = vmatprep.subr.bf16.mxu1 %v2878_v60 }
 0x12f   : > { %v1159_v56 = vadd.f32 %v1150_v52, %v1149_v51  ;;  %2688 = vmatpush3.bf16.msra.mxu1 %v2879_v61  ;;  %2659 = vmatprep.subr.bf16.mxu0 %v2880_v62 }
 0x130   : > { %v1162_v58 = vadd.f32 %v1152_v55, %v1151_v54  ;;  %2689 = vmatprep.subr.bf16.mxu1 %v2882_v0  ;;  %v1507_v0 = vld [vmem:[%s3830_s7] sm:$0x3] }
 0x131   : > { %1160 = vadd.xlane.f32.xlu0 %v1159_v56  ;;  %1485 = vadd.xlane.f32.xlu1 %v1484_v53  ;;  %v1188_v53 = vshrl.u32 %v1187_v42, 7 }
 0x132   : > { %2660 = vmatpush3.bf16.msra.mxu0 %v2881_v63 }
 0x133   : > { %2690 = vmatpush3.bf16.msra.mxu1 %v2883_v1  ;;  %2661 = vmatprep.subr.bf16.mxu0 %v2884_v2  ;;  %v1189_v60 = vsub.s32 0, %v1188_v53  ;;  %v1193_v61 = vsub.s32 1, %v1188_v53  ;;  %s1092_s21 = scalar_lea.vmem %s3833_s11, %s3861_s19 }
 0x134   : > { %2691 = vmatprep.subr.bf16.mxu1 %v2886_v4  ;;  %v1185_v4 = vld [vmem:[%s3830_s7] sm:$0x3] }
 0x135   : > { %1163 = vadd.xlane.f32.xlu1 %v1162_v58 }
 0x136   : > { %2662 = vmatpush3.bf16.msra.mxu0 %v2885_v3 }
 0x137   : > { %2692 = vmatpush3.bf16.msra.mxu1 %v2887_v5  ;;  %2663 = vmatprep.subr.bf16.mxu0 %v2888_v8 }
 0x138   : > { %2693 = vmatprep.subr.bf16.mxu1 %v2890_v12  ;;  %v1516_v12 = vrot.slane %v1507_v0, %v1193_v61 }
 0x13a   : > { %2664 = vmatpush3.bf16.msra.mxu0 %v2889_v11  ;;  %v1512_v11 = vrot.slane %v1507_v0, %v1189_v60 }
 0x13b   : > { %2694 = vmatpush3.bf16.msra.mxu1 %v2891_v13  ;;  %2665 = vmatprep.subr.bf16.mxu0 %v2892_v14  ;;  %v1527_v13 = vld [vmem:[%s3831_s15] sm:$0x3] }
 0x13c   : > { %2695 = vmatprep.subr.bf16.mxu1 %v2894_v16  ;;  %v3648_v16 = vrot.slane %v1185_v4, %v1189_v60 }
 0x13e   : > { %2666 = vmatpush3.bf16.msra.mxu0 %v2893_v15 }
 0x13f   : > { %2696 = vmatpush3.bf16.msra.mxu1 %v2895_v17  ;;  %2667 = vmatprep.subr.bf16.mxu0 %v2896_v20  ;;  %v3650_v17 = vrot.slane %v1185_v4, %v1193_v61 }
 0x140   : > { %2697 = vmatprep.subr.bf16.mxu1 %v2898_v24  ;;  %v1532_v24 = vrot.slane %v1527_v13, %v1189_v60 }
 0x142   : > { %2668 = vmatpush3.bf16.msra.mxu0 %v2897_v21 }
 0x143   : > { %2698 = vmatpush3.bf16.msra.mxu1 %v2899_v25  ;;  %2669 = vmatprep.subr.bf16.mxu0 %v2900_v26  ;;  %v1536_v25 = vrot.slane %v1527_v13, %v1193_v61 }
 0x144   : > { %2699 = vmatprep.subr.bf16.mxu1 %v2902_v28 }
 0x146   : > { %2670 = vmatpush3.bf16.msra.mxu0 %v2901_v27 }
 0x147   : > { %2700 = vmatpush3.bf16.msra.mxu1 %v2903_v29  ;;  %2671 = vmatprep.subr.bf16.mxu0 %v2904_v30 }
 0x14a   : > { %2672 = vmatpush3.bf16.msra.mxu0 %v2905_v31 }
 0x14b   : > { %2713 = vmatprep.subr.bf16.mxu0 %v2906_v34 }
 0x1b2   : > { %v1477_v35 = vpop.xlane.xlu0 %1476 }
 0x1b3   : > { %v1487_v38 = vmul.f32 0.00390625, %v1477_v35 }
 0x1b5   : > { %v1491_v39 = vadd.f32 1e-06, %v1487_v38 }
 0x1b6   : > { %v1155_v40 = vpop.xlane.xlu0 %1154  ;;  %v1480_v41 = vpop.xlane.xlu1 %1479 }
 0x1b7   : > { %2922 = vrsqrt.f32 %v1491_v39  ;;  %v1165_v43 = vmul.f32 0.00390625, %v1155_v40  ;;  %v1488_v44 = vmul.f32 0.00390625, %v1480_v41 }
 0x1b9   : > { %v1169_v45 = vadd.f32 1e-06, %v1165_v43  ;;  %v1492_v48 = vadd.f32 1e-06, %v1488_v44 }
 0x1ba   : > { %v1483_v51 = vpop.xlane.xlu0 %1482  ;;  %v1158_v52 = vpop.xlane.xlu1 %1157 }
 0x1bb   : > { %2924 = vrsqrt.f32 %v1169_v45  ;;  %v1489_v54 = vmul.f32 0.00390625, %v1483_v51  ;;  %v1166_v55 = vmul.f32 0.00390625, %v1158_v52 }
 0x1bc   : > { %2926 = vrsqrt.f32 %v1492_v48 }
 0x1bd   : > { %v1493_v56 = vadd.f32 1e-06, %v1489_v54  ;;  %v1170_v57 = vadd.f32 1e-06, %v1166_v55 }
 0x1be   : > { %v1161_v58 = vpop.xlane.xlu0 %1160  ;;  %v1486_v59 = vpop.xlane.xlu1 %1485 }
 0x1bf   : > { %2928 = vrsqrt.f32 %v1493_v56  ;;  %v1167_v62 = vmul.f32 0.00390625, %v1161_v58  ;;  %v1490_v63 = vmul.f32 0.00390625, %v1486_v59 }
 0x1c0   : > { %2930 = vrsqrt.f32 %v1170_v57 }
 0x1c1   : > { %v2923_v1 = vpop.eup %2922  ;;  %v1171_v2 = vadd.f32 1e-06, %v1167_v62  ;;  %v1494_v3 = vadd.f32 1e-06, %v1490_v63 }
 0x1c2   : > { %v1164_v5 = vpop.xlane.xlu1 %1163  ;;  %v1500_v8 = vmul.f32 %v2923_v1, %v3530_v7  ;;  %v1499_v14 = vmul.f32 %v2923_v1, %v3528_v6  ;;  %v1205_v7 = vld [vmem:[%s3831_s15] sm:$0x3] }
 0x1c3   : > { %2932 = vrsqrt.f32 %v1171_v2  ;;  %v1168_v15 = vmul.f32 0.00390625, %v1164_v5  ;;  %v1210_v35 = vrot.slane %v1205_v7, %v1189_v60  ;;  %v1214_v38 = vrot.slane %v1205_v7, %v1193_v61  ;;  %v2909_v7 = vld [vmem:[%s3634_s30 + $0x8] sm:$0xff]  }
 0x1c4   : > { %2934 = vrsqrt.f32 %v1494_v3  ;;  %v1520_v27 = vmul.f32 %v1516_v12, %v1500_v8  ;;  %v1519_v28 = vmul.f32 %v1512_v11, %v1499_v14  ;;  %v2907_v3 = vld [vmem:[%s3634_s30] sm:$0xff]   ;;  %v2908_v8 = vld [vmem:[%s3634_s30 + $0x48] sm:$0xff]  }
 0x1c5   : > { %v2925_v20 = vpop.eup %2924  ;;  %v1172_v21 = vadd.f32 1e-06, %v1168_v15 }
 0x1c6   : > { %v2927_v26 = vpop.eup %2926  ;;  %v1178_v6 = vmul.f32 %v2925_v20, %v3534_v10  ;;  %v1177_v29 = vmul.f32 %v2925_v20, %v3532_v9  ;;  %v1540_v44 = vadd.f32 %v1536_v25, %v1520_v27  ;;  %v1539_v45 = vadd.f32 %v1532_v24, %v1519_v28  ;;  %v2910_v27 = vld [vmem:[%s3634_s30 + $0x50] sm:$0xff]  }
 0x1c7   : > { %2936 = vrsqrt.f32 %v1172_v21  ;;  %v1502_v30 = vmul.f32 %v2927_v26, %v3546_v19  ;;  %v1501_v31 = vmul.f32 %v2927_v26, %v3544_v18 }
 0x1c8   : > { %v1198_v34 = vmul.f32 %v3650_v17, %v1178_v6  ;;  %v1197_v39 = vmul.f32 %v3648_v16, %v1177_v29  ;;  %v2912_v6 = vld [vmem:[%s3634_s30 + $0x58] sm:$0xff]  }
 0x1c9   : > { %v2929_v40 = vpop.eup %2928  ;;  %v1522_v41 = vmul.f32 %v1516_v12, %v1502_v30  ;;  %v1521_v42 = vmul.f32 %v1512_v11, %v1501_v31  ;;  %v2913_v29 = vld [vmem:[%s3634_s30 + $0x18] sm:$0xff]   ;;  %v2914_v30 = vld [vmem:[%s3634_s30 + $0x60] sm:$0xff]  }
 0x1ca   : > { %v2931_v43 = vpop.eup %2930  ;;  %v1504_v10 = vmul.f32 %v2929_v40, %v3562_v33  ;;  %v1503_v9 = vmul.f32 %v2929_v40, %v3560_v32  ;;  %v1218_v52 = vadd.f32 %v1214_v38, %v1198_v34  ;;  %v1217_v53 = vadd.f32 %v1210_v35, %v1197_v39  ;;  %v2915_v31 = vld [vmem:[%s3634_s30 + $0x20] sm:$0xff]   ;;  %v2916_v34 = vld [vmem:[%s3634_s30 + $0x68] sm:$0xff]   ;;  %v2919_v39 = vld [vmem:[%s3634_s30 + $0x30] sm:$0xff]  }
 0x1cb   : > { %v1542_v48 = vadd.f32 %v1536_v25, %v1522_v41  ;;  %v1541_v19 = vadd.f32 %v1532_v24, %v1521_v42  ;;  %v1180_v18 = vmul.f32 %v2931_v43, %v3550_v23  ;;  %v1179_v51 = vmul.f32 %v2931_v43, %v3548_v22  ;;  %v2920_v40 = vld [vmem:[%s3634_s30 + $0x78] sm:$0xff]  }
 0x1cc   : > { %v1524_v59 = vmul.f32 %v1516_v12, %v1504_v10  ;;  %v1523_v32 = vmul.f32 %v1512_v11, %v1503_v9  ;;  %v2921_v41 = vld [vmem:[%s3634_s30 + $0x38] sm:$0xff]   ;;  %v2594_v10 = vld [vmem:[%s1092_s21] ss:$0 sm:$0xff] }
 0x1cd   : > { %v2933_v54 = vpop.eup %2932  ;;  %v1548_v55 = vpack.c.bf16 %v1542_v48, %v1540_v44  ;;  %v3665_v56 = vpack.c.bf16 %v1541_v19, %v1539_v45  ;;  %v1200_v57 = vmul.f32 %v3650_v17, %v1180_v18  ;;  %v1199_v58 = vmul.f32 %v3648_v16, %v1179_v51 }
 0x1ce   : > { %v2935_v33 = vpop.eup %2934  ;;  %v1182_v60 = vmul.f32 %v2933_v54, %v3582_v47  ;;  %v1181_v23 = vmul.f32 %v2933_v54, %v3578_v46  ;;  %v1543_v15 = vadd.f32 %v1532_v24, %v1523_v32 }
 0x1cf   : > { %1718 = vmatprep.mubr.bf16.mxu1 %v1548_v55  ;;  %v1220_v22 = vadd.f32 %v1214_v38, %v1200_v57  ;;  %v1219_v61 = vadd.f32 %v1210_v35, %v1199_v58  ;;  %v1506_v62 = vmul.f32 %v2935_v33, %v3566_v37  ;;  %v1505_v63 = vmul.f32 %v2935_v33, %v3564_v36 }
 0x1d0   : > { %1719 = vmatmul.mubr.bf16.vlgmr.msra.gmra.mrb[0].mxu1 %v3665_v56  ;;  %v1202_v46 = vmul.f32 %v3650_v17, %v1182_v60  ;;  %v1201_v37 = vmul.f32 %v3648_v16, %v1181_v23  ;;  %v1544_v36 = vadd.f32 %v1536_v25, %v1524_v59 }
 0x1d1   : > { %v2937_v0 = vpop.eup %2936  ;;  %v1226_v1 = vpack.c.bf16 %v1220_v22, %v1218_v52  ;;  %v1225_v2 = vpack.c.bf16 %v1219_v61, %v1217_v53  ;;  %v1526_v4 = vmul.f32 %v1516_v12, %v1506_v62  ;;  %v1525_v5 = vmul.f32 %v1512_v11, %v1505_v63 }
 0x1d2   : > { %v1184_v47 = vmul.f32 %v2937_v0, %v3590_v50  ;;  %v1183_v13 = vmul.f32 %v2937_v0, %v3586_v49  ;;  %v1222_v49 = vadd.f32 %v1214_v38, %v1202_v46  ;;  %v1221_v28 = vadd.f32 %v1210_v35, %v1201_v37 }
 0x1d3   : > { %1396 = vmatprep.mubr.bf16.mxu0 %v1226_v1  ;;  %v1546_v14 = vadd.f32 %v1536_v25, %v1526_v4  ;;  %v1545_v20 = vadd.f32 %v1532_v24, %v1525_v5  ;;  %v2911_v24 = vld [vmem:[%s3634_s30 + $0x10] sm:$0xff]  }
 0x1d4   : > { %1397 = vmatmul.mubr.bf16.vlgmr.msra.gmra.mrb[0].mxu0 %v1225_v2  ;;  %v1204_v12 = vmul.f32 %v3650_v17, %v1184_v47  ;;  %v1203_v11 = vmul.f32 %v3648_v16, %v1183_v13 }
 0x1d5   : > { %2714 = vmatpush3.bf16.msra.mxu0 %v2907_v3  ;;  %v1550_v50 = vpack.c.bf16 %v1546_v14, %v1544_v36  ;;  %v1549_v21 = vpack.c.bf16 %v1545_v20, %v1543_v15 }
 0x1d6   : > { %2715 = vmatprep.subr.bf16.mxu0 %v2908_v8  ;;  %v1224_v26 = vadd.f32 %v1214_v38, %v1204_v12  ;;  %v1223_v25 = vadd.f32 %v1210_v35, %v1203_v11  ;;  %v2917_v35 = vld [vmem:[%s3634_s30 + $0x28] sm:$0xff]   ;;  %v2918_v38 = vld [vmem:[%s3634_s30 + $0x70] sm:$0xff]   ;;  %s1059_s30 = sand.u32 1, %s3016_s17   ;;  %s3837_s17 = sld [smem:[#allocation12_spill]] (%p3255_p1) }
 0x1d7   : > { %1726 = vmatprep.mubr.bf16.mxu1 %v1550_v50  ;;  %s2572_s0 = sshll.u32 %s1059_s30, 4 }
 0x1d8   : > { %1727 = vmatmul.mubr.bf16.gmra.mrb[4].mxu1 %v1549_v21  ;;  %v1228_v17 = vpack.c.bf16 %v1224_v26, %v1222_v49  ;;  %v1227_v16 = vpack.c.bf16 %v1223_v25, %v1221_v28  ;;  %s1061_s16 = scalar_lea.vmem [#allocation9], %s2572_s0 }
 0x1d9   : > { %2716 = vmatpush3.bf16.msra.mxu0 %v2909_v7 }
 0x1da   : > { %1404 = vmatprep.mubr.bf16.mxu0 %v1228_v17  ;;  %2717 = vmatprep.subr.bf16.mxu0 %v2910_v27 }
 0x1dc   : > { %1405 = vmatmul.mubr.bf16.gmra.mrb[4].mxu0 %v1227_v16 }
 0x1dd   : > { %2718 = vmatpush3.bf16.msra.mxu0 %v2911_v24  ;;  %1904 = vmatprep.mubr.bf16.mxu0 %v1548_v55  ;;  %v2577_v55 = vld [vmem:[%s1088_s1] ss:$0 sm:$0xff]  ;;  %s1094_s1 = sadd.s32 4, %s3832_s10  ;;  %s3838_s10 = sld [smem:[#allocation22_spill]] (%p3255_p1) }
 0x1de   : > { %2719 = vmatprep.subr.bf16.mxu0 %v2912_v6  ;;  %p1095_p9 = scmp.lt.s32.totalorder %s1094_s1, 5 }
 0x1e0   : > { %s3863_s1 = smov (!%p1095_p9, %s1094_s1), 5 }
 0x1e1   : > { %2720 = vmatpush3.bf16.msra.mxu0 %v2913_v29  ;;  %s1097_s11 = scalar_lea.vmem %s3835_s8, %s3863_s1  ;;  %s2636_s1 = sshll.u32 (%p3255_p1), %s3052_s26, 3 }
 0x1e2   : > { %2721 = vmatprep.subr.bf16.mxu0 %v2914_v30  ;;  %v2611_v11 = vld [vmem:[%s1097_s11] ss:$0 sm:$0xff]  ;;  %s2242_s19 = sadd.s32 (%p3255_p1), %s3837_s17, %s2636_s1 }
 0x1e3   : > { %s2637_s2 = sshll.u32 (%p3255_p1), %s2242_s19, 2 }
 0x1e4   : > { %s2244_s21 = scalar_lea.vmem (%p3255_p1), %s3838_s10, %s2637_s2 }
 0x1e5   : > { %2722 = vmatpush3.bf16.msra.mxu0 %v2915_v31  ;;  %v3066_v31 = vmov -inf  }
 0x1e6   : > { %2723 = vmatprep.subr.bf16.mxu0 %v2916_v34  ;;  %1418 = vst.msk [vmem:[#allocation3] sm:$0xff] %vm1417_vm0, %v3066_v31  ;;  %1419 = vst.msk [vmem:[#allocation3 + $0x8] sm:$0xff] %vm1417_vm0, %v3066_v31  ;;  %v2628_v34 = vld [vmem:[%s3836_s25] ss:$0 sm:$0xff] }
 0x1e7   : > { %1420 = vst.msk [vmem:[#allocation3 + $0x10] sm:$0xff] %vm1417_vm0, %v3066_v31  ;;  %1421 = vst.msk [vmem:[#allocation3 + $0x18] sm:$0xff] %vm1417_vm0, %v3066_v31 }
 0x1e9   : > { %2724 = vmatpush3.bf16.msra.mxu0 %v2917_v35 }
 0x1ea   : > { %2725 = vmatprep.subr.bf16.mxu0 %v2918_v38 }
 0x1ed   : > { %2726 = vmatpush3.bf16.msra.mxu0 %v2919_v39 }
 0x1ee   : > { %2727 = vmatprep.subr.bf16.mxu0 %v2920_v40 }
 0x1f1   : > { %2728 = vmatpush3.bf16.msra.mxu0 %v2921_v41 }
 0x1f4   : > { %1905 = vmatmul.mubr.bf16.vlgmr.msra.gmra.mrb[8].mxu0 %v3665_v56 }
 0x1f5   : > { %1912 = vmatprep.mubr.bf16.mxu0 %v1550_v50 }
 0x1fc   : > { %1913 = vmatmul.mubr.bf16.gmra.mrb[12].mxu0 %v1549_v21 }
 0x2a3   : > { %v2701_v42 = vpop.f32.mrb[0].mxu1 }
 0x2a4   : > { %v2702_v43 = vpop.f32.mrb[1].mxu1 }
 0x2a5   : > { %v2703_v44 = vadd.f32 %v2702_v43, %v2701_v42  ;;  %v2704_v45 = vpop.f32.mrb[2].mxu1 }
 0x2a6   : > { %v2705_v9 = vpop.f32.mrb[3].mxu1 }
 0x2a7   : > { %v2706_v48 = vadd.f32 %v2705_v9, %v2704_v45  ;;  %v2673_v19 = vpop.f32.mrb[0].mxu0  ;;  %v1721_v51 = vadd.f32 %v2703_v44, %v2594_v10 }
 0x2a8   : > { %v2674_v18 = vpop.f32.mrb[1].mxu0 }
 0x2a9   : > { %v1724_v52 = vadd.f32 %v2706_v48, %v2594_v10  ;;  %v2675_v53 = vadd.f32 %v2674_v18, %v2673_v19  ;;  %v2676_v54 = vpop.f32.mrb[2].mxu0  ;;  %v3067_v19 = vmov 0   ;;  %v3068_v18 = vmov 0.0  }
 0x2aa   : > { %v2677_v56 = vpop.f32.mrb[3].mxu0  ;;  %2872 = vset.pattern.permute.xlu0 %v3067_v19  ;;  %2873 = vset.pattern.permute.xlu1 %v3067_v19  ;;  %1422 = vst.msk [vmem:[#allocation4] sm:$0xff] %vm1417_vm0, %v3068_v18  ;;  %1423 = vst.msk [vmem:[#allocation4 + $0x8] sm:$0xff] %vm1417_vm0, %v3068_v18 }
 0x2ab   : > { %v2678_v57 = vadd.f32 %v2677_v56, %v2676_v54  ;;  %v2707_v58 = vpop.f32.mrb[4].mxu1  ;;  %v1735_v33 = vpack.c.bf16 %v1724_v52, %v1721_v51  ;;  %v1399_v32 = vadd.f32 %v2675_v53, %v2577_v55  ;;  %1424 = vst.msk [vmem:[#allocation4 + $0x10] sm:$0xff] %vm1417_vm0, %v3068_v18  ;;  %1425 = vst.msk [vmem:[#allocation4 + $0x18] sm:$0xff] %vm1417_vm0, %v3068_v18  ;;  %v1981_v51 = vld [vmem:[#allocation3] sm:$0xff]  ;;  %v1982_v53 = vld [vmem:[#allocation3 + $0x8] sm:$0xff] }
 0x2ac   : > { %v2708_v59 = vpop.f32.mrb[5].mxu1  ;;  %v1983_v56 = vld [vmem:[#allocation3 + $0x10] sm:$0xff] }
 0x2ad   : > { %v1402_v60 = vadd.f32 %v2678_v57, %v2577_v55  ;;  %v2709_v23 = vadd.f32 %v2708_v59, %v2707_v58  ;;  %v2710_v22 = vpop.f32.mrb[6].mxu1  ;;  %2749 = vmatprep.subr.bf16.mxu1 %v1735_v33  ;;  %v1984_v59 = vld [vmem:[#allocation3 + $0x18] sm:$0xff] }
 0x2ae   : > { %v2711_v61 = vpop.f32.mrb[7].mxu1  ;;  %2750 = vmatpush3.bf16.xpose.msra.mxu1 %v1735_v33 }
 0x2af   : > { %v2712_v62 = vadd.f32 %v2711_v61, %v2710_v22  ;;  %v2679_v63 = vpop.f32.mrb[4].mxu0  ;;  %v1413_v0 = vpack.c.bf16 %v1402_v60, %v1399_v32  ;;  %v1729_v2 = vadd.f32 %v2709_v23, %v2594_v10 }
 0x2b0   : > { %v2680_v1 = vpop.f32.mrb[5].mxu0 }
 0x2b1   : > { %v1732_v3 = vadd.f32 %v2712_v62, %v2594_v10  ;;  %v2681_v4 = vadd.f32 %v2680_v1, %v2679_v63  ;;  %v2682_v5 = vpop.f32.mrb[6].mxu0  ;;  %2753 = vmatprep.mubr.bf16.mxu1 %v1413_v0 }
 0x2b2   : > { %v2683_v8 = vpop.f32.mrb[7].mxu0 }
 0x2b3   : > { %v2684_v47 = vadd.f32 %v2683_v8, %v2682_v5  ;;  %v1736_v46 = vpack.c.bf16 %v1732_v3, %v1729_v2  ;;  %v1407_v13 = vadd.f32 %v2681_v4, %v2577_v55 }
 0x2b5   : > { %v1410_v37 = vadd.f32 %v2684_v47, %v2577_v55  ;;  %2751 = vmatprep.subr.bf16.mxu1 %v1736_v46 }
 0x2b6   : > { %2752 = vmatpush3.bf16.xpose.msra.mxu1 %v1736_v46 }
 0x2b7   : > { %v1414_v36 = vpack.c.bf16 %v1410_v37, %v1407_v13 }
 0x2bd   : > { %2754 = vmatmul.mubr.bf16.vlgmr.msra.gmra.mrb[8].mxu1 %v1414_v36 }
 0x2c7   : > { %v2729_v14 = vpop.f32.mrb[8].mxu0 }
 0x2c8   : > { %v2730_v15 = vpop.f32.mrb[9].mxu0 }
 0x2c9   : > { %v2731_v20 = vadd.f32 %v2730_v15, %v2729_v14  ;;  %v2732_v12 = vpop.f32.mrb[10].mxu0 }
 0x2ca   : > { %v2733_v50 = vpop.f32.mrb[11].mxu0 }
 0x2cb   : > { %v2734_v21 = vadd.f32 %v2733_v50, %v2732_v12  ;;  %v1907_v7 = vadd.f32 %v2731_v20, %v2611_v11 }
 0x2cd   : > { %v1910_v49 = vadd.f32 %v2734_v21, %v2611_v11 }
 0x2cf   : > { %v2735_v26 = vpop.f32.mrb[12].mxu0  ;;  %v1921_v27 = vpack.c.bf16 %v1910_v49, %v1907_v7 }
 0x2d0   : > { %v2736_v28 = vpop.f32.mrb[13].mxu0 }
 0x2d1   : > { %v2737_v25 = vadd.f32 %v2736_v28, %v2735_v26  ;;  %v2738_v17 = vpop.f32.mrb[14].mxu0  ;;  %2757 = vmatprep.subr.bf16.mxu1 %v1921_v27 }
 0x2d2   : > { %v2739_v16 = vpop.f32.mrb[15].mxu0  ;;  %2758 = vmatpush3.bf16.msra.mxu1 %v1921_v27 }
 0x2d3   : > { %v2740_v24 = vadd.f32 %v2739_v16, %v2738_v17  ;;  %v1915_v6 = vadd.f32 %v2737_v25, %v2611_v11 }
 0x2d5   : > { %v1918_v29 = vadd.f32 %v2740_v24, %v2611_v11 }
 0x2d7   : > { %v1922_v30 = vpack.c.bf16 %v1918_v29, %v1915_v6  ;;  %v2046_v29 = vld [vmem:[#allocation4] sm:$0xff] }
 0x2d9   : > { %2759 = vmatprep.subr.bf16.mxu1 %v1922_v30 }
 0x2da   : > { %2760 = vmatpush3.bf16.msra.mxu1 %v1922_v30 }
 0x390   : > { %v2755_v35 = vpop.f32.mrb[8].mxu1 }
 0x391   : > { %v1966_v38 = vpop.f32.mrb[9].mxu1  ;;  %v1975_v42 = vadd.f32 %v2755_v35, %v2628_v34 }
 0x392   : > { %v1967_v39 = vadd.f32 %v2628_v34, %v1966_v38  ;;  %v2756_v40 = vpop.f32.mrb[10].mxu1 }
 0x393   : > { %v1969_v41 = vpop.f32.mrb[11].mxu1  ;;  %v1978_v45 = vadd.f32 %v2756_v40, %v2628_v34  ;;  %v1992_v9 = vsel %vm1985_vm1, %v1975_v42, -inf  ;;  %v2047_v40 = vld [vmem:[#allocation4 + $0x8] sm:$0xff] }
 0x394   : > { %v1970_v43 = vadd.f32 %v2628_v34, %v1969_v41  ;;  %v1986_v44 = vsel %vm1985_vm1, %v1967_v39, -inf  ;;  %v2048_v34 = vld [vmem:[#allocation4 + $0x10] sm:$0xff] }
 0x395   : > { %1987 = vmax.xlane.f32.xlu0 %v1986_v44  ;;  %v1995_v48 = vsel %vm1985_vm1, %v1978_v45, -inf  ;;  %v2049_v44 = vld [vmem:[#allocation4 + $0x18] sm:$0xff] }
 0x396   : > { %v1989_v10 = vsel %vm1985_vm1, %v1970_v43, -inf }
 0x397   : > { %1990 = vmax.xlane.f32.xlu1 %v1989_v10 }
 0x399   : > { %1993 = vmax.xlane.f32.xlu0 %v1992_v9 }
 0x39b   : > { %1996 = vmax.xlane.f32.xlu1 %v1995_v48 }
 0x422   : > { %v1988_v52 = vpop.xlane.xlu0 %1987 }
 0x423   : > { %v1998_v54 = vmax.f32 %v1981_v51, %v1988_v52 }
 0x424   : > { %v1991_v55 = vpop.xlane.xlu1 %1990 }
 0x425   : > { %v2002_v57 = vsub.f32 %v1981_v51, %v1998_v54  ;;  %2168 = vst.msk [vmem:[#allocation3] sm:$0xff] %vm1417_vm0, %v1998_v54  ;;  %v1999_v58 = vmax.f32 %v1982_v53, %v1991_v55  ;;  %2016 = vperm.xlu0 %2872, %v1998_v54  }
 0x426   : > { %v1994_v33 = vpop.xlane.xlu0 %1993 }
 0x427   : > { %v2003_v32 = vsub.f32 %v1982_v53, %v1999_v58  ;;  %2169 = vst.msk [vmem:[#allocation3 + $0x8] sm:$0xff] %vm1417_vm0, %v1999_v58  ;;  %v2000_v60 = vmax.f32 %v1983_v56, %v1994_v33  ;;  %v2006_v26 = vmul.f32 1.442695, %v2002_v57 }
 0x428   : > { %v1997_v23 = vpop.xlane.xlu1 %1996 }
 0x429   : > { %v2004_v22 = vsub.f32 %v1983_v56, %v2000_v60  ;;  %2170 = vst.msk [vmem:[#allocation3 + $0x10] sm:$0xff] %vm1417_vm0, %v2000_v60  ;;  %v2001_v61 = vmax.f32 %v1984_v59, %v1997_v23  ;;  %2026 = vperm.xlu1 %2873, %v2000_v60   ;;  %v2008_v27 = vmul.f32 1.442695, %v2003_v32 }
 0x42b   : > { %v2005_v62 = vsub.f32 %v1984_v59, %v2001_v61  ;;  %2171 = vst.msk [vmem:[#allocation3 + $0x18] sm:$0xff] %vm1417_vm0, %v2001_v61  ;;  %v2010_v28 = vmul.f32 1.442695, %v2004_v22 }
 0x42d   : > { %2021 = vperm.xlu1 %2873, %v1999_v58   ;;  %v2012_v25 = vmul.f32 1.442695, %v2005_v62 }
 0x431   : > { %2031 = vperm.xlu1 %2873, %v2001_v61  }
 0x4a4   : > { %v2017_v63 = vpop.permute.xlu0 %2016 }
 0x4a5   : > { %v2034_v0 = vsub.f32 %v1967_v39, %v2017_v63 }
 0x4a7   : > { %v2038_v1 = vmul.f32 1.442695, %v2034_v0 }
 0x4a8   : > { %v2027_v2 = vpop.permute.xlu1 %2026 }
 0x4a9   : > { %2938 = vpow2.f32 %v2038_v1  ;;  %v2036_v3 = vsub.f32 %v1975_v42, %v2027_v2 }
 0x4ab   : > { %v2042_v4 = vmul.f32 1.442695, %v2036_v3 }
 0x4ac   : > { %v2022_v5 = vpop.permute.xlu1 %2021 }
 0x4ad   : > { %2940 = vpow2.f32 %v2042_v4  ;;  %v2035_v8 = vsub.f32 %v1970_v43, %v2022_v5 }
 0x4af   : > { %v2040_v47 = vmul.f32 1.442695, %v2035_v8 }
 0x4b0   : > { %v2032_v46 = vpop.permute.xlu1 %2031 }
 0x4b1   : > { %2942 = vpow2.f32 %v2040_v47  ;;  %v2037_v13 = vsub.f32 %v1978_v45, %v2032_v46 }
 0x4b3   : > { %v2939_v37 = vpop.eup %2938  ;;  %v2044_v36 = vmul.f32 1.442695, %v2037_v13 }
 0x4b4   : > { %v2054_v14 = vsel %vm1985_vm1, %v2939_v37, 0.0 }
 0x4b5   : > { %2944 = vpow2.f32 %v2044_v36  ;;  %2055 = vadd.xlane.f32.xlu1 %v2054_v14 }
 0x4b6   : > { %2946 = vpow2.f32 %v2006_v26 }
 0x4b7   : > { %v2941_v15 = vpop.eup %2940  ;;  %2948 = vpow2.f32 %v2008_v27 }
 0x4b8   : > { %v2060_v20 = vsel %vm1985_vm1, %v2941_v15, 0.0  ;;  %2950 = vpow2.f32 %v2010_v28 }
 0x4b9   : > { %2061 = vadd.xlane.f32.xlu1 %v2060_v20  ;;  %2952 = vpow2.f32 %v2012_v25 }
 0x4bb   : > { %v2943_v12 = vpop.eup %2942 }
 0x4bc   : > { %v2057_v11 = vsel %vm1985_vm1, %v2943_v12, 0.0  ;;  %v2103_v50 = vpack.c.bf16 %v2943_v12, %v2939_v37 }
 0x4bd   : > { %2058 = vadd.xlane.f32.xlu0 %v2057_v11 }
 0x4be   : > { %2761 = vmatprep.mubr.msk.bf16.mxu1 %vm1985_vm1, %v2103_v50 }
 0x4bf   : > { %v2945_v21 = vpop.eup %2944 }
 0x4c0   : > { %v2063_v7 = vsel %vm1985_vm1, %v2945_v21, 0.0  ;;  %v2104_v49 = vpack.c.bf16 %v2945_v21, %v2941_v15  ;;  %v2947_v17 = vpop.eup %2946 }
 0x4c1   : > { %2064 = vadd.xlane.f32.xlu1 %v2063_v7  ;;  %v2949_v16 = vpop.eup %2948  ;;  %v2050_v30 = vmul.f32 %v2947_v17, %v2046_v29 }
 0x4c2   : > { %2762 = vmatmul.mubr.msk.bf16.vlgmr.msra.gmra.mrb[12].mxu1 %vm1985_vm1, %v2104_v49  ;;  %v2951_v24 = vpop.eup %2950  ;;  %v2051_v42 = vmul.f32 %v2949_v16, %v2047_v40 }
 0x4c3   : > { %v2953_v6 = vpop.eup %2952  ;;  %v2052_v38 = vmul.f32 %v2951_v24, %v2048_v34 }
 0x4c4   : > { %v2053_v9 = vmul.f32 %v2953_v6, %v2049_v44 }
 0x4d2   : > { %2081 = vperm.xlu1 %2873, %v2947_v17  }
 0x4d3   : > { %2086 = vperm.xlu0 %2872, %v2949_v16  }
 0x4d6   : > { %2091 = vperm.xlu1 %2873, %v2951_v24  }
 0x4da   : > { %2096 = vperm.xlu1 %2873, %v2953_v6  }
 0x542   : > { %v2056_v31 = vpop.xlane.xlu1 %2055 }
 0x543   : > { %v2066_v35 = vadd.f32 %v2056_v31, %v2050_v30 }
 0x545   : > { %2071 = vst.msk [vmem:[#allocation4] sm:$0xff] %vm1417_vm0, %v2066_v35 }
 0x546   : > { %v2062_v39 = vpop.xlane.xlu1 %2061 }
 0x547   : > { %v2068_v41 = vadd.f32 %v2062_v39, %v2052_v38 }
 0x549   : > { %2073 = vst.msk [vmem:[#allocation4 + $0x10] sm:$0xff] %vm1417_vm0, %v2068_v41 }
 0x54a   : > { %v2059_v43 = vpop.xlane.xlu0 %2058 }
 0x54b   : > { %v2067_v45 = vadd.f32 %v2059_v43, %v2051_v42 }
 0x54c   : > { %v2175_v10 = vld [vmem:[#allocation4] sm:$0xff] }
 0x54d   : > { %2072 = vst.msk [vmem:[#allocation4 + $0x8] sm:$0xff] %vm1417_vm0, %v2067_v45  ;;  %2954 = vrcp.f32 %v2175_v10 }
 0x54e   : > { %v2065_v48 = vpop.xlane.xlu1 %2064 }
 0x54f   : > { %v2069_v19 = vadd.f32 %v2065_v48, %v2053_v9 }
 0x550   : > { %v2177_v18 = vld [vmem:[#allocation4 + $0x10] sm:$0xff] }
 0x551   : > { %2074 = vst.msk [vmem:[#allocation4 + $0x18] sm:$0xff] %vm1417_vm0, %v2069_v19  ;;  %2956 = vrcp.f32 %v2177_v18 }
 0x552   : > { %v2082_v32 = vpop.permute.xlu1 %2081  ;;  %v2087_v22 = vpop.permute.xlu0 %2086 }
 0x553   : > { %v2099_v62 = vmul.f32 0.0, %v2082_v32  ;;  %v2100_v63 = vmul.f32 0.0, %v2087_v22 }
 0x554   : > { %v2176_v51 = vld [vmem:[#allocation4 + $0x8] sm:$0xff] }
 0x555   : > { %2958 = vrcp.f32 %v2176_v51 }
 0x556   : > { %v2092_v60 = vpop.permute.xlu1 %2091 }
 0x557   : > { %v2955_v52 = vpop.eup %2954  ;;  %v2101_v3 = vmul.f32 0.0, %v2092_v60 }
 0x558   : > { %2189 = vperm.xlu1 %2873, %v2955_v52   ;;  %v2178_v53 = vld [vmem:[#allocation4 + $0x18] sm:$0xff] }
 0x559   : > { %2960 = vrcp.f32 %v2178_v53 }
 0x55a   : > { %v2097_v23 = vpop.permute.xlu1 %2096 }
 0x55b   : > { %v2957_v54 = vpop.eup %2956  ;;  %v2102_v4 = vmul.f32 0.0, %v2097_v23 }
 0x55c   : > { %2199 = vperm.xlu1 %2873, %v2957_v54  }
 0x55f   : > { %v2959_v55 = vpop.eup %2958 }
 0x560   : > { %2194 = vperm.xlu0 %2872, %v2959_v55  }
 0x563   : > { %v2961_v56 = vpop.eup %2960 }
 0x564   : > { %2204 = vperm.xlu0 %2872, %v2961_v56  }
 0x595   : > { %v2763_v57 = vpop.f32.mrb[12].mxu1 }
 0x596   : > { %v2145_v58 = vpop.f32.mrb[13].mxu1  ;;  %v2162_v46 = vadd.f32 %v2763_v57, %v2101_v3 }
 0x597   : > { %v2764_v33 = vpop.f32.mrb[14].mxu1  ;;  %v2160_v0 = vadd.f32 %v2145_v58, %v2099_v62 }
 0x598   : > { %v2148_v59 = vpop.f32.mrb[15].mxu1  ;;  %v2163_v13 = vadd.f32 %v2764_v33, %v2102_v4 }
 0x599   : > { %v2161_v1 = vadd.f32 %v2148_v59, %v2100_v63 }
 0x5d7   : > { %v2190_v61 = vpop.permute.xlu1 %2189 }
 0x5d8   : > { %v2207_v5 = vmul.f32 %v2190_v61, %v2160_v0 }
 0x5db   : > { %v2200_v47 = vpop.permute.xlu1 %2199 }
 0x5dc   : > { %v2209_v14 = vmul.f32 %v2200_v47, %v2162_v46 }
 0x5df   : > { %v2195_v2 = vpop.permute.xlu0 %2194 }
 0x5e0   : > { %v2208_v8 = vmul.f32 %v2195_v2, %v2161_v1 }
 0x5e2   : > { %v2649_v37 = vpack.c.bf16 %v2208_v8, %v2207_v5  ;;  %2237 = sbr.rel (!%p3255_p1) target bundleno = 1521 (0x5f1), region = 199 }
 0x5e3   : > { %v2205_v36 = vpop.permute.xlu0 %2204 }
 0x5e4   : > { %2650 = vst [vmem:[%s1061_s16] sm:$0xff] %v2649_v37   ;;  %v2210_v15 = vmul.f32 %v2205_v36, %v2163_v13 }
 0x5e6   : > { %v2654_v20 = vpack.c.bf16 %v2210_v15, %v2209_v14 }
 0x5e8   : > { %2656 = vst [vmem:[%s1061_s16 + $0x8] sm:$0xff] %v2654_v20  }
 0x5eb   : > { %v2260_v12 = vld [vmem:[%s1061_s16] sm:$0xf]  ;;  %v2262_v11 = vld [vmem:[%s1061_s16 + $0x4] sm:$0xf] }
 0x5ec   : > { %2261 = vst [vmem:[%s2244_s21] sm:$0xf] %v2260_v12  ;;  %2263 = vst [vmem:[%s2244_s21 + $0x8] sm:$0xf] %v2262_v11 }
 0x5ef   : > { %v2264_v50 = vld [vmem:[%s1061_s16 + $0x8] sm:$0xf]  ;;  %v2266_v21 = vld [vmem:[%s1061_s16 + $0xc] sm:$0xf] }
 0x5f0   : > { %2265 = vst [vmem:[%s2244_s21 + $0x10] sm:$0xf] %v2264_v50  ;;  %2267 = vst [vmem:[%s2244_s21 + $0x18] sm:$0xf] %v2266_v21 }
 0x5f1 PF: > { %s21_s29 = sadd.s32 1, %s3064_s29   ;;  %s3840_s3 = sld [smem:[#allocation13_spill]] }
 0x5f2   : > { %p3747_p10 = scmp.ge.s32.totalorder %s21_s29, 6   ;;  %s3842_s17 = smov %s3020_s18 }
 0x5f3   : > { %s3843_s18 = smov %s3253_s9  ;;  %s3844_s19 = smov %s3028_s20 }
 0x5f4   : > { %s3845_s20 = smov %s3240_s23  ;;  %s3846_s21 = smov %s3036_s22 }
 0x5f5   : > { %s3847_s22 = smov %s3231_s14  ;;  %s3848_s23 = smov %s3044_s24 }
 0x5f6   : > { %s3850_s25 = smov %s3056_s27  ;;  %s3851_s26 = smov %s3060_s28 }
 0x5f7   : > { %s3849_s24 = smov %s3840_s3  ;;  %s3852_s27 = smov %s3855_s12 }
 0x5f8   : > { %s3853_s28 = smov %s3859_s13  ;;  %20 = sbr.rel (!%p3747_p10) target bundleno = 17 (0x11), region = 305 }

// kernel: register_vit_forward.19
= control target key start
LH: loop header
LB: loop body
LE: loop exit
PB: predicated region body
PF: predicated region fallthrough
CT: control target
= control target key end

     0   :  { %s449_s12 = smov 0   ;;  %s489_s0 = inlined_call_operand.vmem [shape: bf16[64,256], index: 0, kind: input, shape index: {}]   ;;  %s490_s1 = inlined_call_operand.vmem [shape: f32[1,256], index: 1, kind: input, shape index: {}]   ;;  %s491_s2 = inlined_call_operand.vmem [shape: f32[1,256], index: 2, kind: input, shape index: {}]   ;;  %s492_s3 = inlined_call_operand.vmem [shape: bf16[64,256], index: 3, kind: output, shape index: {}]  }
   0x1 LB: > { %s382_s13 = sadd.s32 4294967295, %s427_s12   ;;  %p386_p0 = scmp.ge.s32.totalorder %s427_s12, 1  ;;  %s427_s12 = sphi %s449_s12, %s13_s12  }
   0x2   : > { %p139_p1 = scmp.lt.s32.totalorder %s427_s12, 3 }
   0x4   : > { %p140_p2 = pnand %p386_p0, %p139_p1 }
   0x5   : > { %s387_s14 = sshll.u32 (!%p140_p2), %s382_s13, 2  ;;  %v258_v46 = vlaneseq (!%p140_p2)  ;;  %v256_v60 = vld [vmem:[%s490_s1] sm:$0x3] (!%p140_p2) }
   0x6   : > { %143 = sbr.rel (%p140_p2) target bundleno = 345 (0x159), region = 32  ;;  %p166_p3 = scmp.lt.s32.totalorder (!%p140_p2), %s387_s14, 7  ;;  %v276_v61 = vld [vmem:[%s491_s2] sm:$0x3] (!%p140_p2) }
   0x7   : > { %v259_v52 = vshrl.u32 (!%p140_p2), %v258_v46, 7 }
   0x9   : > { %v260_v57 = vsub.s32 (!%p140_p2), 0, %v259_v52  ;;  %v264_v58 = vsub.s32 (!%p140_p2), 1, %v259_v52 }
   0xb   : > { %v261_v62 = vrot.slane (!%p140_p2), %v256_v60, %v260_v57  ;;  %v265_v63 = vrot.slane (!%p140_p2), %v256_v60, %v264_v58 }
   0xd   : > { %s494_s14 = smov (!%p166_p3, %s387_s14), 7 }
   0xe   : > { %s399_s15 = sshll.u32 %s494_s14, 3 }
   0xf   : > { %s170_s18 = scalar_lea.vmem %s489_s0, %s399_s15  ;;  %s177_s25 = scalar_lea.vmem %s492_s3, %s399_s15 }
  0x10   : > { %v179_v0 = vld [vmem:[%s170_s18] sm:$0xff]  ;;  %v181_v1 = vld [vmem:[%s170_s18 + $0x10] sm:$0xff]  ;;  %v180_v2 = vld [vmem:[%s170_s18 + $0x8] sm:$0xff] }
  0x11   : > { %v183_v3 = vunpack.c.l.bf16 %v179_v0  ;;  %v184_v4 = vunpack.c.h.bf16 %v179_v0  ;;  %v187_v5 = vunpack.c.l.bf16 %v181_v1  ;;  %v188_v6 = vunpack.c.h.bf16 %v181_v1  ;;  %v182_v7 = vld [vmem:[%s170_s18 + $0x18] sm:$0xff] }
  0x12   : > { %v185_v8 = vunpack.c.l.bf16 %v180_v2  ;;  %v186_v9 = vunpack.c.h.bf16 %v180_v2  ;;  %v189_v10 = vunpack.c.l.bf16 %v182_v7  ;;  %v190_v11 = vunpack.c.h.bf16 %v182_v7 }
  0x13   : > { %v191_v12 = vadd.f32 %v184_v4, %v183_v3  ;;  %v197_v13 = vadd.f32 %v188_v6, %v187_v5  ;;  %v281_v1 = vrot.slane %v276_v61, %v260_v57  ;;  %v285_v2 = vrot.slane %v276_v61, %v264_v58 }
  0x14   : > { %v194_v14 = vadd.f32 %v186_v9, %v185_v8  ;;  %v200_v15 = vadd.f32 %v190_v11, %v189_v10 }
  0x15   : > { %192 = vadd.xlane.f32.xlu0 %v191_v12  ;;  %198 = vadd.xlane.f32.xlu1 %v197_v13 }
  0x19   : > { %195 = vadd.xlane.f32.xlu0 %v194_v14  ;;  %201 = vadd.xlane.f32.xlu1 %v200_v15 }
  0xa2   : > { %v193_v16 = vpop.xlane.xlu0 %192  ;;  %v199_v17 = vpop.xlane.xlu1 %198 }
  0xa3   : > { %v204_v18 = vmul.f32 0.00390625, %v193_v16  ;;  %v206_v19 = vmul.f32 0.00390625, %v199_v17 }
  0xa5   : > { %v208_v20 = vsub.f32 %v183_v3, %v204_v18  ;;  %v209_v21 = vsub.f32 %v184_v4, %v204_v18  ;;  %v465_v22 = vsub.f32 %v187_v5, %v206_v19  ;;  %v467_v23 = vsub.f32 %v188_v6, %v206_v19 }
  0xa6   : > { %v196_v24 = vpop.xlane.xlu0 %195  ;;  %v202_v25 = vpop.xlane.xlu1 %201 }
  0xa7   : > { %v205_v26 = vmul.f32 0.00390625, %v196_v24  ;;  %v207_v27 = vmul.f32 0.00390625, %v202_v25  ;;  %v216_v28 = vmul.f32 %v208_v20, %v208_v20  ;;  %v217_v29 = vmul.f32 %v209_v21, %v209_v21 }
  0xa8   : > { %v220_v30 = vmul.f32 %v465_v22, %v465_v22  ;;  %v221_v31 = vmul.f32 %v467_v23, %v467_v23 }
  0xa9   : > { %v210_v32 = vsub.f32 %v185_v8, %v205_v26  ;;  %v211_v33 = vsub.f32 %v186_v9, %v205_v26  ;;  %v214_v34 = vsub.f32 %v189_v10, %v207_v27  ;;  %v215_v35 = vsub.f32 %v190_v11, %v207_v27 }
  0xaa   : > { %v224_v36 = vadd.f32 %v217_v29, %v216_v28  ;;  %v230_v41 = vadd.f32 %v221_v31, %v220_v30 }
  0xab   : > { %v218_v37 = vmul.f32 %v210_v32, %v210_v32  ;;  %v219_v38 = vmul.f32 %v211_v33, %v211_v33  ;;  %v222_v39 = vmul.f32 %v214_v34, %v214_v34  ;;  %v223_v40 = vmul.f32 %v215_v35, %v215_v35 }
  0xac   : > { %225 = vadd.xlane.f32.xlu0 %v224_v36 }
  0xad   : > { %v227_v42 = vadd.f32 %v219_v38, %v218_v37  ;;  %v233_v43 = vadd.f32 %v223_v40, %v222_v39 }
  0xaf   : > { %228 = vadd.xlane.f32.xlu1 %v227_v42 }
  0xb0   : > { %231 = vadd.xlane.f32.xlu0 %v230_v41 }
  0xb3   : > { %234 = vadd.xlane.f32.xlu1 %v233_v43 }
 0x139   : > { %v226_v44 = vpop.xlane.xlu0 %225 }
 0x13a   : > { %v236_v45 = vmul.f32 0.00390625, %v226_v44 }
 0x13c   : > { %v240_v47 = vadd.f32 1e-06, %v236_v45  ;;  %v229_v48 = vpop.xlane.xlu1 %228 }
 0x13d   : > { %v237_v49 = vmul.f32 0.00390625, %v229_v48  ;;  %v232_v50 = vpop.xlane.xlu0 %231 }
 0x13e   : > { %413 = vrsqrt.f32 %v240_v47  ;;  %v238_v51 = vmul.f32 0.00390625, %v232_v50 }
 0x13f   : > { %v241_v53 = vadd.f32 1e-06, %v237_v49 }
 0x140   : > { %v242_v54 = vadd.f32 1e-06, %v238_v51  ;;  %v235_v55 = vpop.xlane.xlu1 %234 }
 0x141   : > { %415 = vrsqrt.f32 %v241_v53  ;;  %v239_v56 = vmul.f32 0.00390625, %v235_v55 }
 0x142   : > { %417 = vrsqrt.f32 %v242_v54 }
 0x143   : > { %v243_v59 = vadd.f32 1e-06, %v239_v56 }
 0x145   : > { %419 = vrsqrt.f32 %v243_v59 }
 0x148   : > { %v414_v0 = vpop.eup %413 }
 0x149   : > { %v248_v3 = vmul.f32 %v414_v0, %v208_v20  ;;  %v249_v4 = vmul.f32 %v414_v0, %v209_v21 }
 0x14b   : > { %v416_v5 = vpop.eup %415  ;;  %v268_v6 = vmul.f32 %v261_v62, %v248_v3  ;;  %v269_v7 = vmul.f32 %v265_v63, %v249_v4 }
 0x14c   : > { %v418_v8 = vpop.eup %417  ;;  %v250_v9 = vmul.f32 %v416_v5, %v210_v32  ;;  %v251_v10 = vmul.f32 %v416_v5, %v211_v33 }
 0x14d   : > { %v288_v11 = vadd.f32 %v281_v1, %v268_v6  ;;  %v289_v12 = vadd.f32 %v285_v2, %v269_v7  ;;  %v252_v13 = vmul.f32 %v418_v8, %v465_v22  ;;  %v253_v14 = vmul.f32 %v418_v8, %v467_v23 }
 0x14e   : > { %v270_v15 = vmul.f32 %v261_v62, %v250_v9  ;;  %v271_v16 = vmul.f32 %v265_v63, %v251_v10 }
 0x14f   : > { %v420_v17 = vpop.eup %419  ;;  %v401_v18 = vpack.c.bf16 %v289_v12, %v288_v11  ;;  %v272_v19 = vmul.f32 %v261_v62, %v252_v13  ;;  %v273_v20 = vmul.f32 %v265_v63, %v253_v14 }
 0x150   : > { %v290_v21 = vadd.f32 %v281_v1, %v270_v15  ;;  %v291_v24 = vadd.f32 %v285_v2, %v271_v16  ;;  %v254_v25 = vmul.f32 %v420_v17, %v214_v34  ;;  %v255_v26 = vmul.f32 %v420_v17, %v215_v35 }
 0x151   : > { %320 = vst [vmem:[%s177_s25] sm:$0xff] %v401_v18  ;;  %v292_v27 = vadd.f32 %v281_v1, %v272_v19  ;;  %v293_v22 = vadd.f32 %v285_v2, %v273_v20 }
 0x152   : > { %v402_v28 = vpack.c.bf16 %v291_v24, %v290_v21  ;;  %v274_v23 = vmul.f32 %v261_v62, %v254_v25  ;;  %v275_v29 = vmul.f32 %v265_v63, %v255_v26 }
 0x153   : > { %v403_v30 = vpack.c.bf16 %v293_v22, %v292_v27 }
 0x154   : > { %321 = vst [vmem:[%s177_s25 + $0x8] sm:$0xff] %v402_v28  ;;  %v294_v31 = vadd.f32 %v281_v1, %v274_v23  ;;  %v295_v32 = vadd.f32 %v285_v2, %v275_v29 }
 0x155   : > { %322 = vst [vmem:[%s177_s25 + $0x10] sm:$0xff] %v403_v30 }
 0x156   : > { %v404_v33 = vpack.c.bf16 %v295_v32, %v294_v31 }
 0x158   : > { %323 = vst [vmem:[%s177_s25 + $0x18] sm:$0xff] %v404_v33 }
 0x159 PF: > { %s13_s12 = sadd.s32 1, %s427_s12  }
 0x15a   : > { %p10_p4 = scmp.ge.s32.totalorder %s13_s12, 4  }
 0x15c   :  { %12 = sbr.rel (!%p10_p4) target bundleno = 1 (0x1), region = 62 }

// kernel: register_vit_forward.13
= control target key start
LH: loop header
LB: loop body
LE: loop exit
PB: predicated region body
PF: predicated region fallthrough
CT: control target
= control target key end

     0   :  { %s2919_s18 = smov 0   ;;  %s2921_s19 = smov 0   ;;  %s4284_s0 = inlined_call_operand.vmem [shape: bf16[64,256], index: 0, kind: input, shape index: {}]   ;;  %s4285_s1 = inlined_call_operand.vmem [shape: f32[1,256], index: 1, kind: input, shape index: {}]   ;;  %s4286_s2 = inlined_call_operand.vmem [shape: f32[1,256], index: 2, kind: input, shape index: {}]   ;;  %s4287_s3 = inlined_call_operand.vmem [shape: bf16[256,1024], index: 3, kind: input, shape index: {}]   ;;  %s4288_s4 = inlined_call_operand.vmem [shape: f32[1,1024], index: 4, kind: input, shape index: {}]   ;;  %s4289_s5 = inlined_call_operand.vmem [shape: bf16[64,1024], index: 5, kind: output, shape index: {}]  }
   0x1   :  { %s2923_s20 = smov 0  }
   0x2 LB: > { %s27_s21 = sadd.s32 1, %s2883_s19  ;;  %p2533_p0 = scmp.ge.s32.totalorder %s2887_s20, 1  ;;  %s2887_s20 = sphi %s2923_s20, %s15_s20   ;;  %s2883_s19 = sphi %s2921_s19, %s4301_s19   ;;  %s2879_s18 = sphi %s2919_s18, %s4300_s18  }
   0x3   : > { %p29_p1 = scmp.ge.s32.totalorder %s27_s21, 2  ;;  %p224_p2 = scmp.lt.s32.totalorder %s2887_s20, 3 }
   0x5   : > { %s4303_s21 = smov (%p29_p1, %s27_s21), 0  ;;  %p225_p3 = pnand %p2533_p0, %p224_p2 }
   0x7   : > { %228 = sbr.rel (%p225_p3) target bundleno = 801 (0x321), region = 40 }
   0xe   : > { %s2534_s22 = sshll.u32 %s2879_s18, 2  ;;  %v418_v16 = vld [vmem:[%s4287_s3] sm:$0xff]  ;;  %v419_v18 = vld [vmem:[%s4287_s3 + $0x8] sm:$0xff] }
   0xf   : > { %p268_p4 = scmp.lt.s32.totalorder %s2534_s22, 7  ;;  %v422_v17 = vld [vmem:[%s4287_s3 + $0x20] sm:$0xff]  ;;  %v423_v20 = vld [vmem:[%s4287_s3 + $0x28] sm:$0xff] }
  0x10   : > { %v2541_v19 = vcombine.high %v418_v16, %v422_v17  ;;  %v2540_v21 = vcombine.low %v418_v16, %v422_v17  ;;  %v426_v22 = vld [vmem:[%s4287_s3 + $0x40] sm:$0xff]  ;;  %v2543_v24 = vcombine.high %v419_v18, %v423_v20  ;;  %v2542_v25 = vcombine.low %v419_v18, %v423_v20  ;;  %v427_v27 = vld [vmem:[%s4287_s3 + $0x48] sm:$0xff] }
  0x11   : > { %s4305_s22 = smov (!%p268_p4, %s2534_s22), 7  ;;  %v430_v23 = vld [vmem:[%s4287_s3 + $0x60] sm:$0xff]  ;;  %v431_v28 = vld [vmem:[%s4287_s3 + $0x68] sm:$0xff] }
  0x12   : > { %s2686_s23 = sshll.u32 %s4305_s22, 3  ;;  %v2549_v26 = vcombine.high %v426_v22, %v430_v23  ;;  %v434_v29 = vld [vmem:[%s4287_s3 + $0x80] sm:$0xff]  ;;  %1228 = vmatprep.subr.bf16.mxu0 %v2541_v19  ;;  %v2551_v30 = vcombine.high %v427_v27, %v431_v28  ;;  %v435_v32 = vld [vmem:[%s4287_s3 + $0x88] sm:$0xff]  ;;  %1281 = vmatprep.subr.bf16.mxu1 %v2543_v24  ;;  %v2548_v34 = vcombine.low %v426_v22, %v430_v23  ;;  %s2687_s12 = sshll.u32 %s4305_s22, 5 }
  0x13   : > { %s272_s26 = scalar_lea.vmem %s4284_s0, %s2686_s23  ;;  %v438_v31 = vld [vmem:[%s4287_s3 + $0xa0] sm:$0xff]  ;;  %v439_v33 = vld [vmem:[%s4287_s3 + $0xa8] sm:$0xff]  ;;  %1229 = vmatpush1.bf16.msra.mxu0 %v2540_v21  ;;  %1282 = vmatpush1.bf16.msra.mxu1 %v2542_v25  ;;  %v2550_v35 = vcombine.low %v427_v27, %v431_v28  ;;  %s3711_s14 = scalar_lea.vmem %s4289_s5, %s2687_s12 }
  0x14   : > { %v2943_v0 = vld [vmem:[%s272_s26] sm:$0xff]  ;;  %v2945_v1 = vld [vmem:[%s272_s26 + $0x10] sm:$0xff]  ;;  %v2947_v2 = vld [vmem:[%s272_s26 + $0x8] sm:$0xff]  ;;  %1230 = vmatprep.subr.bf16.mxu0 %v2549_v26  ;;  %v2557_v36 = vcombine.high %v434_v29, %v438_v31  ;;  %1283 = vmatprep.subr.bf16.mxu1 %v2551_v30  ;;  %v2559_v37 = vcombine.high %v435_v32, %v439_v33  ;;  %v2556_v42 = vcombine.low %v434_v29, %v438_v31 }
  0x15   : > { %v301_v3 = vunpack.c.l.bf16 %v2943_v0  ;;  %v302_v4 = vunpack.c.h.bf16 %v2943_v0  ;;  %v305_v5 = vunpack.c.l.bf16 %v2945_v1  ;;  %v306_v6 = vunpack.c.h.bf16 %v2945_v1  ;;  %v2953_v7 = vld [vmem:[%s272_s26 + $0x18] sm:$0xff]  ;;  %v442_v38 = vld [vmem:[%s4287_s3 + $0xc0] sm:$0xff]  ;;  %v443_v40 = vld [vmem:[%s4287_s3 + $0xc8] sm:$0xff] }
  0x16   : > { %v303_v8 = vunpack.c.l.bf16 %v2947_v2  ;;  %v304_v9 = vunpack.c.h.bf16 %v2947_v2  ;;  %v307_v10 = vunpack.c.l.bf16 %v2953_v7  ;;  %v308_v11 = vunpack.c.h.bf16 %v2953_v7  ;;  %v446_v39 = vld [vmem:[%s4287_s3 + $0xe0] sm:$0xff]  ;;  %v447_v41 = vld [vmem:[%s4287_s3 + $0xe8] sm:$0xff] }
  0x17   : > { %v309_v12 = vadd.f32 %v302_v4, %v301_v3  ;;  %v315_v13 = vadd.f32 %v306_v6, %v305_v5  ;;  %1231 = vmatpush1.bf16.msra.mxu0 %v2548_v34  ;;  %1284 = vmatpush1.bf16.msra.mxu1 %v2550_v35  ;;  %v2558_v43 = vcombine.low %v435_v32, %v439_v33  ;;  %v450_v46 = vld [vmem:[%s4287_s3 + $0x100] sm:$0xff]  ;;  %v451_v48 = vld [vmem:[%s4287_s3 + $0x108] sm:$0xff] }
  0x18   : > { %v312_v14 = vadd.f32 %v304_v9, %v303_v8  ;;  %v318_v15 = vadd.f32 %v308_v11, %v307_v10  ;;  %1232 = vmatprep.subr.bf16.mxu0 %v2557_v36  ;;  %v2565_v44 = vcombine.high %v442_v38, %v446_v39  ;;  %1285 = vmatprep.subr.bf16.mxu1 %v2559_v37  ;;  %v454_v47 = vld [vmem:[%s4287_s3 + $0x120] sm:$0xff]  ;;  %v455_v49 = vld [vmem:[%s4287_s3 + $0x128] sm:$0xff] }
  0x19   : > { %310 = vadd.xlane.f32.xlu0 %v309_v12  ;;  %316 = vadd.xlane.f32.xlu1 %v315_v13  ;;  %v2567_v45 = vcombine.high %v443_v40, %v447_v41  ;;  %v2564_v50 = vcombine.low %v442_v38, %v446_v39  ;;  %v2566_v51 = vcombine.low %v443_v40, %v447_v41  ;;  %v458_v54 = vld [vmem:[%s4287_s3 + $0x140] sm:$0xff]  ;;  %v459_v56 = vld [vmem:[%s4287_s3 + $0x148] sm:$0xff] }
  0x1a   : > { %v2573_v52 = vcombine.high %v450_v46, %v454_v47  ;;  %v2575_v53 = vcombine.high %v451_v48, %v455_v49  ;;  %v462_v55 = vld [vmem:[%s4287_s3 + $0x160] sm:$0xff]  ;;  %v463_v57 = vld [vmem:[%s4287_s3 + $0x168] sm:$0xff]  ;;  %v2572_v58 = vcombine.low %v450_v46, %v454_v47  ;;  %v2574_v59 = vcombine.low %v451_v48, %v455_v49 }
  0x1b   : > { %1233 = vmatpush1.bf16.msra.mxu0 %v2556_v42  ;;  %1286 = vmatpush1.bf16.msra.mxu1 %v2558_v43  ;;  %v2581_v60 = vcombine.high %v458_v54, %v462_v55  ;;  %v2583_v61 = vcombine.high %v459_v56, %v463_v57  ;;  %v466_v62 = vld [vmem:[%s4287_s3 + $0x180] sm:$0xff]  ;;  %v467_v12 = vld [vmem:[%s4287_s3 + $0x188] sm:$0xff] }
  0x1c   : > { %1234 = vmatprep.subr.bf16.mxu0 %v2565_v44  ;;  %1287 = vmatprep.subr.bf16.mxu1 %v2567_v45  ;;  %v470_v63 = vld [vmem:[%s4287_s3 + $0x1a0] sm:$0xff]  ;;  %v471_v13 = vld [vmem:[%s4287_s3 + $0x1a8] sm:$0xff] }
  0x1d   : > { %313 = vadd.xlane.f32.xlu0 %v312_v14  ;;  %319 = vadd.xlane.f32.xlu1 %v318_v15  ;;  %v2580_v14 = vcombine.low %v458_v54, %v462_v55  ;;  %v2582_v15 = vcombine.low %v459_v56, %v463_v57  ;;  %v2589_v16 = vcombine.high %v466_v62, %v470_v63  ;;  %v474_v18 = vld [vmem:[%s4287_s3 + $0x1c0] sm:$0xff]  ;;  %v475_v20 = vld [vmem:[%s4287_s3 + $0x1c8] sm:$0xff] }
  0x1e   : > { %v2591_v17 = vcombine.high %v467_v12, %v471_v13  ;;  %v478_v19 = vld [vmem:[%s4287_s3 + $0x1e0] sm:$0xff]  ;;  %v479_v21 = vld [vmem:[%s4287_s3 + $0x1e8] sm:$0xff]  ;;  %v2588_v22 = vcombine.low %v466_v62, %v470_v63  ;;  %v2590_v23 = vcombine.low %v467_v12, %v471_v13 }
  0x1f   : > { %1235 = vmatpush1.bf16.msra.mxu0 %v2564_v50  ;;  %1288 = vmatpush1.bf16.msra.mxu1 %v2566_v51  ;;  %v2597_v24 = vcombine.high %v474_v18, %v478_v19  ;;  %v2599_v25 = vcombine.high %v475_v20, %v479_v21  ;;  %v482_v26 = vld [vmem:[%s4287_s3 + $0x200] sm:$0xff]  ;;  %v483_v28 = vld [vmem:[%s4287_s3 + $0x208] sm:$0xff]  ;;  %v2596_v30 = vcombine.low %v474_v18, %v478_v19 }
  0x20   : > { %1236 = vmatprep.subr.bf16.mxu0 %v2573_v52  ;;  %1289 = vmatprep.subr.bf16.mxu1 %v2575_v53  ;;  %v486_v27 = vld [vmem:[%s4287_s3 + $0x220] sm:$0xff]  ;;  %v487_v29 = vld [vmem:[%s4287_s3 + $0x228] sm:$0xff]  ;;  %v2598_v31 = vcombine.low %v475_v20, %v479_v21 }
  0x21   : > { %v2605_v32 = vcombine.high %v482_v26, %v486_v27  ;;  %v2607_v33 = vcombine.high %v483_v28, %v487_v29  ;;  %v490_v34 = vld [vmem:[%s4287_s3 + $0x240] sm:$0xff]  ;;  %v491_v36 = vld [vmem:[%s4287_s3 + $0x248] sm:$0xff]  ;;  %v2604_v38 = vcombine.low %v482_v26, %v486_v27  ;;  %v2606_v39 = vcombine.low %v483_v28, %v487_v29 }
  0x22   : > { %v494_v35 = vld [vmem:[%s4287_s3 + $0x260] sm:$0xff]  ;;  %v495_v37 = vld [vmem:[%s4287_s3 + $0x268] sm:$0xff] }
  0x23   : > { %1237 = vmatpush1.bf16.msra.mxu0 %v2572_v58  ;;  %1290 = vmatpush1.bf16.msra.mxu1 %v2574_v59  ;;  %v2613_v40 = vcombine.high %v490_v34, %v494_v35  ;;  %v2615_v41 = vcombine.high %v491_v36, %v495_v37  ;;  %v2614_v59 = vcombine.low %v491_v36, %v495_v37  ;;  %v499_v62 = vld [vmem:[%s4287_s3 + $0x288] sm:$0xff] }
  0x24   : > { %1238 = vmatprep.subr.bf16.mxu0 %v2581_v60  ;;  %1291 = vmatprep.subr.bf16.mxu1 %v2583_v61  ;;  %v498_v60 = vld [vmem:[%s4287_s3 + $0x280] sm:$0xff]  ;;  %v503_v12 = vld [vmem:[%s4287_s3 + $0x2a8] sm:$0xff] }
  0x25   : > { %v502_v61 = vld [vmem:[%s4287_s3 + $0x2a0] sm:$0xff]  ;;  %v2623_v13 = vcombine.high %v499_v62, %v503_v12  ;;  %v507_v18 = vld [vmem:[%s4287_s3 + $0x2c8] sm:$0xff] }
  0x26   : > { %v2621_v63 = vcombine.high %v498_v60, %v502_v61  ;;  %v511_v20 = vld [vmem:[%s4287_s3 + $0x2e8] sm:$0xff] }
  0x27   : > { %1239 = vmatpush1.bf16.msra.mxu0 %v2580_v14  ;;  %1292 = vmatpush1.bf16.msra.mxu1 %v2582_v15  ;;  %v2620_v14 = vcombine.low %v498_v60, %v502_v61  ;;  %v2622_v15 = vcombine.low %v499_v62, %v503_v12  ;;  %v2631_v21 = vcombine.high %v507_v18, %v511_v20  ;;  %v515_v26 = vld [vmem:[%s4287_s3 + $0x308] sm:$0xff]  ;;  %v376_v62 = vlaneseq }
  0x28   : > { %1240 = vmatprep.subr.bf16.mxu0 %v2589_v16  ;;  %1293 = vmatprep.subr.bf16.mxu1 %v2591_v17  ;;  %v506_v16 = vld [vmem:[%s4287_s3 + $0x2c0] sm:$0xff]  ;;  %v519_v28 = vld [vmem:[%s4287_s3 + $0x328] sm:$0xff] }
  0x29   : > { %v510_v17 = vld [vmem:[%s4287_s3 + $0x2e0] sm:$0xff]  ;;  %v2639_v29 = vcombine.high %v515_v26, %v519_v28  ;;  %v527_v36 = vld [vmem:[%s4287_s3 + $0x368] sm:$0xff] }
  0x2a   : > { %v2629_v19 = vcombine.high %v506_v16, %v510_v17 }
  0x2b   : > { %1241 = vmatpush1.bf16.msra.mxu0 %v2588_v22  ;;  %1294 = vmatpush1.bf16.msra.mxu1 %v2590_v23  ;;  %v2628_v22 = vcombine.low %v506_v16, %v510_v17  ;;  %v2630_v23 = vcombine.low %v507_v18, %v511_v20  ;;  %v3243_v17 = vshrl.u32 %v376_v62, 7 }
  0x2c   : > { %1242 = vmatprep.subr.bf16.mxu0 %v2597_v24  ;;  %1295 = vmatprep.subr.bf16.mxu1 %v2599_v25  ;;  %v514_v24 = vld [vmem:[%s4287_s3 + $0x300] sm:$0xff] }
  0x2d   : > { %v518_v25 = vld [vmem:[%s4287_s3 + $0x320] sm:$0xff]  ;;  %4294 = vst [vmem:[#allocation2_spill] sm:$0xff] %v3243_v17 }
  0x2e   : > { %v2637_v27 = vcombine.high %v514_v24, %v518_v25 }
  0x2f   : > { %1243 = vmatpush1.bf16.msra.mxu0 %v2596_v30  ;;  %1296 = vmatpush1.bf16.msra.mxu1 %v2598_v31  ;;  %v2636_v30 = vcombine.low %v514_v24, %v518_v25  ;;  %v2638_v31 = vcombine.low %v515_v26, %v519_v28  ;;  %v374_v24 = vld [vmem:[%s4285_s1] sm:$0x3] }
  0x30   : > { %1244 = vmatprep.subr.bf16.mxu0 %v2605_v32  ;;  %1297 = vmatprep.subr.bf16.mxu1 %v2607_v33  ;;  %v522_v32 = vld [vmem:[%s4287_s3 + $0x340] sm:$0xff] }
  0x31   : > { %v526_v33 = vld [vmem:[%s4287_s3 + $0x360] sm:$0xff] }
  0x32   : > { %v394_v28 = vld [vmem:[%s4286_s2] sm:$0x3] }
  0x33   : > { %1245 = vmatpush1.bf16.msra.mxu0 %v2604_v38  ;;  %1298 = vmatpush1.bf16.msra.mxu1 %v2606_v39  ;;  %v2644_v38 = vcombine.low %v522_v32, %v526_v33 }
  0x34   : > { %1246 = vmatprep.subr.bf16.mxu0 %v2613_v40  ;;  %1299 = vmatprep.subr.bf16.mxu1 %v2615_v41  ;;  %v530_v40 = vld [vmem:[%s4287_s3 + $0x380] sm:$0xff] }
  0x35   : > { %v534_v41 = vld [vmem:[%s4287_s3 + $0x3a0] sm:$0xff] }
  0x37   : > { %1300 = vmatpush1.bf16.msra.mxu1 %v2614_v59 }
  0x38   : > { %1301 = vmatprep.subr.bf16.mxu1 %v2623_v13 }
  0x3b   : > { %1302 = vmatpush1.bf16.msra.mxu1 %v2622_v15 }
  0x3c   : > { %1303 = vmatprep.subr.bf16.mxu1 %v2631_v21 }
  0x3f   : > { %1304 = vmatpush1.bf16.msra.mxu1 %v2630_v23  ;;  %v3249_v23 = vsub.s32 0, %v3243_v17 }
  0x40   : > { %1305 = vmatprep.subr.bf16.mxu1 %v2639_v29 }
  0x41   : > { %v379_v26 = vrot.slane %v374_v24, %v3249_v23 }
  0x43   : > { %1306 = vmatpush1.bf16.msra.mxu1 %v2638_v31 }
  0xa6   : > { %v311_v42 = vpop.xlane.xlu0 %310  ;;  %v317_v43 = vpop.xlane.xlu1 %316 }
  0xa7   : > { %v322_v44 = vmul.f32 0.00390625, %v311_v42  ;;  %v324_v45 = vmul.f32 0.00390625, %v317_v43  ;;  %v531_v42 = vld [vmem:[%s4287_s3 + $0x388] sm:$0xff]  ;;  %v2653_v43 = vcombine.high %v530_v40, %v534_v41 }
  0xa9   : > { %v3097_v46 = vsub.f32 %v301_v3, %v322_v44  ;;  %v3101_v47 = vsub.f32 %v302_v4, %v322_v44  ;;  %v3105_v48 = vsub.f32 %v305_v5, %v324_v45  ;;  %v3109_v49 = vsub.f32 %v306_v6, %v324_v45  ;;  %v535_v44 = vld [vmem:[%s4287_s3 + $0x3a8] sm:$0xff] }
  0xaa   : > { %v314_v50 = vpop.xlane.xlu0 %313  ;;  %v320_v51 = vpop.xlane.xlu1 %319  ;;  %v2655_v45 = vcombine.high %v531_v42, %v535_v44 }
  0xab   : > { %v323_v52 = vmul.f32 0.00390625, %v314_v50  ;;  %v325_v53 = vmul.f32 0.00390625, %v320_v51  ;;  %v334_v3 = vmul.f32 %v3097_v46, %v3097_v46  ;;  %v335_v0 = vmul.f32 %v3101_v47, %v3101_v47 }
  0xac   : > { %v338_v4 = vmul.f32 %v3105_v48, %v3105_v48  ;;  %v339_v5 = vmul.f32 %v3109_v49, %v3109_v49  ;;  %v2652_v50 = vcombine.low %v530_v40, %v534_v41  ;;  %v2654_v51 = vcombine.low %v531_v42, %v535_v44  ;;  %v428_v44 = vld [vmem:[%s4287_s3 + $0x50] sm:$0xff] }
  0xad   : > { %v3121_v1 = vsub.f32 %v303_v8, %v323_v52  ;;  %v3125_v6 = vsub.f32 %v304_v9, %v323_v52  ;;  %v3129_v54 = vsub.f32 %v307_v10, %v325_v53  ;;  %v3133_v55 = vsub.f32 %v308_v11, %v325_v53  ;;  %v538_v52 = vld [vmem:[%s4287_s3 + $0x3c0] sm:$0xff] }
  0xae   : > { %v342_v56 = vadd.f32 %v335_v0, %v334_v3  ;;  %v348_v10 = vadd.f32 %v339_v5, %v338_v4  ;;  %v2612_v11 = vcombine.low %v490_v34, %v494_v35  ;;  %v523_v34 = vld [vmem:[%s4287_s3 + $0x348] sm:$0xff]  ;;  %v2645_v35 = vcombine.high %v522_v32, %v526_v33  ;;  %v542_v53 = vld [vmem:[%s4287_s3 + $0x3e0] sm:$0xff] }
  0xaf   : > { %v336_v57 = vmul.f32 %v3121_v1, %v3121_v1  ;;  %v337_v8 = vmul.f32 %v3125_v6, %v3125_v6  ;;  %v340_v2 = vmul.f32 %v3129_v54, %v3129_v54  ;;  %v341_v9 = vmul.f32 %v3133_v55, %v3133_v55  ;;  %v539_v3 = vld [vmem:[%s4287_s3 + $0x3c8] sm:$0xff] }
  0xb0   : > { %343 = vadd.xlane.f32.xlu0 %v342_v56  ;;  %1247 = vmatpush1.bf16.msra.mxu0 %v2612_v11  ;;  %v2647_v37 = vcombine.high %v523_v34, %v527_v36  ;;  %v2646_v39 = vcombine.low %v523_v34, %v527_v36  ;;  %v2661_v0 = vcombine.high %v538_v52, %v542_v53  ;;  %v543_v4 = vld [vmem:[%s4287_s3 + $0x3e8] sm:$0xff] }
  0xb1   : > { %v345_v58 = vadd.f32 %v337_v8, %v336_v57  ;;  %v351_v7 = vadd.f32 %v341_v9, %v340_v2  ;;  %1248 = vmatprep.subr.bf16.mxu0 %v2621_v63  ;;  %v2663_v5 = vcombine.high %v539_v3, %v543_v4  ;;  %v2660_v56 = vcombine.low %v538_v52, %v542_v53  ;;  %v3218_v8 = vld [vmem:[%s4287_s3 + $0x10] sm:$0xff]  ;;  %v3228_v9 = vld [vmem:[%s4287_s3 + $0x18] sm:$0xff] }
  0xb2   : > { %1307 = vmatprep.subr.bf16.mxu1 %v2647_v37  ;;  %v2662_v57 = vcombine.low %v539_v3, %v543_v4  ;;  %v3223_v2 = vld [vmem:[%s4287_s3 + $0x30] sm:$0xff]  ;;  %v433_v52 = vld [vmem:[%s4287_s3 + $0x78] sm:$0xff] }
  0xb3   : > { %346 = vadd.xlane.f32.xlu1 %v345_v58  ;;  %1308 = vmatpush1.bf16.msra.mxu1 %v2646_v39  ;;  %v3235_v58 = vld [vmem:[%s4287_s3 + $0x38] sm:$0xff] }
  0xb4   : > { %349 = vadd.xlane.f32.xlu0 %v348_v10  ;;  %1249 = vmatpush1.bf16.msra.mxu0 %v2620_v14  ;;  %v2545_v10 = vcombine.high %v3218_v8, %v3223_v2  ;;  %v2546_v11 = vcombine.low %v3228_v9, %v3235_v58  ;;  %v2547_v59 = vcombine.high %v3228_v9, %v3235_v58  ;;  %v448_v9 = vld [vmem:[%s4287_s3 + $0xf0] sm:$0xff]  ;;  %v445_v58 = vld [vmem:[%s4287_s3 + $0xd8] sm:$0xff] }
  0xb5   : > { %1250 = vmatprep.subr.bf16.mxu0 %v2629_v19  ;;  %1309 = vmatprep.subr.bf16.mxu1 %v2655_v45 }
  0xb7   : > { %352 = vadd.xlane.f32.xlu1 %v351_v7  ;;  %1310 = vmatpush1.bf16.msra.mxu1 %v2654_v51  ;;  %v2544_v7 = vcombine.low %v3218_v8, %v3223_v2  ;;  %v444_v8 = vld [vmem:[%s4287_s3 + $0xd0] sm:$0xff] }
  0xb8   : > { %1251 = vmatpush1.bf16.msra.mxu0 %v2628_v22  ;;  %1311 = vmatprep.subr.bf16.mxu1 %v2663_v5  ;;  %v3246_v22 = vsub.s32 1, %v3243_v17  ;;  %v436_v5 = vld [vmem:[%s4287_s3 + $0x90] sm:$0xff] }
  0xb9   : > { %1252 = vmatprep.subr.bf16.mxu0 %v2637_v27 }
  0xba   : > { %v383_v25 = vrot.slane %v374_v24, %v3246_v22  ;;  %v403_v33 = vrot.slane %v394_v28, %v3246_v22  ;;  %v456_v24 = vld [vmem:[%s4287_s3 + $0x130] sm:$0xff] }
  0xbb   : > { %1312 = vmatpush1.bf16.msra.mxu1 %v2662_v57 }
  0xbc   : > { %1253 = vmatpush1.bf16.msra.mxu0 %v2636_v30  ;;  %1387 = vmatprep.subr.bf16.mxu1 %v2547_v59  ;;  %v440_v59 = vld [vmem:[%s4287_s3 + $0xb0] sm:$0xff] }
  0xbd   : > { %1254 = vmatprep.subr.bf16.mxu0 %v2645_v35  ;;  %v399_v35 = vrot.slane %v394_v28, %v3249_v23 }
  0xc0   : > { %1255 = vmatpush1.bf16.msra.mxu0 %v2644_v38 }
  0xc1   : > { %1256 = vmatprep.subr.bf16.mxu0 %v2653_v43 }
  0xc4   : > { %1257 = vmatpush1.bf16.msra.mxu0 %v2652_v50 }
  0xc5   : > { %1258 = vmatprep.subr.bf16.mxu0 %v2661_v0 }
  0xc8   : > { %1259 = vmatpush1.bf16.msra.mxu0 %v2660_v56 }
  0xc9   : > { %1334 = vmatprep.subr.bf16.mxu0 %v2545_v10 }
 0x13d   : > { %v344_v60 = vpop.xlane.xlu0 %343 }
 0x13e   : > { %v354_v61 = vmul.f32 0.00390625, %v344_v60  ;;  %v441_v60 = vld [vmem:[%s4287_s3 + $0xb8] sm:$0xff] }
 0x140   : > { %v358_v63 = vadd.f32 1e-06, %v354_v61  ;;  %v347_v12 = vpop.xlane.xlu1 %346 }
 0x141   : > { %v355_v13 = vmul.f32 0.00390625, %v347_v12  ;;  %v350_v14 = vpop.xlane.xlu0 %349 }
 0x142   : > { %2728 = vrsqrt.f32 %v358_v63  ;;  %v356_v15 = vmul.f32 0.00390625, %v350_v14 }
 0x143   : > { %v359_v16 = vadd.f32 1e-06, %v355_v13  ;;  %v2561_v13 = vcombine.high %v436_v5, %v440_v59 }
 0x144   : > { %v360_v18 = vadd.f32 1e-06, %v356_v15  ;;  %v353_v19 = vpop.xlane.xlu1 %352 }
 0x145   : > { %2730 = vrsqrt.f32 %v359_v16  ;;  %v357_v20 = vmul.f32 0.00390625, %v353_v19  ;;  %v452_v19 = vld [vmem:[%s4287_s3 + $0x110] sm:$0xff] }
 0x146   : > { %2732 = vrsqrt.f32 %v360_v18 }
 0x147   : > { %v361_v21 = vadd.f32 1e-06, %v357_v20  ;;  %v2569_v20 = vcombine.high %v444_v8, %v448_v9 }
 0x149   : > { %2734 = vrsqrt.f32 %v361_v21 }
 0x14c   : > { %v2729_v27 = vpop.eup %2728 }
 0x14d   : > { %v366_v29 = vmul.f32 %v2729_v27, %v3097_v46  ;;  %v367_v30 = vmul.f32 %v2729_v27, %v3101_v47  ;;  %v2568_v27 = vcombine.low %v444_v8, %v448_v9  ;;  %v504_v8 = vld [vmem:[%s4287_s3 + $0x2b0] sm:$0xff]  ;;  %v505_v9 = vld [vmem:[%s4287_s3 + $0x2b8] sm:$0xff] }
 0x14f   : > { %v2731_v31 = vpop.eup %2730  ;;  %v387_v32 = vmul.f32 %v383_v25, %v367_v30  ;;  %v386_v34 = vmul.f32 %v379_v26, %v366_v29  ;;  %v2577_v29 = vcombine.high %v452_v19, %v456_v24 }
 0x150   : > { %v2733_v36 = vpop.eup %2732  ;;  %v368_v37 = vmul.f32 %v2731_v31, %v3121_v1  ;;  %v369_v38 = vmul.f32 %v2731_v31, %v3125_v6  ;;  %v429_v6 = vld [vmem:[%s4287_s3 + $0x58] sm:$0xff]  ;;  %v460_v31 = vld [vmem:[%s4287_s3 + $0x150] sm:$0xff] }
 0x151   : > { %v371_v39 = vmul.f32 %v2733_v36, %v3109_v49  ;;  %v407_v46 = vadd.f32 %v403_v33, %v387_v32  ;;  %v406_v43 = vadd.f32 %v399_v35, %v386_v34  ;;  %v432_v49 = vld [vmem:[%s4287_s3 + $0x70] sm:$0xff]  ;;  %v370_v53 = vmul.f32 %v2733_v36, %v3105_v48  ;;  %v437_v48 = vld [vmem:[%s4287_s3 + $0x98] sm:$0xff] }
 0x152   : > { %v389_v40 = vmul.f32 %v383_v25, %v369_v38  ;;  %v388_v41 = vmul.f32 %v379_v26, %v368_v37  ;;  %v2553_v0 = vcombine.high %v428_v44, %v432_v49  ;;  %v2555_v4 = vcombine.high %v429_v6, %v433_v52  ;;  %v464_v32 = vld [vmem:[%s4287_s3 + $0x170] sm:$0xff]  ;;  %v465_v34 = vld [vmem:[%s4287_s3 + $0x178] sm:$0xff] }
 0x153   : > { %v2735_v42 = vpop.eup %2734  ;;  %v391_v47 = vmul.f32 %v383_v25, %v371_v39  ;;  %v390_v61 = vmul.f32 %v379_v26, %v370_v53  ;;  %v2552_v63 = vcombine.low %v428_v44, %v432_v49  ;;  %v2554_v12 = vcombine.low %v429_v6, %v433_v52  ;;  %v468_v39 = vld [vmem:[%s4287_s3 + $0x190] sm:$0xff] }
 0x154   : > { %v372_v45 = vmul.f32 %v2735_v42, %v3129_v54  ;;  %v373_v50 = vmul.f32 %v2735_v42, %v3133_v55  ;;  %v409_v51 = vadd.f32 %v403_v33, %v389_v40  ;;  %v408_v1 = vadd.f32 %v399_v35, %v388_v41  ;;  %v472_v40 = vld [vmem:[%s4287_s3 + $0x1b0] sm:$0xff]  ;;  %v469_v41 = vld [vmem:[%s4287_s3 + $0x198] sm:$0xff] }
 0x155   : > { %v411_v57 = vadd.f32 %v403_v33, %v391_v47  ;;  %v2563_v14 = vcombine.high %v437_v48, %v441_v60  ;;  %v410_v2 = vadd.f32 %v399_v35, %v390_v61  ;;  %v2562_v16 = vcombine.low %v437_v48, %v441_v60  ;;  %v473_v42 = vld [vmem:[%s4287_s3 + $0x1b8] sm:$0xff]  ;;  %v496_v48 = vld [vmem:[%s4287_s3 + $0x270] sm:$0xff] }
 0x156   : > { %v415_v3 = vpack.c.bf16 %v409_v51, %v407_v46  ;;  %v3281_v54 = vpack.c.bf16 %v408_v1, %v406_v43  ;;  %v393_v55 = vmul.f32 %v383_v25, %v373_v50  ;;  %v392_v56 = vmul.f32 %v379_v26, %v372_v45  ;;  %v453_v25 = vld [vmem:[%s4287_s3 + $0x118] sm:$0xff]  ;;  %v476_v45 = vld [vmem:[%s4287_s3 + $0x1d0] sm:$0xff] }
 0x157   : > { %v457_v26 = vld [vmem:[%s4287_s3 + $0x138] sm:$0xff]  ;;  %v2585_v37 = vcombine.high %v460_v31, %v464_v32  ;;  %v2584_v46 = vcombine.low %v460_v31, %v464_v32  ;;  %v2593_v47 = vcombine.high %v468_v39, %v472_v40  ;;  %v2595_v44 = vcombine.high %v469_v41, %v473_v42  ;;  %v480_v50 = vld [vmem:[%s4287_s3 + $0x1f0] sm:$0xff] }
 0x158   : > { %1260 = vmatprep.mubr.bf16.mxu0 %v415_v3  ;;  %1313 = vmatprep.mubr.bf16.mxu1 %v415_v3  ;;  %v413_v10 = vadd.f32 %v403_v33, %v393_v55  ;;  %v412_v15 = vadd.f32 %v399_v35, %v392_v56  ;;  %v2579_v30 = vcombine.high %v453_v25, %v457_v26  ;;  %v461_v33 = vld [vmem:[%s4287_s3 + $0x158] sm:$0xff]  ;;  %v488_v55 = vld [vmem:[%s4287_s3 + $0x230] sm:$0xff] }
 0x159   : > { %1261 = vmatmul.mubr.bf16.vlgmr.msra.gmra.mrb[0].mxu0 %v3281_v54  ;;  %1314 = vmatmul.mubr.bf16.vlgmr.msra.gmra.mrb[0].mxu1 %v3281_v54  ;;  %v2576_v35 = vcombine.low %v452_v19, %v456_v24  ;;  %v2578_v36 = vcombine.low %v453_v25, %v457_v26  ;;  %v2587_v38 = vcombine.high %v461_v33, %v465_v34  ;;  %v477_v51 = vld [vmem:[%s4287_s3 + $0x1d8] sm:$0xff]  ;;  %v508_v19 = vld [vmem:[%s4287_s3 + $0x2d0] sm:$0xff] }
 0x15a   : > { %1335 = vmatpush1.bf16.msra.mxu0 %v2544_v7  ;;  %1388 = vmatpush1.bf16.msra.mxu1 %v2546_v11  ;;  %v3303_v62 = vpack.c.bf16 %v413_v10, %v411_v57  ;;  %v449_v7 = vld [vmem:[%s4287_s3 + $0xf8] sm:$0xff]  ;;  %v2560_v11 = vcombine.low %v436_v5, %v440_v59  ;;  %v3319_v18 = vpack.c.bf16 %v412_v15, %v410_v2  ;;  %v492_v59 = vld [vmem:[%s4287_s3 + $0x250] sm:$0xff] }
 0x15b   : > { %1336 = vmatprep.subr.bf16.mxu0 %v2553_v0  ;;  %1389 = vmatprep.subr.bf16.mxu1 %v2555_v4  ;;  %v2571_v21 = vcombine.high %v445_v58, %v449_v7  ;;  %v2570_v28 = vcombine.low %v445_v58, %v449_v7  ;;  %v2586_v43 = vcombine.low %v461_v33, %v465_v34  ;;  %v481_v1 = vld [vmem:[%s4287_s3 + $0x1f8] sm:$0xff]  ;;  %v500_v15 = vld [vmem:[%s4287_s3 + $0x290] sm:$0xff] }
 0x15c   : > { %1270 = vmatprep.mubr.bf16.mxu0 %v3303_v62  ;;  %1323 = vmatprep.mubr.bf16.mxu1 %v3303_v62  ;;  %v2592_v49 = vcombine.low %v468_v39, %v472_v40  ;;  %v2594_v6 = vcombine.low %v469_v41, %v473_v42  ;;  %v2601_v52 = vcombine.high %v476_v45, %v480_v50  ;;  %v485_v0 = vld [vmem:[%s4287_s3 + $0x218] sm:$0xff] }
 0x15d   : > { %v2603_v53 = vcombine.high %v477_v51, %v481_v1  ;;  %v489_v4 = vld [vmem:[%s4287_s3 + $0x238] sm:$0xff]  ;;  %v2600_v5 = vcombine.low %v476_v45, %v480_v50  ;;  %v2602_v56 = vcombine.low %v477_v51, %v481_v1  ;;  %v2616_v58 = vcombine.low %v492_v59, %v496_v48 }
 0x15e   : > { %1337 = vmatpush1.bf16.msra.mxu0 %v2552_v63  ;;  %1390 = vmatpush1.bf16.msra.mxu1 %v2554_v12  ;;  %v2611_v10 = vcombine.high %v485_v0, %v489_v4  ;;  %v493_v60 = vld [vmem:[%s4287_s3 + $0x258] sm:$0xff]  ;;  %v2610_v12 = vcombine.low %v485_v0, %v489_v4  ;;  %v2624_v25 = vcombine.low %v500_v15, %v504_v8 }
 0x15f   : > { %1338 = vmatprep.subr.bf16.mxu0 %v2561_v13  ;;  %1391 = vmatprep.subr.bf16.mxu1 %v2563_v14  ;;  %v497_v61 = vld [vmem:[%s4287_s3 + $0x278] sm:$0xff]  ;;  %v2617_v13 = vcombine.high %v492_v59, %v496_v48  ;;  %v558_v59 = vsub.s32 2, %v3243_v17  ;;  %v3477_v48 = vld [vmem:[%s4288_s4] sm:$0xff] }
 0x160   : > { %v2619_v14 = vcombine.high %v493_v60, %v497_v61  ;;  %v501_v2 = vld [vmem:[%s4287_s3 + $0x298] sm:$0xff]  ;;  %v2618_v7 = vcombine.low %v493_v60, %v497_v61  ;;  %4295 = vst [vmem:[#allocation3_spill] sm:$0xff] %v3477_v48  ;;  %v562_v60 = vsub.s32 3, %v3243_v17 }
 0x161   : > { %1271 = vmatmul.mubr.bf16.gmra.mrb[4].mxu0 %v3319_v18  ;;  %1324 = vmatmul.mubr.bf16.gmra.mrb[4].mxu1 %v3319_v18  ;;  %v513_v24 = vld [vmem:[%s4287_s3 + $0x2f8] sm:$0xff]  ;;  %v2626_v26 = vcombine.low %v501_v2, %v505_v9  ;;  %v3485_v61 = vrot.slane %v3477_v48, %v558_v59 }
 0x162   : > { %1339 = vmatpush1.bf16.msra.mxu0 %v2560_v11  ;;  %1392 = vmatpush1.bf16.msra.mxu1 %v2562_v16  ;;  %v2625_v11 = vcombine.high %v500_v15, %v504_v8  ;;  %v2627_v16 = vcombine.high %v501_v2, %v505_v9  ;;  %v517_v31 = vld [vmem:[%s4287_s3 + $0x318] sm:$0xff] }
 0x163   : > { %1366 = vmatprep.mubr.bf16.mxu0 %v415_v3  ;;  %1419 = vmatprep.mubr.bf16.mxu1 %v415_v3  ;;  %v484_v3 = vld [vmem:[%s4287_s3 + $0x210] sm:$0xff]  ;;  %v521_v32 = vld [vmem:[%s4287_s3 + $0x338] sm:$0xff] }
 0x164   : > { %1340 = vmatprep.subr.bf16.mxu0 %v2569_v20  ;;  %1393 = vmatprep.subr.bf16.mxu1 %v2571_v21  ;;  %v2609_v57 = vcombine.high %v484_v3, %v488_v55  ;;  %v2608_v63 = vcombine.low %v484_v3, %v488_v55  ;;  %v512_v20 = vld [vmem:[%s4287_s3 + $0x2f0] sm:$0xff]  ;;  %v509_v21 = vld [vmem:[%s4287_s3 + $0x2d8] sm:$0xff]  ;;  %v2642_v42 = vcombine.low %v517_v31, %v521_v32 }
 0x165   : > { %v2632_v33 = vcombine.low %v508_v19, %v512_v20  ;;  %v2634_v34 = vcombine.low %v509_v21, %v513_v24  ;;  %v525_v39 = vld [vmem:[%s4287_s3 + $0x358] sm:$0xff] }
 0x166   : > { %1341 = vmatpush1.bf16.msra.mxu0 %v2568_v27  ;;  %1394 = vmatpush1.bf16.msra.mxu1 %v2570_v28  ;;  %v2633_v27 = vcombine.high %v508_v19, %v512_v20  ;;  %v2635_v28 = vcombine.high %v509_v21, %v513_v24  ;;  %v529_v40 = vld [vmem:[%s4287_s3 + $0x378] sm:$0xff] }
 0x167   : > { %1342 = vmatprep.subr.bf16.mxu0 %v2577_v29  ;;  %1395 = vmatprep.subr.bf16.mxu1 %v2579_v30  ;;  %v516_v29 = vld [vmem:[%s4287_s3 + $0x310] sm:$0xff]  ;;  %v533_v45 = vld [vmem:[%s4287_s3 + $0x398] sm:$0xff]  ;;  %v2650_v1 = vcombine.low %v525_v39, %v529_v40 }
 0x168   : > { %v520_v30 = vld [vmem:[%s4287_s3 + $0x330] sm:$0xff]  ;;  %v537_v50 = vld [vmem:[%s4287_s3 + $0x3b8] sm:$0xff] }
 0x169   : > { %v2640_v41 = vcombine.low %v516_v29, %v520_v30  ;;  %v541_v3 = vld [vmem:[%s4287_s3 + $0x3d8] sm:$0xff]  ;;  %v2658_v4 = vcombine.low %v533_v45, %v537_v50 }
 0x16a   : > { %1343 = vmatpush1.bf16.msra.mxu0 %v2576_v35  ;;  %1396 = vmatpush1.bf16.msra.mxu1 %v2578_v36  ;;  %v2641_v35 = vcombine.high %v516_v29, %v520_v30  ;;  %v2643_v36 = vcombine.high %v517_v31, %v521_v32  ;;  %v545_v55 = vld [vmem:[%s4287_s3 + $0x3f8] sm:$0xff] }
 0x16b   : > { %1344 = vmatprep.subr.bf16.mxu0 %v2585_v37  ;;  %1397 = vmatprep.subr.bf16.mxu1 %v2587_v38  ;;  %v524_v37 = vld [vmem:[%s4287_s3 + $0x350] sm:$0xff] }
 0x16c   : > { %v528_v38 = vld [vmem:[%s4287_s3 + $0x370] sm:$0xff] }
 0x16d   : > { %v2648_v51 = vcombine.low %v524_v37, %v528_v38 }
 0x16e   : > { %1345 = vmatpush1.bf16.msra.mxu0 %v2584_v46  ;;  %1398 = vmatpush1.bf16.msra.mxu1 %v2586_v43  ;;  %v2649_v46 = vcombine.high %v524_v37, %v528_v38  ;;  %v2651_v43 = vcombine.high %v525_v39, %v529_v40 }
 0x16f   : > { %1346 = vmatprep.subr.bf16.mxu0 %v2593_v47  ;;  %1399 = vmatprep.subr.bf16.mxu1 %v2595_v44  ;;  %v532_v47 = vld [vmem:[%s4287_s3 + $0x390] sm:$0xff] }
 0x170   : > { %v536_v44 = vld [vmem:[%s4287_s3 + $0x3b0] sm:$0xff] }
 0x171   : > { %v2656_v0 = vcombine.low %v532_v47, %v536_v44 }
 0x172   : > { %1347 = vmatpush1.bf16.msra.mxu0 %v2592_v49  ;;  %1400 = vmatpush1.bf16.msra.mxu1 %v2594_v6  ;;  %v2657_v49 = vcombine.high %v532_v47, %v536_v44  ;;  %v2659_v6 = vcombine.high %v533_v45, %v537_v50 }
 0x173   : > { %1348 = vmatprep.subr.bf16.mxu0 %v2601_v52  ;;  %1401 = vmatprep.subr.bf16.mxu1 %v2603_v53  ;;  %v540_v52 = vld [vmem:[%s4287_s3 + $0x3d0] sm:$0xff] }
 0x174   : > { %v544_v53 = vld [vmem:[%s4287_s3 + $0x3f0] sm:$0xff] }
 0x176   : > { %1349 = vmatpush1.bf16.msra.mxu0 %v2600_v5  ;;  %1402 = vmatpush1.bf16.msra.mxu1 %v2602_v56  ;;  %v2665_v5 = vcombine.high %v540_v52, %v544_v53  ;;  %v2667_v56 = vcombine.high %v541_v3, %v545_v55 }
 0x177   : > { %1350 = vmatprep.subr.bf16.mxu0 %v2609_v57  ;;  %1403 = vmatprep.subr.bf16.mxu1 %v2611_v10  ;;  %v2664_v57 = vcombine.low %v540_v52, %v544_v53  ;;  %v2666_v10 = vcombine.low %v541_v3, %v545_v55 }
 0x17a   : > { %1351 = vmatpush1.bf16.msra.mxu0 %v2608_v63  ;;  %1404 = vmatpush1.bf16.msra.mxu1 %v2610_v12 }
 0x17b   : > { %1352 = vmatprep.subr.bf16.mxu0 %v2617_v13  ;;  %1405 = vmatprep.subr.bf16.mxu1 %v2619_v14 }
 0x17e   : > { %1353 = vmatpush1.bf16.msra.mxu0 %v2616_v58  ;;  %1406 = vmatpush1.bf16.msra.mxu1 %v2618_v7 }
 0x17f   : > { %1354 = vmatprep.subr.bf16.mxu0 %v2625_v11  ;;  %1407 = vmatprep.subr.bf16.mxu1 %v2627_v16 }
 0x182   : > { %1355 = vmatpush1.bf16.msra.mxu0 %v2624_v25  ;;  %1408 = vmatpush1.bf16.msra.mxu1 %v2626_v26 }
 0x183   : > { %1356 = vmatprep.subr.bf16.mxu0 %v2633_v27  ;;  %1409 = vmatprep.subr.bf16.mxu1 %v2635_v28 }
 0x186   : > { %1357 = vmatpush1.bf16.msra.mxu0 %v2632_v33  ;;  %1410 = vmatpush1.bf16.msra.mxu1 %v2634_v34 }
 0x187   : > { %1358 = vmatprep.subr.bf16.mxu0 %v2641_v35  ;;  %1411 = vmatprep.subr.bf16.mxu1 %v2643_v36 }
 0x18a   : > { %1359 = vmatpush1.bf16.msra.mxu0 %v2640_v41  ;;  %1412 = vmatpush1.bf16.msra.mxu1 %v2642_v42 }
 0x18b   : > { %1360 = vmatprep.subr.bf16.mxu0 %v2649_v46  ;;  %1413 = vmatprep.subr.bf16.mxu1 %v2651_v43 }
 0x18e   : > { %1361 = vmatpush1.bf16.msra.mxu0 %v2648_v51  ;;  %1414 = vmatpush1.bf16.msra.mxu1 %v2650_v1 }
 0x18f   : > { %1362 = vmatprep.subr.bf16.mxu0 %v2657_v49  ;;  %1415 = vmatprep.subr.bf16.mxu1 %v2659_v6 }
 0x192   : > { %1363 = vmatpush1.bf16.msra.mxu0 %v2656_v0  ;;  %1416 = vmatpush1.bf16.msra.mxu1 %v2658_v4 }
 0x193   : > { %1364 = vmatprep.subr.bf16.mxu0 %v2665_v5  ;;  %1417 = vmatprep.subr.bf16.mxu1 %v2667_v56 }
 0x196   : > { %1365 = vmatpush1.bf16.msra.mxu0 %v2664_v57  ;;  %1418 = vmatpush1.bf16.msra.mxu1 %v2666_v10 }
 0x199   : > { %1367 = vmatmul.mubr.bf16.vlgmr.msra.gmra.mrb[8].mxu0 %v3281_v54  ;;  %1420 = vmatmul.mubr.bf16.vlgmr.msra.gmra.mrb[8].mxu1 %v3281_v54  ;;  %v3482_v54 = vrot.slane %v3477_v48, %v3249_v23 }
 0x19a   : > { %1376 = vmatprep.mubr.bf16.mxu0 %v3303_v62  ;;  %1429 = vmatprep.mubr.bf16.mxu1 %v3303_v62  ;;  %v3489_v62 = vrot.slane %v3477_v48, %v3246_v22 }
 0x1a1   : > { %1377 = vmatmul.mubr.bf16.gmra.mrb[12].mxu0 %v3319_v18  ;;  %1430 = vmatmul.mubr.bf16.gmra.mrb[12].mxu1 %v3319_v18  ;;  %v3492_v18 = vrot.slane %v3477_v48, %v562_v60 }
 0x22c   : > { %v1262_v63 = vpop.f32.mrb[0].mxu0  ;;  %v1315_v12 = vpop.f32.mrb[0].mxu1 }
 0x22d   : > { %v3495_v13 = vadd.f32 %v1262_v63, %v3482_v54  ;;  %v3498_v14 = vadd.f32 %v1315_v12, %v3485_v61  ;;  %v1264_v23 = vpop.f32.mrb[1].mxu0  ;;  %v1317_v15 = vpop.f32.mrb[1].mxu1 }
 0x22e   : > { %v3501_v8 = vadd.f32 %v1264_v23, %v3489_v62  ;;  %v3504_v2 = vadd.f32 %v1317_v15, %v3492_v18  ;;  %v1266_v22 = vpop.f32.mrb[2].mxu0  ;;  %v1319_v9 = vpop.f32.mrb[2].mxu1 }
 0x22f   : > { %v3507_v58 = vmul.f32 0.70710677, %v3495_v13  ;;  %v3510_v7 = vmul.f32 0.70710677, %v3498_v14  ;;  %v1268_v27 = vpop.f32.mrb[3].mxu0  ;;  %v1321_v30 = vpop.f32.mrb[3].mxu1  ;;  %v3534_v43 = vadd.f32 %v1266_v22, %v3482_v54  ;;  %v3542_v51 = vadd.f32 %v1319_v9, %v3485_v61 }
 0x230   : > { %v3513_v11 = vmul.f32 0.70710677, %v3501_v8  ;;  %v3516_v16 = vmul.f32 0.70710677, %v3504_v2  ;;  %v3545_v1 = vadd.f32 %v1268_v27, %v3489_v62  ;;  %v3567_v63 = vadd.f32 %v1321_v30, %v3492_v18 }
 0x231   : > { %v1504_v19 = vand.u32 2147483647, %v3507_v58  ;;  %v1952_v20 = vsub.f32 0.0, %v3507_v58  ;;  %v1506_v21 = vand.u32 2147483647, %v3510_v7  ;;  %v1954_v24 = vsub.f32 0.0, %v3510_v7 }
 0x232   : > { %v1505_v25 = vand.u32 2147483647, %v3513_v11  ;;  %v1953_v26 = vsub.f32 0.0, %v3513_v11  ;;  %v1507_v33 = vand.u32 2147483647, %v3516_v16  ;;  %v1955_v38 = vsub.f32 0.0, %v3516_v16 }
 0x233   : > { %v1536_v28 = vmul.f32 0.3275911, %v1504_v19  ;;  %v1538_v29 = vmul.f32 0.3275911, %v1506_v21  ;;  %v1984_v31 = vmul.f32 %v1952_v20, %v3507_v58  ;;  %v1986_v40 = vmul.f32 %v1954_v24, %v3510_v7 }
 0x234   : > { %v1537_v32 = vmul.f32 0.3275911, %v1505_v25  ;;  %v1272_v34 = vpop.f32.mrb[4].mxu0  ;;  %v3526_v35 = vpop.f32.mrb[4].mxu1  ;;  %v1985_v41 = vmul.f32 %v1953_v26, %v3513_v11  ;;  %v1539_v46 = vmul.f32 0.3275911, %v1507_v33  ;;  %v1987_v50 = vmul.f32 %v1955_v38, %v3516_v16 }
 0x235   : > { %v1568_v36 = vadd.f32 1.0, %v1536_v28  ;;  %v1570_v37 = vadd.f32 1.0, %v1538_v29  ;;  %v3529_v39 = vpop.f32.mrb[5].mxu0  ;;  %v3536_v47 = vpop.f32.mrb[5].mxu1  ;;  %v2016_v45 = vmul.f32 1.442695, %v1984_v31  ;;  %v3579_v28 = vadd.f32 %v1272_v34, %v3482_v54 }
 0x236   : > { %v1569_v42 = vadd.f32 1.0, %v1537_v32  ;;  %v3538_v44 = vpop.f32.mrb[6].mxu0  ;;  %v3547_v49 = vpop.f32.mrb[6].mxu1  ;;  %v1571_v52 = vadd.f32 1.0, %v1539_v46  ;;  %v2020_v3 = vmul.f32 1.442695, %v1986_v40 }
 0x237   : > { %2736 = vrcp.f32 %v1568_v36  ;;  %v3549_v6 = vpop.f32.mrb[7].mxu0  ;;  %v3551_v53 = vpop.f32.mrb[7].mxu1  ;;  %v3554_v55 = vmul.f32 0.70710677, %v3534_v43  ;;  %v3557_v0 = vmul.f32 0.70710677, %v3542_v51 }
 0x238   : > { %2738 = vrcp.f32 %v1570_v37  ;;  %4296 = vst [vmem:[#allocation4_spill] sm:$0xff] %v3551_v53  ;;  %v2018_v4 = vmul.f32 1.442695, %v1985_v41  ;;  %v3560_v5 = vmul.f32 0.70710677, %v3545_v1  ;;  %v3582_v29 = vmul.f32 0.5, %v3495_v13 }
 0x239   : > { %2740 = vrcp.f32 %v1569_v42  ;;  %v2022_v56 = vmul.f32 1.442695, %v1987_v50  ;;  %v1512_v57 = vand.u32 2147483647, %v3554_v55  ;;  %v1960_v10 = vsub.f32 0.0, %v3554_v55 }
 0x23a   : > { %2742 = vpow2.f32 %v2016_v45  ;;  %v1514_v59 = vand.u32 2147483647, %v3557_v0  ;;  %v1962_v60 = vsub.f32 0.0, %v3557_v0  ;;  %v1513_v15 = vand.u32 2147483647, %v3560_v5 }
 0x23b   : > { %2744 = vrcp.f32 %v1571_v52  ;;  %v1544_v12 = vmul.f32 0.3275911, %v1512_v57  ;;  %v1992_v23 = vmul.f32 %v1960_v10, %v3554_v55  ;;  %v1961_v19 = vsub.f32 0.0, %v3560_v5 }
 0x23c   : > { %2746 = vpow2.f32 %v2020_v3  ;;  %v1546_v22 = vmul.f32 0.3275911, %v1514_v59  ;;  %v1994_v9 = vmul.f32 %v1962_v60, %v3557_v0  ;;  %v1545_v21 = vmul.f32 0.3275911, %v1513_v15 }
 0x23d   : > { %2748 = vpow2.f32 %v2018_v4  ;;  %v1576_v20 = vadd.f32 1.0, %v1544_v12  ;;  %v2032_v25 = vmul.f32 1.442695, %v1992_v23  ;;  %v3576_v27 = vmul.f32 0.70710677, %v3567_v63 }
 0x23e   : > { %2750 = vpow2.f32 %v2022_v56  ;;  %v1578_v26 = vadd.f32 1.0, %v1546_v22  ;;  %v1577_v31 = vadd.f32 1.0, %v1545_v21  ;;  %v2036_v33 = vmul.f32 1.442695, %v1994_v9 }
 0x23f   : > { %2752 = vrcp.f32 %v1576_v20  ;;  %v1993_v36 = vmul.f32 %v1961_v19, %v3560_v5  ;;  %v1515_v37 = vand.u32 2147483647, %v3576_v27  ;;  %v1963_v38 = vsub.f32 0.0, %v3576_v27 }
 0x240   : > { %v3591_v34 = vmul.f32 0.5, %v3498_v14  ;;  %2754 = vrcp.f32 %v1578_v26  ;;  %v3598_v45 = vmul.f32 0.70710677, %v3579_v28  ;;  %vm2144_vm0 = vcmp.lt.f32.partialorder %v3507_v58, 0.0 }
 0x241   : > { %v3573_v24 = vpop.eup %2736  ;;  %2756 = vpow2.f32 %v2032_v25  ;;  %v1547_v42 = vmul.f32 0.3275911, %v1515_v37  ;;  %v1995_v46 = vmul.f32 %v1963_v38, %v3576_v27  ;;  %v2034_v56 = vmul.f32 1.442695, %v1993_v36 }
 0x242   : > { %v1664_v30 = vmul.f32 1.0614054, %v3573_v24  ;;  %v3585_v32 = vpop.eup %2738  ;;  %2758 = vrcp.f32 %v1577_v31  ;;  %v1520_v10 = vand.u32 2147483647, %v3598_v45  ;;  %v1968_v20 = vsub.f32 0.0, %v3598_v45 }
 0x243   : > { %v1666_v13 = vmul.f32 1.0614054, %v3585_v32  ;;  %v3594_v41 = vpop.eup %2740  ;;  %2760 = vpow2.f32 %v2036_v33  ;;  %v1579_v57 = vadd.f32 1.0, %v1547_v42  ;;  %v2038_v9 = vmul.f32 1.442695, %v1995_v46 }
 0x244   : > { %v1696_v40 = vadd.f32 -1.4531521, %v1664_v30  ;;  %v3600_v50 = vpop.eup %2742  ;;  %v1665_v14 = vmul.f32 1.0614054, %v3594_v41  ;;  %v1552_v19 = vmul.f32 0.3275911, %v1520_v10  ;;  %v3623_v37 = vadd.f32 %v3526_v35, %v3485_v61 }
 0x245   : > { %v1698_v3 = vadd.f32 -1.4531521, %v1666_v13  ;;  %v3604_v4 = vpop.eup %2744  ;;  %2762 = vrcp.f32 %v1579_v57  ;;  %v3619_v33 = vmul.f32 0.5, %v3501_v8  ;;  %vm2146_vm1 = vcmp.lt.f32.partialorder %v3510_v7, 0.0 }
 0x246   : > { %v1728_v52 = vmul.f32 %v3573_v24, %v1696_v40  ;;  %v3607_v59 = vpop.eup %2746  ;;  %v1697_v23 = vadd.f32 -1.4531521, %v1665_v14  ;;  %v1667_v15 = vmul.f32 1.0614054, %v3604_v4  ;;  %2764 = vpow2.f32 %v2034_v56 }
 0x247   : > { %v1730_v12 = vmul.f32 %v3585_v32, %v1698_v3  ;;  %v3611_v22 = vpop.eup %2748  ;;  %v1584_v36 = vadd.f32 1.0, %v1552_v19  ;;  %2766 = vpow2.f32 %v2038_v9  ;;  %v3634_v3 = vmul.f32 %v1968_v20, %v3598_v45 }
 0x248   : > { %v1760_v60 = vadd.f32 1.4214138, %v1728_v52  ;;  %v3614_v21 = vpop.eup %2750  ;;  %v1729_v30 = vmul.f32 %v3594_v41, %v1697_v23  ;;  %v1699_v31 = vadd.f32 -1.4531521, %v1667_v15  ;;  %v3630_v52 = vmul.f32 0.5, %v3504_v2 }
 0x249   : > { %v1762_v26 = vadd.f32 1.4214138, %v1730_v12  ;;  %v3625_v38 = vpop.eup %2752  ;;  %2768 = vrcp.f32 %v1584_v36  ;;  %v3644_v23 = vmul.f32 0.70710677, %v3623_v37  ;;  %vm2145_vm2 = vcmp.lt.f32.partialorder %v3513_v11, 0.0 }
 0x24a   : > { %v1792_v25 = vmul.f32 %v3573_v24, %v1760_v60  ;;  %v1761_v42 = vadd.f32 1.4214138, %v1729_v30  ;;  %v1731_v46 = vmul.f32 %v3604_v4, %v1699_v31  ;;  %v1672_v8 = vmul.f32 1.0614054, %v3625_v38  ;;  %v3636_v14 = vpop.eup %2754 }
 0x24b   : > { %v1794_v13 = vmul.f32 %v3585_v32, %v1762_v26  ;;  %v3640_v60 = vpop.eup %2756  ;;  %v1674_v2 = vmul.f32 1.0614054, %v3636_v14  ;;  %vm2147_vm3 = vcmp.lt.f32.partialorder %v3516_v16, 0.0  ;;  %vm2152_vm4 = vcmp.lt.f32.partialorder %v3554_v55, 0.0 }
 0x24c   : > { %v1824_v40 = vadd.f32 -0.28449672, %v1792_v25  ;;  %v1793_v57 = vmul.f32 %v3594_v41, %v1761_v42  ;;  %v1763_v10 = vadd.f32 1.4214138, %v1731_v46  ;;  %v1704_v12 = vadd.f32 -1.4531521, %v1672_v8  ;;  %v3646_v15 = vpop.eup %2758 }
 0x24d   : > { %v1826_v56 = vadd.f32 -0.28449672, %v1794_v13  ;;  %v3650_v26 = vpop.eup %2760  ;;  %v1706_v31 = vadd.f32 -1.4531521, %v1674_v2  ;;  %v1673_v36 = vmul.f32 1.0614054, %v3646_v15 }
 0x24e   : > { %v1856_v35 = vmul.f32 %v3573_v24, %v1824_v40  ;;  %v1825_v20 = vadd.f32 -0.28449672, %v1793_v57  ;;  %v1795_v25 = vmul.f32 %v3604_v4, %v1763_v10  ;;  %v1736_v30 = vmul.f32 %v3625_v38, %v1704_v12 }
 0x24f   : > { %v1858_v19 = vmul.f32 %v3585_v32, %v1826_v56  ;;  %v1522_v40 = vand.u32 2147483647, %v3644_v23  ;;  %v1738_v57 = vmul.f32 %v3636_v14, %v1706_v31  ;;  %v1705_v10 = vadd.f32 -1.4531521, %v1673_v36 }
 0x250   : > { %v1888_v9 = vadd.f32 0.2548296, %v1856_v35  ;;  %v1857_v46 = vmul.f32 %v3594_v41, %v1825_v20  ;;  %v1827_v8 = vadd.f32 -0.28449672, %v1795_v25  ;;  %v3658_v35 = vpop.eup %2762  ;;  %v1768_v56 = vadd.f32 1.4214138, %v1736_v30 }
 0x251   : > { %v1890_v42 = vadd.f32 0.2548296, %v1858_v19  ;;  %v3662_v12 = vmul.f32 0.3275911, %v1522_v40  ;;  %v1770_v20 = vadd.f32 1.4214138, %v1738_v57  ;;  %v1737_v25 = vmul.f32 %v3646_v15, %v1705_v10 }
 0x252   : > { %v1920_v13 = vmul.f32 %v3573_v24, %v1888_v9  ;;  %v1889_v17 = vadd.f32 0.2548296, %v1857_v46  ;;  %v1859_v24 = vmul.f32 %v3604_v4, %v1827_v8  ;;  %v3667_v9 = vpop.eup %2764  ;;  %v1800_v19 = vmul.f32 %v3625_v38, %v1768_v56 }
 0x253   : > { %v1922_v48 = vmul.f32 %v3585_v32, %v1890_v42  ;;  %v1675_v30 = vmul.f32 1.0614054, %v3658_v35  ;;  %v3675_v40 = vpop.eup %2766  ;;  %v1802_v42 = vmul.f32 %v3636_v14, %v1770_v20  ;;  %v1769_v46 = vadd.f32 1.4214138, %v1737_v25 }
 0x254   : > { %v2080_v2 = vmul.f32 %v3600_v50, %v1920_v13  ;;  %v1921_v50 = vmul.f32 %v3594_v41, %v1889_v17  ;;  %v1891_v32 = vadd.f32 0.2548296, %v1859_v24  ;;  %v1832_v13 = vadd.f32 -0.28449672, %v1800_v19  ;;  %v3681_v53 = vpop.eup %2768 }
 0x255   : > { %v2082_v36 = vmul.f32 %v3607_v59, %v1922_v48  ;;  %v1707_v8 = vadd.f32 -1.4531521, %v1675_v30  ;;  %v1834_v48 = vadd.f32 -0.28449672, %v1802_v42  ;;  %v1801_v41 = vmul.f32 %v3646_v15, %v1769_v46 }
 0x256   : > { %v2112_v31 = vsub.f32 1.0, %v2080_v2  ;;  %v2081_v10 = vmul.f32 %v3611_v22, %v1921_v50  ;;  %v1923_v2 = vmul.f32 %v3604_v4, %v1891_v32  ;;  %v1864_v17 = vmul.f32 %v3625_v38, %v1832_v13 }
 0x257   : > { %v2114_v57 = vsub.f32 1.0, %v2082_v36  ;;  %v1739_v59 = vmul.f32 %v3658_v35, %v1707_v8  ;;  %v1866_v4 = vmul.f32 %v3636_v14, %v1834_v48  ;;  %v1833_v36 = vadd.f32 -0.28449672, %v1801_v41 }
 0x258   : > { %v2176_v56 = vsub.f32 0.0, %v2112_v31  ;;  %v2113_v20 = vsub.f32 1.0, %v2081_v10  ;;  %v2083_v25 = vmul.f32 %v3614_v21, %v1923_v2  ;;  %v1896_v22 = vadd.f32 0.2548296, %v1864_v17 }
 0x259   : > { %v2178_v19 = vsub.f32 0.0, %v2114_v57  ;;  %v1771_v42 = vadd.f32 1.4214138, %v1739_v59  ;;  %v1898_v21 = vadd.f32 0.2548296, %v1866_v4  ;;  %v1865_v10 = vmul.f32 %v3646_v15, %v1833_v36 }
 0x25a   : > { %v2208_v24 = vsel %vm2144_vm0, %v2176_v56, %v2112_v31  ;;  %v2177_v32 = vsub.f32 0.0, %v2113_v20  ;;  %v2115_v13 = vsub.f32 1.0, %v2083_v25  ;;  %v1928_v46 = vmul.f32 %v3625_v38, %v1896_v22 }
 0x25b   : > { %v2240_v30 = vadd.f32 1.0, %v2208_v24  ;;  %v2210_v50 = vsel %vm2146_vm1, %v2178_v19, %v2114_v57  ;;  %v1803_v7 = vmul.f32 %v3658_v35, %v1771_v42  ;;  %v1897_v48 = vadd.f32 0.2548296, %v1865_v10 }
 0x25c   : > { %v2242_v31 = vadd.f32 1.0, %v2210_v50  ;;  %v2209_v8 = vsel %vm2145_vm2, %v2177_v32, %v2113_v20  ;;  %v2179_v56 = vsub.f32 0.0, %v2115_v13  ;;  %v2088_v17 = vmul.f32 %v3640_v60, %v1928_v46 }
 0x25d   : > { %v2272_v58 = vmul.f32 %v2240_v30, %v3582_v29  ;;  %v2241_v2 = vadd.f32 1.0, %v2209_v8  ;;  %v1930_v29 = vmul.f32 %v3636_v14, %v1898_v21  ;;  %v1835_v41 = vadd.f32 -0.28449672, %v1803_v7 }
 0x25e   : > { %v2274_v57 = vmul.f32 %v2242_v31, %v3591_v34  ;;  %v2211_v38 = vsel %vm2147_vm3, %v2179_v56, %v2115_v13  ;;  %v1680_v11 = vmul.f32 1.0614054, %v3681_v53  ;;  %v2120_v19 = vsub.f32 1.0, %v2088_v17 }
 0x25f   : > { %v2273_v59 = vmul.f32 %v2241_v2, %v3619_v33  ;;  %v2243_v24 = vadd.f32 1.0, %v2211_v38  ;;  %v2090_v20 = vmul.f32 %v3650_v26, %v1930_v29  ;;  %v1929_v34 = vmul.f32 %v3646_v15, %v1897_v48 }
 0x260   : > { %v1867_v16 = vmul.f32 %v3658_v35, %v1835_v41  ;;  %v1712_v14 = vadd.f32 -1.4531521, %v1680_v11  ;;  %v1586_v60 = vadd.f32 1.0, %v3662_v12  ;;  %v2184_v30 = vsub.f32 0.0, %v2120_v19 }
 0x261   : > { %v2688_v25 = vpack.c.bf16 %v2273_v59, %v2272_v58  ;;  %v2275_v33 = vmul.f32 %v2243_v24, %v3630_v52  ;;  %v2122_v22 = vsub.f32 1.0, %v2090_v20  ;;  %v2089_v26 = vmul.f32 %v3667_v9, %v1929_v34 }
 0x262   : > { %v1899_v4 = vadd.f32 0.2548296, %v1867_v16  ;;  %v1744_v36 = vmul.f32 %v3681_v53, %v1712_v14  ;;  %2770 = vrcp.f32 %v1586_v60  ;;  %v2216_v15 = vsel %vm2152_vm4, %v2184_v30, %v2120_v19 }
 0x263   : > { %2400 = vst [vmem:[%s3711_s14] sm:$0xff] %v2688_v25  ;;  %v2689_v50 = vpack.c.bf16 %v2275_v33, %v2274_v57  ;;  %v2186_v32 = vsub.f32 0.0, %v2122_v22  ;;  %v2048_v12 = vmul.f32 1.442695, %v3634_v3  ;;  %vm2154_vm5 = vcmp.lt.f32.partialorder %v3557_v0, 0.0 }
 0x264   : > { %v2121_v52 = vsub.f32 1.0, %v2089_v26  ;;  %v1931_v13 = vmul.f32 %v3658_v35, %v1899_v4  ;;  %v1776_v42 = vadd.f32 1.4214138, %v1744_v36  ;;  %v1448_v9 = vmul.f32 0.5, %v3534_v43 }
 0x265   : > { %2401 = vst [vmem:[%s3711_s14 + $0x8] sm:$0xff] %v2689_v50  ;;  %v2248_v58 = vadd.f32 1.0, %v2216_v15  ;;  %v2218_v31 = vsel %vm2154_vm5, %v2186_v32, %v2122_v22  ;;  %v3729_v46 = vadd.f32 %v3529_v39, %v3489_v62  ;;  %v1449_v55 = vmul.f32 0.5, %v3545_v1 }
 0x266   : > { %v2185_v21 = vsub.f32 0.0, %v2121_v52  ;;  %v2091_v3 = vmul.f32 %v3675_v40, %v1931_v13  ;;  %v1970_v0 = vsub.f32 0.0, %v3644_v23  ;;  %vm2153_vm6 = vcmp.lt.f32.partialorder %v3560_v5, 0.0 }
 0x267   : > { %v1808_v35 = vmul.f32 %v3681_v53, %v1776_v42  ;;  %2772 = vpow2.f32 %v2048_v12  ;;  %v3737_v43 = vmul.f32 0.70710677, %v3729_v46  ;;  %v2250_v8 = vadd.f32 1.0, %v2218_v31 }
 0x268   : > { %v2217_v56 = vsel %vm2153_vm6, %v2185_v21, %v2121_v52  ;;  %v2123_v10 = vsub.f32 1.0, %v2091_v3  ;;  %v3741_v39 = vadd.f32 %v3536_v47, %v3492_v18  ;;  %v2280_v1 = vmul.f32 %v2248_v58, %v1448_v9 }
 0x269   : > { %v2249_v7 = vadd.f32 1.0, %v2217_v56  ;;  %v1840_v40 = vadd.f32 -0.28449672, %v1808_v35  ;;  %v1521_v57 = vand.u32 2147483647, %v3737_v43  ;;  %v1450_v5 = vmul.f32 0.5, %v3542_v51 }
 0x26a   : > { %vm2155_vm7 = vcmp.lt.f32.partialorder %v3576_v27, 0.0  ;;  %v2187_v2 = vsub.f32 0.0, %v2123_v10  ;;  %v2002_v17 = vmul.f32 %v1970_v0, %v3644_v23  ;;  %v3753_v11 = vmul.f32 0.70710677, %v3741_v39 }
 0x26b   : > { %v2281_v48 = vmul.f32 %v2249_v7, %v1449_v55  ;;  %v1872_v47 = vmul.f32 %v3681_v53, %v1840_v40  ;;  %v1553_v41 = vmul.f32 0.3275911, %v1521_v57  ;;  %v2282_v27 = vmul.f32 %v2250_v8, %v1450_v5 }
 0x26c   : > { %v3747_v29 = vpop.f32.mrb[8].mxu0  ;;  %v3749_v38 = vpop.f32.mrb[8].mxu1  ;;  %v1451_v19 = vmul.f32 0.5, %v3567_v63  ;;  %v2219_v20 = vsel %vm2155_vm7, %v2187_v2, %v2123_v10  ;;  %v1969_v26 = vsub.f32 0.0, %v3737_v43  ;;  %v1523_v4 = vand.u32 2147483647, %v3753_v11 }
 0x26d   : > { %v3755_v59 = vpop.f32.mrb[9].mxu0  ;;  %v3757_v24 = vpop.f32.mrb[9].mxu1  ;;  %v2692_v14 = vpack.c.bf16 %v2281_v48, %v2280_v1  ;;  %v2251_v60 = vadd.f32 1.0, %v2219_v20  ;;  %v1904_v25 = vadd.f32 0.2548296, %v1872_v47  ;;  %v1585_v22 = vadd.f32 1.0, %v1553_v41 }
 0x26e   : > { %v3759_v51 = vpop.eup %2770  ;;  %v3762_v34 = vpop.f32.mrb[10].mxu0  ;;  %v1277_v63 = vadd.f32 %v3538_v44, %v3482_v54  ;;  %v2052_v15 = vmul.f32 1.442695, %v2002_v17  ;;  %v1330_v32 = vadd.f32 %v3547_v49, %v3485_v61  ;;  %v1555_v13 = vmul.f32 0.3275911, %v1523_v4 }
 0x26f   : > { %v3764_v16 = vpop.f32.mrb[10].mxu1  ;;  %v1682_v33 = vmul.f32 1.0614054, %v3759_v51  ;;  %v3767_v30 = vpop.f32.mrb[11].mxu0  ;;  %2404 = vst [vmem:[%s3711_s14 + $0x20] sm:$0xff] %v2692_v14  ;;  %v2283_v36 = vmul.f32 %v2251_v60, %v1451_v19  ;;  %v1936_v52 = vmul.f32 %v3681_v53, %v1904_v25  ;;  %2774 = vrcp.f32 %v1585_v22 }
 0x270   : > { %v3776_v12 = vpop.f32.mrb[11].mxu1  ;;  %v1971_v54 = vsub.f32 0.0, %v3753_v11  ;;  %v2001_v44 = vmul.f32 %v1969_v26, %v3737_v43  ;;  %v1587_v31 = vadd.f32 1.0, %v1555_v13  ;;  %v3782_v55 = vmul.f32 0.70710677, %v1277_v63  ;;  %v4297_v26 = vld [vmem:[#allocation4_spill] sm:$0xff] }
 0x271   : > { %v1714_v50 = vadd.f32 -1.4531521, %v1682_v33  ;;  %v2773_v42 = vpop.eup %2772  ;;  %v2693_v9 = vpack.c.bf16 %v2283_v36, %v2282_v27  ;;  %v3786_v61 = vmul.f32 0.5, %v3579_v28  ;;  %2776 = vpow2.f32 %v2052_v15 }
 0x272   : > { %v3788_v53 = vmul.f32 0.70710677, %v1330_v32  ;;  %v2096_v3 = vmul.f32 %v2773_v42, %v1936_v52  ;;  %v3793_v0 = vmul.f32 0.5, %v3623_v37  ;;  %2778 = vrcp.f32 %v1587_v31 }
 0x273   : > { %v1746_v58 = vmul.f32 %v3759_v51, %v1714_v50  ;;  %2405 = vst [vmem:[%s3711_s14 + $0x28] sm:$0xff] %v2693_v9  ;;  %v1528_v35 = vand.u32 2147483647, %v3782_v55  ;;  %v2003_v10 = vmul.f32 %v1971_v54, %v3753_v11  ;;  %v3805_v7 = vadd.f32 %v3549_v6, %v3489_v62 }
 0x274   : > { %v3790_v21 = vpop.f32.mrb[12].mxu0  ;;  %v3796_v8 = vpop.f32.mrb[12].mxu1  ;;  %v1530_v1 = vand.u32 2147483647, %v3788_v53  ;;  %v2050_v57 = vmul.f32 1.442695, %v2001_v44  ;;  %v3834_v4 = vadd.f32 %v4297_v26, %v3492_v18 }
 0x275   : > { %v1778_v49 = vadd.f32 1.4214138, %v1746_v58  ;;  %v3798_v56 = vpop.f32.mrb[13].mxu0  ;;  %v3807_v40 = vpop.f32.mrb[13].mxu1  ;;  %v1560_v5 = vmul.f32 0.3275911, %v1528_v35 }
 0x276   : > { %v3809_v37 = vpop.f32.mrb[14].mxu0  ;;  %v3811_v2 = vpop.f32.mrb[14].mxu1  ;;  %vm2160_vm8 = vcmp.lt.f32.partialorder %v3598_v45, 0.0  ;;  %v3817_v47 = vmul.f32 0.5, %v3729_v46  ;;  %v1562_v41 = vmul.f32 0.3275911, %v1530_v1 }
 0x277   : > { %v1810_v28 = vmul.f32 %v3759_v51, %v1778_v49  ;;  %v3813_v17 = vpop.f32.mrb[15].mxu0  ;;  %v3819_v27 = vpop.f32.mrb[15].mxu1  ;;  %v2128_v62 = vsub.f32 1.0, %v2096_v3  ;;  %v3822_v6 = vmul.f32 0.5, %v3741_v39  ;;  %v1592_v19 = vadd.f32 1.0, %v1560_v5  ;;  %v4298_v39 = vld [vmem:[#allocation2_spill] sm:$0xff] }
 0x278   : > { %v1976_v20 = vsub.f32 0.0, %v3782_v55  ;;  %v2054_v60 = vmul.f32 1.442695, %v2003_v10  ;;  %v1594_v25 = vadd.f32 1.0, %v1562_v41  ;;  %v3827_v33 = vmul.f32 0.70710677, %v3805_v7 }
 0x279   : > { %v1842_v48 = vadd.f32 -0.28449672, %v1810_v28  ;;  %v3829_v22 = vpop.eup %2774  ;;  %2780 = vrcp.f32 %v1592_v19  ;;  %v1978_v46 = vsub.f32 0.0, %v3788_v53  ;;  %v566_v36 = vsub.s32 4, %v4298_v39 }
 0x27a   : > { %v1681_v15 = vmul.f32 1.0614054, %v3829_v22  ;;  %2782 = vpow2.f32 %v2050_v57  ;;  %v1529_v52 = vand.u32 2147483647, %v3827_v33  ;;  %v2192_v13 = vsub.f32 0.0, %v2128_v62 }
 0x27b   : > { %v1874_v14 = vmul.f32 %v3759_v51, %v1842_v48  ;;  %v3839_v42 = vmul.f32 0.5, %v1277_v63  ;;  %v2008_v9 = vmul.f32 %v1976_v20, %v3782_v55  ;;  %2784 = vrcp.f32 %v1594_v25  ;;  %v2777_v58 = vpop.eup %2776  ;;  %v4299_v63 = vld [vmem:[#allocation3_spill] sm:$0xff] }
 0x27c   : > { %v1713_v44 = vadd.f32 -1.4531521, %v1681_v15  ;;  %v3843_v18 = vmul.f32 0.5, %v1330_v32  ;;  %v1561_v31 = vmul.f32 0.3275911, %v1529_v52  ;;  %v3845_v49 = vpop.eup %2778  ;;  %2786 = vpow2.f32 %v2054_v60 }
 0x27d   : > { %v1906_v50 = vadd.f32 0.2548296, %v1874_v14  ;;  %v2010_v3 = vmul.f32 %v1978_v46, %v3788_v53  ;;  %v3849_v35 = vmul.f32 0.70710677, %v3834_v4  ;;  %v3852_v28 = vrot.slane %v4299_v63, %v566_v36 }
 0x27e   : > { %vm2162_vm9 = vcmp.lt.f32.partialorder %v3644_v23, 0.0  ;;  %v1683_v32 = vmul.f32 1.0614054, %v3845_v49  ;;  %v1593_v1 = vadd.f32 1.0, %v1561_v31  ;;  %v2224_v57 = vsel %vm2160_vm8, %v2192_v13, %v2128_v62 }
 0x27f   : > { %v1938_v54 = vmul.f32 %v3759_v51, %v1906_v50  ;;  %v1745_v51 = vmul.f32 %v3829_v22, %v1713_v44  ;;  %v2064_v5 = vmul.f32 1.442695, %v2008_v9  ;;  %v1977_v48 = vsub.f32 0.0, %v3827_v33 }
 0x280   : > { %v1531_v41 = vand.u32 2147483647, %v3849_v35  ;;  %v1715_v14 = vadd.f32 -1.4531521, %v1683_v32  ;;  %2788 = vrcp.f32 %v1593_v1  ;;  %v1979_v25 = vsub.f32 0.0, %v3849_v35 }
 0x281   : > { %v2098_v10 = vmul.f32 %v2777_v58, %v1938_v54  ;;  %v1777_v20 = vadd.f32 1.4214138, %v1745_v51  ;;  %v3864_v46 = vadd.f32 %v3747_v29, %v3852_v28  ;;  %v574_v26 = vsub.s32 6, %v4298_v39 }
 0x282   : > { %v1563_v60 = vmul.f32 0.3275911, %v1531_v41  ;;  %v2256_v45 = vadd.f32 1.0, %v2224_v57  ;;  %v1747_v36 = vmul.f32 %v3845_v49, %v1715_v14  ;;  %v2068_v50 = vmul.f32 1.442695, %v2010_v3 }
 0x283   : > { %v2130_v19 = vsub.f32 1.0, %v2098_v10  ;;  %v1809_v62 = vmul.f32 %v3829_v22, %v1777_v20  ;;  %v3869_v15 = vpop.eup %2780  ;;  %2790 = vpow2.f32 %v2064_v5  ;;  %v3872_v9 = vmul.f32 0.70710677, %v3864_v46 }
 0x284   : > { %v1595_v13 = vadd.f32 1.0, %v1563_v60  ;;  %v2783_v58 = vpop.eup %2782  ;;  %v1779_v29 = vadd.f32 1.4214138, %v1747_v36  ;;  %v1688_v44 = vmul.f32 1.0614054, %v3869_v15  ;;  %v2009_v31 = vmul.f32 %v1977_v48, %v3827_v33 }
 0x285   : > { %v2194_v52 = vsub.f32 0.0, %v2130_v19  ;;  %v1841_v54 = vadd.f32 -0.28449672, %v1809_v62  ;;  %v3876_v10 = vpop.eup %2784  ;;  %v2011_v3 = vmul.f32 %v1979_v25, %v3849_v35  ;;  %v1508_v51 = vand.u32 2147483647, %v3872_v9 }
 0x286   : > { %2792 = vrcp.f32 %v1595_v13  ;;  %v3881_v32 = vrot.slane %v4299_v63, %v574_v26  ;;  %v1811_v57 = vmul.f32 %v3845_v49, %v1779_v29  ;;  %v1720_v5 = vadd.f32 -1.4531521, %v1688_v44  ;;  %v2787_v20 = vpop.eup %2786 }
 0x287   : > { %v1873_v1 = vmul.f32 %v3829_v22, %v1841_v54  ;;  %v1690_v41 = vmul.f32 1.0614054, %v3876_v10  ;;  %v3887_v48 = vmul.f32 %v2256_v45, %v3786_v61  ;;  %v2226_v14 = vsel %vm2162_vm9, %v2194_v52, %v2130_v19 }
 0x288   : > { %2794 = vpow2.f32 %v2068_v50  ;;  %v1540_v60 = vmul.f32 0.3275911, %v1508_v51  ;;  %v1843_v62 = vadd.f32 -0.28449672, %v1811_v57  ;;  %v1752_v26 = vmul.f32 %v3869_v15, %v1720_v5 }
 0x289   : > { %v1905_v25 = vadd.f32 0.2548296, %v1873_v1  ;;  %v1722_v36 = vadd.f32 -1.4531521, %v1690_v41  ;;  %vm2161_vm10 = vcmp.lt.f32.partialorder %v3737_v43, 0.0  ;;  %v3895_v44 = vadd.f32 %v3749_v38, %v3881_v32 }
 0x28a   : > { %v2066_v13 = vmul.f32 1.442695, %v2009_v31  ;;  %v2070_v54 = vmul.f32 1.442695, %v2011_v3  ;;  %v1572_v29 = vadd.f32 1.0, %v1540_v60  ;;  %v3897_v61 = vpop.eup %2788  ;;  %v1875_v19 = vmul.f32 %v3845_v49, %v1843_v62 }
 0x28b   : > { %v1937_v23 = vmul.f32 %v3829_v22, %v1905_v25  ;;  %v1784_v45 = vadd.f32 1.4214138, %v1752_v26  ;;  %v1754_v50 = vmul.f32 %v3876_v10, %v1722_v36  ;;  %v2258_v52 = vadd.f32 1.0, %v2226_v14 }
 0x28c   : > { %v1689_v51 = vmul.f32 1.0614054, %v3897_v61  ;;  %2796 = vrcp.f32 %v1572_v29  ;;  %v3904_v31 = vmul.f32 0.70710677, %v3895_v44  ;;  %v1907_v1 = vadd.f32 0.2548296, %v1875_v19 }
 0x28d   : > { %v2097_v3 = vmul.f32 %v2783_v58, %v1937_v23  ;;  %v1816_v38 = vmul.f32 %v3869_v15, %v1784_v45  ;;  %v1786_v57 = vadd.f32 1.4214138, %v1754_v50  ;;  %v2791_v5 = vpop.eup %2790  ;;  %vm2163_vm11 = vcmp.lt.f32.partialorder %v3753_v11, 0.0 }
 0x28e   : > { %v1721_v22 = vadd.f32 -1.4531521, %v1689_v51  ;;  %2798 = vpow2.f32 %v2066_v13  ;;  %v1956_v41 = vsub.f32 0.0, %v3872_v9  ;;  %v1510_v14 = vand.u32 2147483647, %v3904_v31 }
 0x28f   : > { %v2129_v60 = vsub.f32 1.0, %v2097_v3  ;;  %v1939_v25 = vmul.f32 %v3845_v49, %v1907_v1  ;;  %v1848_v62 = vadd.f32 -0.28449672, %v1816_v38  ;;  %v1818_v26 = vmul.f32 %v3876_v10, %v1786_v57 }
 0x290   : > { %v3912_v58 = vpop.eup %2792  ;;  %v3915_v36 = vmul.f32 %v2258_v52, %v3793_v0  ;;  %v1753_v29 = vmul.f32 %v3897_v61, %v1721_v22  ;;  %2800 = vpow2.f32 %v2070_v54  ;;  %v1542_v23 = vmul.f32 0.3275911, %v1510_v14 }
 0x291   : > { %v2193_v13 = vsub.f32 0.0, %v2129_v60  ;;  %v2099_v19 = vmul.f32 %v2787_v20, %v1939_v25  ;;  %v1880_v45 = vmul.f32 %v3869_v15, %v1848_v62  ;;  %v1850_v50 = vadd.f32 -0.28449672, %v1818_v26 }
 0x292   : > { %v2795_v51 = vpop.eup %2794  ;;  %v1785_v3 = vadd.f32 1.4214138, %v1753_v29  ;;  %v1691_v49 = vmul.f32 1.0614054, %v3912_v58  ;;  %v1574_v1 = vadd.f32 1.0, %v1542_v23  ;;  %v570_v38 = vsub.s32 5, %v4298_v39 }
 0x293   : > { %v2225_v0 = vsel %vm2161_vm10, %v2193_v13, %v2129_v60  ;;  %v2131_v52 = vsub.f32 1.0, %v2099_v19  ;;  %v1912_v57 = vadd.f32 0.2548296, %v1880_v45  ;;  %v1882_v54 = vmul.f32 %v3876_v10, %v1850_v50 }
 0x294   : > { %v2257_v22 = vadd.f32 1.0, %v2225_v0  ;;  %vm2168_vm12 = vcmp.lt.f32.partialorder %v3782_v55, 0.0  ;;  %v1817_v20 = vmul.f32 %v3897_v61, %v1785_v3  ;;  %v1723_v14 = vadd.f32 -1.4531521, %v1691_v49 }
 0x295   : > { %2802 = vrcp.f32 %v1574_v1  ;;  %v2195_v25 = vsub.f32 0.0, %v2131_v52  ;;  %v1944_v62 = vmul.f32 %v3869_v15, %v1912_v57  ;;  %v1914_v26 = vadd.f32 0.2548296, %v1882_v54 }
 0x296   : > { %v1988_v29 = vmul.f32 %v1956_v41, %v3872_v9  ;;  %v3928_v23 = vpop.eup %2796  ;;  %v2289_v43 = vmul.f32 %v2257_v22, %v3817_v47  ;;  %v1849_v60 = vadd.f32 -0.28449672, %v1817_v20  ;;  %v1755_v13 = vmul.f32 %v3912_v58, %v1723_v14 }
 0x297   : > { %v3933_v19 = vrot.slane %v4299_v63, %v570_v38  ;;  %v2227_v45 = vsel %vm2163_vm11, %v2195_v25, %v2131_v52  ;;  %v2104_v50 = vmul.f32 %v2791_v5, %v1944_v62  ;;  %v1946_v15 = vmul.f32 %v3876_v10, %v1914_v26 }
 0x298   : > { %v1668_v3 = vmul.f32 1.0614054, %v3928_v23  ;;  %v2799_v41 = vpop.eup %2798  ;;  %v2696_v49 = vpack.c.bf16 %v2289_v43, %v3887_v48  ;;  %v2259_v1 = vadd.f32 1.0, %v2227_v45  ;;  %v1881_v47 = vmul.f32 %v3897_v61, %v1849_v60 }
 0x299   : > { %v1787_v0 = vadd.f32 1.4214138, %v1755_v13  ;;  %v2136_v57 = vsub.f32 1.0, %v2104_v50  ;;  %v2106_v54 = vmul.f32 %v2795_v51, %v1946_v15  ;;  %v2024_v63 = vmul.f32 1.442695, %v1988_v29 }
 0x29a   : > { %v1700_v22 = vadd.f32 -1.4531521, %v1668_v3  ;;  %v2801_v38 = vpop.eup %2800  ;;  %2408 = vst [vmem:[%s3711_s14 + $0x40] sm:$0xff] %v2696_v49  ;;  %v2291_v11 = vmul.f32 %v2259_v1, %v3822_v6  ;;  %vm2170_vm13 = vcmp.lt.f32.partialorder %v3788_v53, 0.0  ;;  %v1913_v10 = vadd.f32 0.2548296, %v1881_v47 }
 0x29b   : > { %v1819_v5 = vmul.f32 %v3912_v58, %v1787_v0  ;;  %v3947_v48 = vadd.f32 %v3755_v59, %v3933_v19  ;;  %v2200_v52 = vsub.f32 0.0, %v2136_v57  ;;  %v2138_v20 = vsub.f32 1.0, %v2106_v54 }
 0x29c   : > { %v1732_v51 = vmul.f32 %v3928_v23, %v1700_v22  ;;  %v578_v14 = vsub.s32 7, %v4298_v39  ;;  %v2697_v25 = vpack.c.bf16 %v2291_v11, %v3915_v36  ;;  %v1945_v6 = vmul.f32 %v3897_v61, %v1913_v10  ;;  %v2864_v61 = vld [vmem:[%s4288_s4] sm:$0xff] }
 0x29d   : > { %v1851_v62 = vadd.f32 -0.28449672, %v1819_v5  ;;  %v1958_v26 = vsub.f32 0.0, %v3904_v31  ;;  %v2232_v29 = vsel %vm2168_vm12, %v2200_v52, %v2136_v57  ;;  %v1465_v43 = vmul.f32 0.5, %v3805_v7 }
 0x29e   : > { %v1764_v59 = vadd.f32 1.4214138, %v1732_v51  ;;  %v3958_v60 = vmul.f32 0.70710677, %v3947_v48  ;;  %2409 = vst [vmem:[%s3711_s14 + $0x48] sm:$0xff] %v2697_v25  ;;  %v2105_v39 = vmul.f32 %v2799_v41, %v1945_v6  ;;  %2804 = vpow2.f32 %v2024_v63 }
 0x29f   : > { %v3960_v13 = vpop.eup %2802  ;;  %v1883_v36 = vmul.f32 %v3912_v58, %v1851_v62  ;;  %v3967_v45 = vrot.slane %v2864_v61, %v578_v14  ;;  %v2202_v55 = vsub.f32 0.0, %v2138_v20  ;;  %v2264_v3 = vadd.f32 1.0, %v2232_v29 }
 0x2a0   : > { %v1796_v7 = vmul.f32 %v3928_v23, %v1764_v59  ;;  %v1670_v50 = vmul.f32 1.0614054, %v3960_v13  ;;  %v1509_v15 = vand.u32 2147483647, %v3958_v60  ;;  %v2137_v49 = vsub.f32 1.0, %v2105_v39 }
 0x2a1   : > { %v1915_v1 = vadd.f32 0.2548296, %v1883_v36  ;;  %v1990_v41 = vmul.f32 %v1958_v26, %v3904_v31  ;;  %vm2169_vm14 = vcmp.lt.f32.partialorder %v3827_v33, 0.0  ;;  %v3977_v63 = vadd.f32 %v3757_v24, %v3967_v45 }
 0x2a2   : > { %v1828_v47 = vadd.f32 -0.28449672, %v1796_v7  ;;  %v1702_v0 = vadd.f32 -1.4531521, %v1670_v50  ;;  %v1541_v57 = vmul.f32 0.3275911, %v1509_v15  ;;  %v2234_v11 = vsel %vm2170_vm13, %v2202_v55, %v2138_v20 }
 0x2a3   : > { %v2201_v54 = vsub.f32 0.0, %v2137_v49  ;;  %v1947_v22 = vmul.f32 %v3912_v58, %v1915_v1  ;;  %v2296_v51 = vmul.f32 %v2264_v3, %v3839_v42  ;;  %v2028_v33 = vmul.f32 1.442695, %v1990_v41 }
 0x2a4   : > { %v1860_v10 = vmul.f32 %v3928_v23, %v1828_v47  ;;  %v1734_v5 = vmul.f32 %v3960_v13, %v1702_v0  ;;  %v1573_v52 = vadd.f32 1.0, %v1541_v57  ;;  %v2266_v26 = vadd.f32 1.0, %v2234_v11 }
 0x2a5   : > { %v2233_v14 = vsel %vm2169_vm14, %v2201_v54, %v2137_v49  ;;  %v2107_v25 = vmul.f32 %v2801_v38, %v1947_v22  ;;  %vm2171_vm15 = vcmp.lt.f32.partialorder %v3849_v35, 0.0  ;;  %v3986_v53 = vmul.f32 0.70710677, %v3977_v63 }
 0x2a6   : > { %v2265_v6 = vadd.f32 1.0, %v2233_v14  ;;  %v1892_v62 = vadd.f32 0.2548296, %v1860_v10  ;;  %v1766_v58 = vadd.f32 1.4214138, %v1734_v5  ;;  %2806 = vrcp.f32 %v1573_v52 }
 0x2a7   : > { %v2139_v24 = vsub.f32 1.0, %v2107_v25  ;;  %v3992_v38 = vadd.f32 %v3762_v34, %v3852_v28  ;;  %2808 = vpow2.f32 %v2028_v33  ;;  %v1511_v36 = vand.u32 2147483647, %v3986_v53 }
 0x2a8   : > { %v2297_v20 = vmul.f32 %v2265_v6, %v1465_v43  ;;  %v1924_v29 = vmul.f32 %v3928_v23, %v1892_v62  ;;  %v1798_v42 = vmul.f32 %v3960_v13, %v1766_v58  ;;  %v2805_v59 = vpop.eup %2804  ;;  %v3997_v61 = vadd.f32 %v3764_v16, %v3881_v32 }
 0x2a9   : > { %v2203_v39 = vsub.f32 0.0, %v2139_v24  ;;  %v1957_v23 = vsub.f32 0.0, %v3958_v60  ;;  %v1467_v50 = vmul.f32 0.5, %v3834_v4  ;;  %v1543_v15 = vmul.f32 0.3275911, %v1511_v36 }
 0x2aa   : > { %v2700_v55 = vpack.c.bf16 %v2297_v20, %v2296_v51  ;;  %v2084_v43 = vmul.f32 %v2805_v59, %v1924_v29  ;;  %v1830_v7 = vadd.f32 -0.28449672, %v1798_v42  ;;  %v2298_v3 = vmul.f32 %v2266_v26, %v3843_v18 }
 0x2ab   : > { %v2235_v34 = vsel %vm2171_vm15, %v2203_v39, %v2139_v24  ;;  %v4007_v16 = vmul.f32 0.70710677, %v3992_v38  ;;  %v1575_v47 = vadd.f32 1.0, %v1543_v15  ;;  %v4010_v0 = vmul.f32 0.70710677, %v3997_v61 }
 0x2ac   : > { %2412 = vst [vmem:[%s3711_s14 + $0x60] sm:$0xff] %v2700_v55  ;;  %v2267_v49 = vadd.f32 1.0, %v2235_v34  ;;  %v1862_v1 = vmul.f32 %v3960_v13, %v1830_v7  ;;  %v2116_v41 = vsub.f32 1.0, %v2084_v43  ;;  %v1989_v35 = vmul.f32 %v1957_v23, %v3958_v60 }
 0x2ad   : > { %v1516_v54 = vand.u32 2147483647, %v4007_v16  ;;  %2810 = vrcp.f32 %v1575_v47  ;;  %v1518_v18 = vand.u32 2147483647, %v4010_v0  ;;  %v1959_v5 = vsub.f32 0.0, %v3986_v53 }
 0x2ae   : > { %v2299_v4 = vmul.f32 %v2267_v49, %v1467_v50  ;;  %v1894_v57 = vadd.f32 0.2548296, %v1862_v1  ;;  %v2180_v52 = vsub.f32 0.0, %v2116_v41  ;;  %v2026_v25 = vmul.f32 1.442695, %v1989_v35 }
 0x2af   : > { %v1548_v14 = vmul.f32 0.3275911, %v1516_v54  ;;  %v1964_v33 = vsub.f32 0.0, %v4007_v16  ;;  %v1550_v6 = vmul.f32 0.3275911, %v1518_v18  ;;  %vm2148_vm0 = vcmp.lt.f32.partialorder %v3872_v9, 0.0 }
 0x2b0   : > { %v4015_v22 = vpop.eup %2806  ;;  %v2701_v11 = vpack.c.bf16 %v2299_v4, %v2298_v3  ;;  %v1926_v10 = vmul.f32 %v3960_v13, %v1894_v57  ;;  %v1991_v20 = vmul.f32 %v1959_v5, %v3986_v53  ;;  %v4026_v29 = vadd.f32 %v3767_v30, %v3933_v19 }
 0x2b1   : > { %v1669_v51 = vmul.f32 1.0614054, %v4015_v22  ;;  %v2809_v62 = vpop.eup %2808  ;;  %v1580_v26 = vadd.f32 1.0, %v1548_v14  ;;  %v1582_v13 = vadd.f32 1.0, %v1550_v6  ;;  %v2212_v42 = vsel %vm2148_vm0, %v2180_v52, %v2116_v41 }
 0x2b2   : > { %2413 = vst [vmem:[%s3711_s14 + $0x68] sm:$0xff] %v2701_v11  ;;  %v2086_v24 = vmul.f32 %v2809_v62, %v1926_v10  ;;  %v4031_v39 = vadd.f32 %v3776_v12, %v3967_v45  ;;  %v1444_v9 = vmul.f32 0.5, %v3864_v46  ;;  %v4035_v36 = vmul.f32 0.5, %v3895_v44 }
 0x2b3   : > { %v1701_v58 = vadd.f32 -1.4531521, %v1669_v51  ;;  %2812 = vrcp.f32 %v1580_v26  ;;  %v1996_v55 = vmul.f32 %v1964_v33, %v4007_v16  ;;  %vm2150_vm1 = vcmp.lt.f32.partialorder %v3904_v31, 0.0 }
 0x2b4   : > { %2814 = vpow2.f32 %v2026_v25  ;;  %v4040_v30 = vmul.f32 0.5, %v3947_v48  ;;  %v4043_v7 = vmul.f32 0.70710677, %v4026_v29  ;;  %v2244_v12 = vadd.f32 1.0, %v2212_v42 }
 0x2b5   : > { %v1733_v59 = vmul.f32 %v4015_v22, %v1701_v58  ;;  %2816 = vrcp.f32 %v1582_v13  ;;  %v2118_v23 = vsub.f32 1.0, %v2086_v24  ;;  %v2030_v50 = vmul.f32 1.442695, %v1991_v20 }
 0x2b6   : > { %v4046_v46 = vmul.f32 0.70710677, %v4031_v39  ;;  %v1966_v15 = vsub.f32 0.0, %v4010_v0  ;;  %v1517_v48 = vand.u32 2147483647, %v4043_v7  ;;  %v4055_v3 = vadd.f32 %v3790_v21, %v3852_v28 }
 0x2b7   : > { %v1765_v43 = vadd.f32 1.4214138, %v1733_v59  ;;  %v4048_v44 = vpop.eup %2810  ;;  %v2040_v1 = vmul.f32 1.442695, %v1996_v55  ;;  %v4060_v4 = vmul.f32 0.5, %v3977_v63  ;;  %v4063_v57 = vmul.f32 0.5, %v3992_v38 }
 0x2b8   : > { %v1671_v49 = vmul.f32 1.0614054, %v4048_v44  ;;  %v1519_v41 = vand.u32 2147483647, %v4046_v46  ;;  %v1549_v35 = vmul.f32 0.3275911, %v1517_v48  ;;  %2818 = vpow2.f32 %v2030_v50 }
 0x2b9   : > { %v1797_v34 = vmul.f32 %v4015_v22, %v1765_v43  ;;  %v2182_v54 = vsub.f32 0.0, %v2118_v23  ;;  %v4065_v10 = vmul.f32 %v2244_v12, %v1444_v9  ;;  %v4069_v52 = vmul.f32 0.70710677, %v4055_v3 }
 0x2ba   : > { %v1703_v18 = vadd.f32 -1.4531521, %v1671_v49  ;;  %v1551_v11 = vmul.f32 0.3275911, %v1519_v41  ;;  %v1581_v5 = vadd.f32 1.0, %v1549_v35  ;;  %2820 = vpow2.f32 %v2040_v1 }
 0x2bb   : > { %v1829_v47 = vadd.f32 -0.28449672, %v1797_v34  ;;  %v1998_v63 = vmul.f32 %v1966_v15, %v4010_v0  ;;  %v1965_v33 = vsub.f32 0.0, %v4043_v7  ;;  %v1524_v6 = vand.u32 2147483647, %v4069_v52 }
 0x2bc   : > { %v1735_v51 = vmul.f32 %v4048_v44, %v1703_v18  ;;  %v1583_v38 = vadd.f32 1.0, %v1551_v11  ;;  %2822 = vrcp.f32 %v1581_v5  ;;  %v2214_v58 = vsel %vm2150_vm1, %v2182_v54, %v2118_v23 }
 0x2bd   : > { %v1861_v21 = vmul.f32 %v4015_v22, %v1829_v47  ;;  %v4073_v14 = vpop.eup %2812  ;;  %vm2149_vm2 = vcmp.lt.f32.partialorder %v3958_v60, 0.0  ;;  %v4083_v20 = vadd.f32 %v3796_v8, %v3881_v32  ;;  %v1967_v59 = vsub.f32 0.0, %v4046_v46 }
 0x2be   : > { %v2815_v62 = vpop.eup %2814  ;;  %v1767_v26 = vadd.f32 1.4214138, %v1735_v51  ;;  %v1676_v24 = vmul.f32 1.0614054, %v4073_v14  ;;  %2824 = vrcp.f32 %v1583_v38  ;;  %v1556_v9 = vmul.f32 0.3275911, %v1524_v6 }
 0x2bf   : > { %v1893_v25 = vadd.f32 0.2548296, %v1861_v21  ;;  %v4085_v13 = vpop.eup %2816  ;;  %v2044_v12 = vmul.f32 1.442695, %v1998_v63  ;;  %v2246_v23 = vadd.f32 1.0, %v2214_v58  ;;  %v1997_v34 = vmul.f32 %v1965_v33, %v4043_v7 }
 0x2c0   : > { %v1799_v31 = vmul.f32 %v4048_v44, %v1767_v26  ;;  %v1708_v55 = vadd.f32 -1.4531521, %v1676_v24  ;;  %v1678_v43 = vmul.f32 1.0614054, %v4085_v13  ;;  %v1588_v8 = vadd.f32 1.0, %v1556_v9 }
 0x2c1   : > { %v1925_v42 = vmul.f32 %v4015_v22, %v1893_v25  ;;  %v4094_v22 = vmul.f32 0.70710677, %v4083_v20  ;;  %v1999_v41 = vmul.f32 %v1967_v59, %v4046_v46  ;;  %v4099_v47 = vadd.f32 %v3798_v56, %v3933_v19 }
 0x2c2   : > { %v1831_v15 = vadd.f32 -0.28449672, %v1799_v31  ;;  %v1740_v48 = vmul.f32 %v4073_v14, %v1708_v55  ;;  %v1710_v49 = vadd.f32 -1.4531521, %v1678_v43  ;;  %2826 = vrcp.f32 %v1588_v8  ;;  %v2819_v35 = vpop.eup %2818 }
 0x2c3   : > { %v2085_v50 = vmul.f32 %v2815_v62, %v1925_v42  ;;  %2828 = vpow2.f32 %v2044_v12  ;;  %v2042_v5 = vmul.f32 1.442695, %v1997_v34  ;;  %v1972_v51 = vsub.f32 0.0, %v4069_v52 }
 0x2c4   : > { %v1863_v54 = vmul.f32 %v4048_v44, %v1831_v15  ;;  %v1772_v18 = vadd.f32 1.4214138, %v1740_v48  ;;  %v1742_v11 = vmul.f32 %v4085_v13, %v1710_v49  ;;  %v1526_v63 = vand.u32 2147483647, %v4094_v22  ;;  %v2821_v38 = vpop.eup %2820 }
 0x2c5   : > { %v2117_v1 = vsub.f32 1.0, %v2085_v50  ;;  %v4106_v25 = vmul.f32 %v2246_v23, %v4035_v36  ;;  %vm2151_vm3 = vcmp.lt.f32.partialorder %v3986_v53, 0.0  ;;  %v2046_v26 = vmul.f32 1.442695, %v1999_v41 }
 0x2c6   : > { %v1895_v33 = vadd.f32 0.2548296, %v1863_v54  ;;  %v1804_v56 = vmul.f32 %v4073_v14, %v1772_v18  ;;  %v1774_v6 = vadd.f32 1.4214138, %v1742_v11  ;;  %v4109_v62 = vpop.eup %2822  ;;  %v1558_v24 = vmul.f32 0.3275911, %v1526_v63 }
 0x2c7   : > { %v2181_v21 = vsub.f32 0.0, %v2117_v1  ;;  %v4115_v42 = vmul.f32 0.70710677, %v4099_v47  ;;  %v1677_v43 = vmul.f32 1.0614054, %v4109_v62  ;;  %2830 = vpow2.f32 %v2042_v5 }
 0x2c8   : > { %v1927_v36 = vmul.f32 %v4048_v44, %v1895_v33  ;;  %v1836_v9 = vadd.f32 -0.28449672, %v1804_v56  ;;  %v1806_v31 = vmul.f32 %v4085_v13, %v1774_v6  ;;  %v4119_v55 = vpop.eup %2824  ;;  %v2004_v60 = vmul.f32 %v1972_v51, %v4069_v52 }
 0x2c9   : > { %v2213_v58 = vsel %vm2149_vm2, %v2181_v21, %v2117_v1  ;;  %v1590_v12 = vadd.f32 1.0, %v1558_v24  ;;  %v1709_v15 = vadd.f32 -1.4531521, %v1677_v43  ;;  %v1679_v44 = vmul.f32 1.0614054, %v4119_v55 }
 0x2ca   : > { %v2245_v59 = vadd.f32 1.0, %v2213_v58  ;;  %v2087_v50 = vmul.f32 %v2819_v35, %v1927_v36  ;;  %v1868_v34 = vmul.f32 %v4073_v14, %v1836_v9  ;;  %v1838_v8 = vadd.f32 -0.28449672, %v1806_v31 }
 0x2cb   : > { %2832 = vrcp.f32 %v1590_v12  ;;  %v1525_v48 = vand.u32 2147483647, %v4115_v42  ;;  %v1711_v35 = vadd.f32 -1.4531521, %v1679_v44  ;;  %v2056_v6 = vmul.f32 1.442695, %v2004_v60 }
 0x2cc   : > { %v2277_v23 = vmul.f32 %v2245_v59, %v4040_v30  ;;  %v2119_v1 = vsub.f32 1.0, %v2087_v50  ;;  %v1900_v41 = vadd.f32 0.2548296, %v1868_v34  ;;  %v1870_v54 = vmul.f32 %v4085_v13, %v1838_v8  ;;  %v4129_v18 = vpop.eup %2826 }
 0x2cd   : > { %v1741_v30 = vmul.f32 %v4109_v62, %v1709_v15  ;;  %2834 = vpow2.f32 %v2046_v26  ;;  %v1557_v11 = vmul.f32 0.3275911, %v1525_v48  ;;  %v2829_v21 = vpop.eup %2828  ;;  %v1684_v33 = vmul.f32 1.0614054, %v4129_v18 }
 0x2ce   : > { %v2690_v49 = vpack.c.bf16 %v2277_v23, %v4065_v10  ;;  %v2183_v5 = vsub.f32 0.0, %v2119_v1  ;;  %v1932_v51 = vmul.f32 %v4073_v14, %v1900_v41  ;;  %v1902_v63 = vadd.f32 0.2548296, %v1870_v54 }
 0x2cf   : > { %v1773_v10 = vadd.f32 1.4214138, %v1741_v30  ;;  %v1743_v56 = vmul.f32 %v4119_v55, %v1711_v35  ;;  %v1589_v58 = vadd.f32 1.0, %v1557_v11  ;;  %v1716_v36 = vadd.f32 -1.4531521, %v1684_v33 }
 0x2d0   : > { %2402 = vst [vmem:[%s3711_s14 + $0x10] sm:$0xff] %v2690_v49  ;;  %v2215_v24 = vsel %vm2151_vm3, %v2183_v5, %v2119_v1  ;;  %v2092_v59 = vmul.f32 %v2821_v38, %v1932_v51  ;;  %v1934_v26 = vmul.f32 %v4085_v13, %v1902_v63  ;;  %v1974_v23 = vsub.f32 0.0, %v4094_v22 }
 0x2d1   : > { %v2247_v9 = vadd.f32 1.0, %v2215_v24  ;;  %v1805_v31 = vmul.f32 %v4109_v62, %v1773_v10  ;;  %v1775_v43 = vadd.f32 1.4214138, %v1743_v56  ;;  %2836 = vrcp.f32 %v1589_v58  ;;  %v2831_v53 = vpop.eup %2830 }
 0x2d2   : > { %v2094_v14 = vmul.f32 %v2829_v21, %v1934_v26  ;;  %v1748_v12 = vmul.f32 %v4129_v18, %v1716_v36  ;;  %v4144_v60 = vadd.f32 %v3807_v40, %v3967_v45  ;;  %v2124_v50 = vsub.f32 1.0, %v2092_v59 }
 0x2d3   : > { %v2279_v38 = vmul.f32 %v2247_v9, %v4060_v4  ;;  %v1837_v13 = vadd.f32 -0.28449672, %v1805_v31  ;;  %v1807_v34 = vmul.f32 %v4119_v55, %v1775_v43  ;;  %vm2156_vm4 = vcmp.lt.f32.partialorder %v4007_v16, 0.0 }
 0x2d4   : > { %v4150_v8 = vmul.f32 0.5, %v3997_v61  ;;  %vm2158_vm5 = vcmp.lt.f32.partialorder %v4010_v0, 0.0  ;;  %v1780_v15 = vadd.f32 1.4214138, %v1748_v12  ;;  %v2126_v48 = vsub.f32 1.0, %v2094_v14 }
 0x2d5   : > { %v4153_v44 = vpop.eup %2832  ;;  %v2691_v40 = vpack.c.bf16 %v2279_v38, %v4106_v25  ;;  %v1869_v4 = vmul.f32 %v4109_v62, %v1837_v13  ;;  %v1839_v49 = vadd.f32 -0.28449672, %v1807_v34  ;;  %2838 = vpow2.f32 %v2056_v6 }
 0x2d6   : > { %v1812_v1 = vmul.f32 %v4129_v18, %v1780_v15  ;;  %v1686_v41 = vmul.f32 1.0614054, %v4153_v44  ;;  %v2006_v54 = vmul.f32 %v1974_v23, %v4094_v22  ;;  %v2188_v30 = vsub.f32 0.0, %v2124_v50 }
 0x2d7   : > { %v2835_v61 = vpop.eup %2834  ;;  %2403 = vst [vmem:[%s3711_s14 + $0x18] sm:$0xff] %v2691_v40  ;;  %v1901_v35 = vadd.f32 0.2548296, %v1869_v4  ;;  %v1871_v11 = vmul.f32 %v4119_v55, %v1839_v49  ;;  %v4163_v21 = vmul.f32 0.70710677, %v4144_v60  ;;  %v1453_v25 = vmul.f32 0.5, %v4026_v29 }
 0x2d8   : > { %v1844_v5 = vadd.f32 -0.28449672, %v1812_v1  ;;  %v1718_v51 = vadd.f32 -1.4531521, %v1686_v41  ;;  %v1973_v63 = vsub.f32 0.0, %v4115_v42  ;;  %v2190_v33 = vsub.f32 0.0, %v2126_v48 }
 0x2d9   : > { %v1933_v10 = vmul.f32 %v4109_v62, %v1901_v35  ;;  %vm2157_vm6 = vcmp.lt.f32.partialorder %v4043_v7, 0.0  ;;  %v1903_v56 = vadd.f32 0.2548296, %v1871_v11  ;;  %vm2159_vm7 = vcmp.lt.f32.partialorder %v4046_v46, 0.0 }
 0x2da   : > { %v1876_v6 = vmul.f32 %v4129_v18, %v1844_v5  ;;  %v1750_v58 = vmul.f32 %v4153_v44, %v1718_v51  ;;  %v2060_v24 = vmul.f32 1.442695, %v2006_v54  ;;  %v1527_v59 = vand.u32 2147483647, %v4163_v21 }
 0x2db   : > { %v4173_v29 = vpop.eup %2836  ;;  %v2220_v26 = vsel %vm2156_vm4, %v2188_v30, %v2124_v50  ;;  %v2093_v36 = vmul.f32 %v2831_v53, %v1933_v10  ;;  %v1935_v62 = vmul.f32 %v4119_v55, %v1903_v56  ;;  %v4180_v9 = vadd.f32 %v3809_v37, %v3852_v28 }
 0x2dc   : > { %v1908_v31 = vadd.f32 0.2548296, %v1876_v6  ;;  %v1782_v43 = vadd.f32 1.4214138, %v1750_v58  ;;  %v1685_v14 = vmul.f32 1.0614054, %v4173_v29  ;;  %v2005_v12 = vmul.f32 %v1973_v63, %v4115_v42 }
 0x2dd   : > { %v2222_v23 = vsel %vm2158_vm5, %v2190_v33, %v2126_v48  ;;  %v2125_v38 = vsub.f32 1.0, %v2093_v36  ;;  %v2095_v13 = vmul.f32 %v2835_v61, %v1935_v62  ;;  %v1559_v16 = vmul.f32 0.3275911, %v1527_v59 }
 0x2de   : > { %v2252_v50 = vadd.f32 1.0, %v2220_v26  ;;  %v1940_v53 = vmul.f32 %v4129_v18, %v1908_v31  ;;  %v1814_v55 = vmul.f32 %v4153_v44, %v1782_v43  ;;  %v1717_v34 = vadd.f32 -1.4531521, %v1685_v14 }
 0x2df   : > { %v2189_v37 = vsub.f32 0.0, %v2125_v38  ;;  %v2127_v28 = vsub.f32 1.0, %v2095_v13  ;;  %v1591_v15 = vadd.f32 1.0, %v1559_v16  ;;  %v4189_v40 = vmul.f32 0.70710677, %v4180_v9  ;;  %v2839_v4 = vpop.eup %2838 }
 0x2e0   : > { %v2254_v49 = vadd.f32 1.0, %v2222_v23  ;;  %v1846_v1 = vadd.f32 -0.28449672, %v1814_v55  ;;  %v1749_v0 = vmul.f32 %v4173_v29, %v1717_v34  ;;  %v2058_v48 = vmul.f32 1.442695, %v2005_v12 }
 0x2e1   : > { %v2221_v41 = vsel %vm2157_vm6, %v2189_v37, %v2125_v38  ;;  %v2191_v54 = vsub.f32 0.0, %v2127_v28  ;;  %2840 = vrcp.f32 %v1591_v15  ;;  %v1532_v18 = vand.u32 2147483647, %v4189_v40 }
 0x2e2   : > { %v2284_v61 = vmul.f32 %v2252_v50, %v4063_v57  ;;  %v2253_v30 = vadd.f32 1.0, %v2221_v41  ;;  %v2100_v35 = vmul.f32 %v2839_v4, %v1940_v53  ;;  %v1781_v11 = vadd.f32 1.4214138, %v1749_v0 }
 0x2e3   : > { %v1455_v5 = vmul.f32 0.5, %v4031_v39  ;;  %v2223_v51 = vsel %vm2159_vm7, %v2191_v54, %v2127_v28  ;;  %2842 = vpow2.f32 %v2060_v24  ;;  %v1564_v63 = vmul.f32 0.3275911, %v1532_v18 }
 0x2e4   : > { %v2286_v7 = vmul.f32 %v2254_v49, %v4150_v8  ;;  %v2285_v33 = vmul.f32 %v2253_v30, %v1453_v25  ;;  %v2255_v10 = vadd.f32 1.0, %v2223_v51  ;;  %2844 = vpow2.f32 %v2058_v48 }
 0x2e5   : > { %v1878_v56 = vmul.f32 %v4153_v44, %v1846_v1  ;;  %v1813_v57 = vmul.f32 %v4173_v29, %v1781_v11  ;;  %v1596_v6 = vadd.f32 1.0, %v1564_v63  ;;  %v4204_v39 = vadd.f32 %v3811_v2, %v3881_v32 }
 0x2e6   : > { %v2694_v46 = vpack.c.bf16 %v2285_v33, %v2284_v61  ;;  %v2287_v58 = vmul.f32 %v2255_v10, %v1455_v5  ;;  %v2132_v24 = vsub.f32 1.0, %v2100_v35  ;;  %v1975_v59 = vsub.f32 0.0, %v4163_v21 }
 0x2e7   : > { %v1845_v26 = vadd.f32 -0.28449672, %v1813_v57  ;;  %2846 = vrcp.f32 %v1596_v6  ;;  %v4209_v25 = vmul.f32 0.70710677, %v4204_v39  ;;  %v1910_v36 = vadd.f32 0.2548296, %v1878_v56 }
 0x2e8   : > { %2406 = vst [vmem:[%s3711_s14 + $0x30] sm:$0xff] %v2694_v46  ;;  %v2695_v8 = vpack.c.bf16 %v2287_v58, %v2286_v7  ;;  %v4214_v31 = vadd.f32 %v3813_v17, %v3933_v19  ;;  %v2196_v2 = vsub.f32 0.0, %v2132_v24  ;;  %v2007_v32 = vmul.f32 %v1975_v59, %v4163_v21 }
 0x2e9   : > { %v1877_v62 = vmul.f32 %v4173_v29, %v1845_v26  ;;  %v1534_v43 = vand.u32 2147483647, %v4209_v25  ;;  %v1980_v13 = vsub.f32 0.0, %v4189_v40  ;;  %v4228_v17 = vadd.f32 %v3819_v27, %v3967_v45 }
 0x2ea   : > { %2407 = vst [vmem:[%s3711_s14 + $0x38] sm:$0xff] %v2695_v8  ;;  %v4222_v23 = vmul.f32 0.70710677, %v4214_v31  ;;  %vm2164_vm8 = vcmp.lt.f32.partialorder %v4069_v52, 0.0  ;;  %v1942_v50 = vmul.f32 %v4153_v44, %v1910_v36  ;;  %v2062_v15 = vmul.f32 1.442695, %v2007_v32 }
 0x2eb   : > { %v4219_v14 = vpop.eup %2840  ;;  %v1909_v12 = vadd.f32 0.2548296, %v1877_v62  ;;  %v1566_v16 = vmul.f32 0.3275911, %v1534_v43  ;;  %v2228_v37 = vsel %vm2164_vm8, %v2196_v2, %v2132_v24  ;;  %v2012_v27 = vmul.f32 %v1980_v13, %v4189_v40 }
 0x2ec   : > { %v1687_v38 = vmul.f32 1.0614054, %v4219_v14  ;;  %v1533_v55 = vand.u32 2147483647, %v4222_v23  ;;  %v4237_v45 = vmul.f32 0.70710677, %v4228_v17 }
 0x2ed   : > { %v2843_v19 = vpop.eup %2842  ;;  %v1941_v53 = vmul.f32 %v4173_v29, %v1909_v12  ;;  %v1598_v4 = vadd.f32 1.0, %v1566_v16  ;;  %v2260_v44 = vadd.f32 1.0, %v2228_v37  ;;  %v1460_v54 = vmul.f32 0.5, %v4055_v3 }
 0x2ee   : > { %v2845_v34 = vpop.eup %2844  ;;  %v1719_v28 = vadd.f32 -1.4531521, %v1687_v38  ;;  %v1565_v1 = vmul.f32 0.3275911, %v1533_v55  ;;  %v2102_v29 = vmul.f32 %v2843_v19, %v1942_v50  ;;  %v1461_v30 = vmul.f32 0.5, %v4099_v47 }
 0x2ef   : > { %v2101_v49 = vmul.f32 %v2845_v34, %v1941_v53  ;;  %2848 = vrcp.f32 %v1598_v4  ;;  %v1535_v11 = vand.u32 2147483647, %v4237_v45  ;;  %vm2165_vm9 = vcmp.lt.f32.partialorder %v4115_v42, 0.0 }
 0x2f0   : > { %v1751_v0 = vmul.f32 %v4219_v14, %v1719_v28  ;;  %v1597_v41 = vadd.f32 1.0, %v1565_v1  ;;  %2850 = vpow2.f32 %v2062_v15  ;;  %v2072_v63 = vmul.f32 1.442695, %v2012_v27 }
 0x2f1   : > { %v4239_v52 = vpop.eup %2846  ;;  %v2133_v48 = vsub.f32 1.0, %v2101_v49  ;;  %v2292_v7 = vmul.f32 %v2260_v44, %v1460_v54  ;;  %v2134_v33 = vsub.f32 1.0, %v2102_v29  ;;  %v1567_v3 = vmul.f32 0.3275911, %v1535_v11 }
 0x2f2   : > { %v1783_v18 = vadd.f32 1.4214138, %v1751_v0  ;;  %v1692_v61 = vmul.f32 1.0614054, %v4239_v52  ;;  %2852 = vrcp.f32 %v1597_v41  ;;  %v1982_v47 = vsub.f32 0.0, %v4209_v25 }
 0x2f3   : > { %v2197_v35 = vsub.f32 0.0, %v2133_v48  ;;  %v1599_v46 = vadd.f32 1.0, %v1567_v3  ;;  %2854 = vpow2.f32 %v2072_v63  ;;  %v2198_v59 = vsub.f32 0.0, %v2134_v33 }
 0x2f4   : > { %v1815_v5 = vmul.f32 %v4219_v14, %v1783_v18  ;;  %v1724_v51 = vadd.f32 -1.4531521, %v1692_v61  ;;  %v1981_v26 = vsub.f32 0.0, %v4222_v23  ;;  %v2014_v32 = vmul.f32 %v1982_v47, %v4209_v25 }
 0x2f5   : > { %v2229_v10 = vsel %vm2165_vm9, %v2197_v35, %v2133_v48  ;;  %2856 = vrcp.f32 %v1599_v46  ;;  %vm2166_vm10 = vcmp.lt.f32.partialorder %v4094_v22, 0.0  ;;  %v1983_v4 = vsub.f32 0.0, %v4237_v45 }
 0x2f6   : > { %v2261_v56 = vadd.f32 1.0, %v2229_v10  ;;  %v1847_v57 = vadd.f32 -0.28449672, %v1815_v5  ;;  %v1756_v6 = vmul.f32 %v4239_v52, %v1724_v51  ;;  %v2230_v19 = vsel %vm2166_vm10, %v2198_v59, %v2134_v33 }
 0x2f7   : > { %v2013_v53 = vmul.f32 %v1981_v26, %v4222_v23  ;;  %v2076_v37 = vmul.f32 1.442695, %v2014_v32  ;;  %v1462_v0 = vmul.f32 0.5, %v4083_v20  ;;  %v1463_v61 = vmul.f32 0.5, %v4144_v60 }
 0x2f8   : > { %v2293_v58 = vmul.f32 %v2261_v56, %v1461_v30  ;;  %v1879_v24 = vmul.f32 %v4219_v14, %v1847_v57  ;;  %v1788_v42 = vadd.f32 1.4214138, %v1756_v6  ;;  %vm2167_vm11 = vcmp.lt.f32.partialorder %v4163_v21, 0.0 }
 0x2f9   : > { %v2849_v8 = vpop.eup %2848  ;;  %v2074_v44 = vmul.f32 1.442695, %v2013_v53  ;;  %2858 = vpow2.f32 %v2076_v37  ;;  %v2015_v35 = vmul.f32 %v1983_v4, %v4237_v45  ;;  %vm2172_vm12 = vcmp.lt.f32.partialorder %v4189_v40, 0.0 }
 0x2fa   : > { %v2698_v36 = vpack.c.bf16 %v2293_v58, %v2292_v7  ;;  %v1911_v62 = vadd.f32 0.2548296, %v1879_v24  ;;  %v1820_v2 = vmul.f32 %v4239_v52, %v1788_v42  ;;  %v1694_v43 = vmul.f32 1.0614054, %v2849_v8  ;;  %v2851_v12 = vpop.eup %2850 }
 0x2fb   : > { %2860 = vpow2.f32 %v2074_v44  ;;  %v2078_v57 = vmul.f32 1.442695, %v2015_v35  ;;  %v1468_v4 = vmul.f32 0.5, %v4180_v9  ;;  %vm2174_vm13 = vcmp.lt.f32.partialorder %v4209_v25, 0.0 }
 0x2fc   : > { %2410 = vst [vmem:[%s3711_s14 + $0x50] sm:$0xff] %v2698_v36  ;;  %v1943_v38 = vmul.f32 %v4219_v14, %v1911_v62  ;;  %v1852_v13 = vadd.f32 -0.28449672, %v1820_v2  ;;  %v2853_v16 = vpop.eup %2852  ;;  %v1726_v50 = vadd.f32 -1.4531521, %v1694_v43  ;;  %v2262_v14 = vadd.f32 1.0, %v2230_v19 }
 0x2fd   : > { %v1693_v28 = vmul.f32 1.0614054, %v2853_v16  ;;  %v2855_v29 = vpop.eup %2854  ;;  %2862 = vpow2.f32 %v2078_v57  ;;  %vm2173_vm14 = vcmp.lt.f32.partialorder %v4222_v23, 0.0  ;;  %vm2175_vm15 = vcmp.lt.f32.partialorder %v4237_v45, 0.0 }
 0x2fe   : > { %v2103_v55 = vmul.f32 %v2851_v12, %v1943_v38  ;;  %v1884_v34 = vmul.f32 %v4239_v52, %v1852_v13  ;;  %v1758_v15 = vmul.f32 %v2849_v8, %v1726_v50  ;;  %v2294_v63 = vmul.f32 %v2262_v14, %v1462_v0 }
 0x2ff   : > { %v1725_v22 = vadd.f32 -1.4531521, %v1693_v28  ;;  %v2857_v18 = vpop.eup %2856 }
 0x300   : > { %v2135_v49 = vsub.f32 1.0, %v2103_v55  ;;  %v1916_v1 = vadd.f32 0.2548296, %v1884_v34  ;;  %v1790_v27 = vadd.f32 1.4214138, %v1758_v15 }
 0x301   : > { %v1757_v54 = vmul.f32 %v2853_v16, %v1725_v22  ;;  %v1695_v51 = vmul.f32 1.0614054, %v2857_v18  ;;  %v1469_v22 = vmul.f32 0.5, %v4214_v31 }
 0x302   : > { %v2199_v48 = vsub.f32 0.0, %v2135_v49  ;;  %v1948_v41 = vmul.f32 %v4239_v52, %v1916_v1  ;;  %v1822_v30 = vmul.f32 %v2849_v8, %v1790_v27 }
 0x303   : > { %v1789_v20 = vadd.f32 1.4214138, %v1757_v54  ;;  %v1727_v10 = vadd.f32 -1.4531521, %v1695_v51  ;;  %v2859_v59 = vpop.eup %2858 }
 0x304   : > { %v2231_v11 = vsel %vm2167_vm11, %v2199_v48, %v2135_v49  ;;  %v2108_v5 = vmul.f32 %v2855_v29, %v1948_v41  ;;  %v1854_v33 = vadd.f32 -0.28449672, %v1822_v30  ;;  %v1470_v48 = vmul.f32 0.5, %v4204_v39 }
 0x305   : > { %v2263_v7 = vadd.f32 1.0, %v2231_v11  ;;  %v1821_v52 = vmul.f32 %v2853_v16, %v1789_v20  ;;  %v1759_v21 = vmul.f32 %v2857_v18, %v1727_v10  ;;  %v2861_v12 = vpop.eup %2860  ;;  %v1471_v41 = vmul.f32 0.5, %v4228_v17 }
 0x306   : > { %v1886_v56 = vmul.f32 %v2849_v8, %v1854_v33  ;;  %v2140_v60 = vsub.f32 1.0, %v2108_v5 }
 0x307   : > { %v2295_v3 = vmul.f32 %v2263_v7, %v1463_v61  ;;  %v1853_v6 = vadd.f32 -0.28449672, %v1821_v52  ;;  %v1791_v24 = vadd.f32 1.4214138, %v1759_v21  ;;  %v2863_v15 = vpop.eup %2862 }
 0x308   : > { %v1918_v46 = vadd.f32 0.2548296, %v1886_v56  ;;  %v2204_v26 = vsub.f32 0.0, %v2140_v60 }
 0x309   : > { %v2699_v47 = vpack.c.bf16 %v2295_v3, %v2294_v63  ;;  %v1885_v58 = vmul.f32 %v2853_v16, %v1853_v6  ;;  %v1823_v62 = vmul.f32 %v2857_v18, %v1791_v24 }
 0x30a   : > { %v1950_v42 = vmul.f32 %v2849_v8, %v1918_v46  ;;  %v2236_v13 = vsel %vm2172_vm12, %v2204_v26, %v2140_v60 }
 0x30b   : > { %2411 = vst [vmem:[%s3711_s14 + $0x58] sm:$0xff] %v2699_v47  ;;  %v1917_v36 = vadd.f32 0.2548296, %v1885_v58  ;;  %v1855_v43 = vadd.f32 -0.28449672, %v1823_v62  ;;  %v2268_v37 = vadd.f32 1.0, %v2236_v13 }
 0x30c   : > { %v2110_v2 = vmul.f32 %v2859_v59, %v1950_v42 }
 0x30d   : > { %v1949_v32 = vmul.f32 %v2853_v16, %v1917_v36  ;;  %v1887_v50 = vmul.f32 %v2857_v18, %v1855_v43  ;;  %v2300_v1 = vmul.f32 %v2268_v37, %v1468_v4 }
 0x30e   : > { %v2142_v38 = vsub.f32 1.0, %v2110_v2 }
 0x30f   : > { %v2109_v19 = vmul.f32 %v2861_v12, %v1949_v32  ;;  %v1919_v34 = vadd.f32 0.2548296, %v1887_v50 }
 0x310   : > { %v2206_v53 = vsub.f32 0.0, %v2142_v38 }
 0x311   : > { %v2141_v55 = vsub.f32 1.0, %v2109_v19  ;;  %v1951_v28 = vmul.f32 %v2857_v18, %v1919_v34 }
 0x312   : > { %v2238_v16 = vsel %vm2174_vm13, %v2206_v53, %v2142_v38 }
 0x313   : > { %v2205_v8 = vsub.f32 0.0, %v2141_v55  ;;  %v2111_v49 = vmul.f32 %v2863_v15, %v1951_v28  ;;  %v2270_v27 = vadd.f32 1.0, %v2238_v16 }
 0x315   : > { %v2237_v40 = vsel %vm2173_vm14, %v2205_v8, %v2141_v55  ;;  %v2143_v14 = vsub.f32 1.0, %v2111_v49  ;;  %v2302_v23 = vmul.f32 %v2270_v27, %v1470_v48 }
 0x316   : > { %v2269_v0 = vadd.f32 1.0, %v2237_v40 }
 0x317   : > { %v2207_v29 = vsub.f32 0.0, %v2143_v14 }
 0x318   : > { %v2301_v44 = vmul.f32 %v2269_v0, %v1469_v22 }
 0x319   : > { %v2239_v25 = vsel %vm2175_vm15, %v2207_v29, %v2143_v14 }
 0x31a   : > { %v2702_v9 = vpack.c.bf16 %v2301_v44, %v2300_v1  ;;  %v2271_v54 = vadd.f32 1.0, %v2239_v25 }
 0x31c   : > { %2414 = vst [vmem:[%s3711_s14 + $0x70] sm:$0xff] %v2702_v9  ;;  %v2303_v18 = vmul.f32 %v2271_v54, %v1471_v41 }
 0x31e   : > { %v2703_v61 = vpack.c.bf16 %v2303_v18, %v2302_v23 }
 0x320   : > { %2415 = vst [vmem:[%s3711_s14 + $0x78] sm:$0xff] %v2703_v61 }
 0x321 PF: > { %s15_s20 = sadd.s32 1, %s2887_s20   ;;  %s4300_s18 = smov %s2883_s19 }
 0x322   : > { %p12_p5 = scmp.ge.s32.totalorder %s15_s20, 4   ;;  %s4301_s19 = smov %s4303_s21 }
 0x324   :  { %14 = sbr.rel (!%p12_p5) target bundleno = 2 (0x2), region = 76 }

// kernel: register_vit_forward.14
= control target key start
LH: loop header
LB: loop body
LE: loop exit
PB: predicated region body
PF: predicated region fallthrough
CT: control target
= control target key end

     0   :  { %s2046_s15 = smov 0   ;;  %s2048_s16 = smov 0   ;;  %s2526_s0 = inlined_call_operand.vmem [shape: bf16[64,1024], index: 0, kind: input, shape index: {}]   ;;  %s2527_s1 = inlined_call_operand.vmem [shape: bf16[1024,256], index: 1, kind: input, shape index: {}]   ;;  %s2528_s2 = inlined_call_operand.vmem [shape: f32[1,256], index: 2, kind: input, shape index: {}]   ;;  %s2529_s3 = inlined_call_operand.vmem [shape: bf16[64,256], index: 3, kind: input, shape index: {}]   ;;  %s2530_s4 = inlined_call_operand.vmem [shape: bf16[64,256], index: 4, kind: output, shape index: {}]  }
   0x1   :  { %s2050_s17 = smov 0  }
   0x2 LB: > { %s26_s18 = sadd.s32 1, %s2015_s16  ;;  %p1582_p0 = scmp.ge.s32.totalorder %s2019_s17, 1  ;;  %s2019_s17 = sphi %s2050_s17, %s14_s17   ;;  %s2015_s16 = sphi %s2048_s16, %s2532_s16   ;;  %s2011_s15 = sphi %s2046_s15, %s2531_s15  }
   0x3   : > { %p28_p1 = scmp.ge.s32.totalorder %s26_s18, 2  ;;  %p218_p2 = scmp.lt.s32.totalorder %s2019_s17, 3 }
   0x5   : > { %s2534_s18 = smov (%p28_p1, %s26_s18), 0  ;;  %p219_p3 = pnand %p1582_p0, %p218_p2 }
   0x6   : > { %v1805_v0 = vld [vmem:[%s2527_s1 + $0x4] ss:$8 sps:$4 sm:$0xff] (!%p219_p3)   ;;  %v1809_v2 = vld [vmem:[%s2527_s1] ss:$8 sps:$4 sm:$0xff] (!%p219_p3)   ;;  %v1811_v4 = vld [vmem:[%s2527_s1 + $0x14] ss:$8 sps:$4 sm:$0xff] (!%p219_p3)  }
   0x7   : > { %222 = sbr.rel (%p219_p3) target bundleno = 367 (0x16f), region = 36  ;;  %v1807_v1 = vld [vmem:[%s2527_s1 + $0x204] ss:$8 sps:$4 sm:$0xff] (!%p219_p3)   ;;  %1187 = vmatprep.subr.bf16.mxu1 (!%p219_p3), %v1805_v0  ;;  %v1810_v3 = vld [vmem:[%s2527_s1 + $0x200] ss:$8 sps:$4 sm:$0xff] (!%p219_p3)   ;;  %s1583_s9 = sshll.u32 (!%p219_p3), %s2011_s15, 2 }
   0x8   : > { %1293 = vmatprep.subr.bf16.mxu0 (!%p219_p3), %v1807_v1  ;;  %1188 = vmatpush1.bf16.msra.mxu1 (!%p219_p3), %v1809_v2  ;;  %v1813_v5 = vld [vmem:[%s2527_s1 + $0x214] ss:$8 sps:$4 sm:$0xff] (!%p219_p3)   ;;  %v1815_v6 = vld [vmem:[%s2527_s1 + $0x10] ss:$8 sps:$4 sm:$0xff] (!%p219_p3)   ;;  %v1817_v8 = vld [vmem:[%s2527_s1 + $0x24] ss:$8 sps:$4 sm:$0xff] (!%p219_p3)  }
   0x9   : > { %1294 = vmatpush1.bf16.msra.mxu0 (!%p219_p3), %v1810_v3  ;;  %1189 = vmatprep.subr.bf16.mxu1 (!%p219_p3), %v1811_v4  ;;  %v1816_v7 = vld [vmem:[%s2527_s1 + $0x210] ss:$8 sps:$4 sm:$0xff] (!%p219_p3)   ;;  %v1819_v9 = vld [vmem:[%s2527_s1 + $0x224] ss:$8 sps:$4 sm:$0xff] (!%p219_p3)   ;;  %v1821_v10 = vld [vmem:[%s2527_s1 + $0x20] ss:$8 sps:$4 sm:$0xff] (!%p219_p3)  }
   0xa   : > { %1295 = vmatprep.subr.bf16.mxu0 (!%p219_p3), %v1813_v5  ;;  %v1822_v11 = vld [vmem:[%s2527_s1 + $0x220] ss:$8 sps:$4 sm:$0xff] (!%p219_p3)   ;;  %v1823_v12 = vld [vmem:[%s2527_s1 + $0x34] ss:$8 sps:$4 sm:$0xff] (!%p219_p3)   ;;  %v1827_v14 = vld [vmem:[%s2527_s1 + $0x30] ss:$8 sps:$4 sm:$0xff] (!%p219_p3)  }
   0xb   : > { %v1825_v13 = vld [vmem:[%s2527_s1 + $0x234] ss:$8 sps:$4 sm:$0xff] (!%p219_p3)   ;;  %v1828_v15 = vld [vmem:[%s2527_s1 + $0x230] ss:$8 sps:$4 sm:$0xff] (!%p219_p3)   ;;  %v1829_v16 = vld [vmem:[%s2527_s1 + $0x44] ss:$8 sps:$4 sm:$0xff] (!%p219_p3)  }
   0xc   : > { %1190 = vmatpush1.bf16.msra.mxu1 (!%p219_p3), %v1815_v6  ;;  %v1831_v17 = vld [vmem:[%s2527_s1 + $0x244] ss:$8 sps:$4 sm:$0xff] (!%p219_p3)   ;;  %v1833_v18 = vld [vmem:[%s2527_s1 + $0x40] ss:$8 sps:$4 sm:$0xff] (!%p219_p3)   ;;  %v1835_v20 = vld [vmem:[%s2527_s1 + $0x54] ss:$8 sps:$4 sm:$0xff] (!%p219_p3)  }
   0xd   : > { %1296 = vmatpush1.bf16.msra.mxu0 (!%p219_p3), %v1816_v7  ;;  %1191 = vmatprep.subr.bf16.mxu1 (!%p219_p3), %v1817_v8  ;;  %v1834_v19 = vld [vmem:[%s2527_s1 + $0x240] ss:$8 sps:$4 sm:$0xff] (!%p219_p3)   ;;  %v1837_v21 = vld [vmem:[%s2527_s1 + $0x254] ss:$8 sps:$4 sm:$0xff] (!%p219_p3)   ;;  %v1839_v22 = vld [vmem:[%s2527_s1 + $0x50] ss:$8 sps:$4 sm:$0xff] (!%p219_p3)  }
   0xe   : > { %1297 = vmatprep.subr.bf16.mxu0 %v1819_v9  ;;  %v1840_v23 = vld [vmem:[%s2527_s1 + $0x250] ss:$8 sps:$4 sm:$0xff]   ;;  %v1841_v24 = vld [vmem:[%s2527_s1 + $0x64] ss:$8 sps:$4 sm:$0xff]   ;;  %v1845_v26 = vld [vmem:[%s2527_s1 + $0x60] ss:$8 sps:$4 sm:$0xff]  }
   0xf   : > { %v1843_v25 = vld [vmem:[%s2527_s1 + $0x264] ss:$8 sps:$4 sm:$0xff]   ;;  %v1846_v27 = vld [vmem:[%s2527_s1 + $0x260] ss:$8 sps:$4 sm:$0xff]   ;;  %v1847_v28 = vld [vmem:[%s2527_s1 + $0x74] ss:$8 sps:$4 sm:$0xff]  }
  0x10   : > { %1192 = vmatpush1.bf16.msra.mxu1 %v1821_v10  ;;  %v1849_v29 = vld [vmem:[%s2527_s1 + $0x274] ss:$8 sps:$4 sm:$0xff]   ;;  %v1851_v30 = vld [vmem:[%s2527_s1 + $0x70] ss:$8 sps:$4 sm:$0xff]   ;;  %v1853_v32 = vld [vmem:[%s2527_s1 + $0x84] ss:$8 sps:$4 sm:$0xff]  }
  0x11   : > { %1298 = vmatpush1.bf16.msra.mxu0 %v1822_v11  ;;  %1193 = vmatprep.subr.bf16.mxu1 %v1823_v12  ;;  %v1852_v31 = vld [vmem:[%s2527_s1 + $0x270] ss:$8 sps:$4 sm:$0xff]   ;;  %p270_p4 = scmp.lt.s32.totalorder %s1583_s9, 7  ;;  %v1855_v33 = vld [vmem:[%s2527_s1 + $0x284] ss:$8 sps:$4 sm:$0xff]  }
  0x12   : > { %1299 = vmatprep.subr.bf16.mxu0 %v1825_v13  ;;  %v1857_v34 = vld [vmem:[%s2527_s1 + $0x80] ss:$8 sps:$4 sm:$0xff]   ;;  %v1859_v36 = vld [vmem:[%s2527_s1 + $0x94] ss:$8 sps:$4 sm:$0xff]   ;;  %v1863_v38 = vld [vmem:[%s2527_s1 + $0x90] ss:$8 sps:$4 sm:$0xff]  }
  0x13   : > { %v1858_v35 = vld [vmem:[%s2527_s1 + $0x280] ss:$8 sps:$4 sm:$0xff]   ;;  %s2536_s9 = smov (!%p270_p4, %s1583_s9), 7  ;;  %v1861_v37 = vld [vmem:[%s2527_s1 + $0x294] ss:$8 sps:$4 sm:$0xff]  }
  0x14   : > { %1194 = vmatpush1.bf16.msra.mxu1 %v1827_v14  ;;  %v1864_v39 = vld [vmem:[%s2527_s1 + $0x290] ss:$8 sps:$4 sm:$0xff]   ;;  %v1865_v40 = vld [vmem:[%s2527_s1 + $0xa4] ss:$8 sps:$4 sm:$0xff]   ;;  %s1742_s10 = sshll.u32 %s2536_s9, 5 }
  0x15   : > { %1300 = vmatpush1.bf16.msra.mxu0 %v1828_v15  ;;  %1195 = vmatprep.subr.bf16.mxu1 %v1829_v16  ;;  %v1867_v41 = vld [vmem:[%s2527_s1 + $0x2a4] ss:$8 sps:$4 sm:$0xff]   ;;  %v1869_v42 = vld [vmem:[%s2527_s1 + $0xa0] ss:$8 sps:$4 sm:$0xff]   ;;  %s2205_s22 = scalar_lea.vmem %s2526_s0, %s1742_s10  ;;  %v1871_v44 = vld [vmem:[%s2527_s1 + $0xb4] ss:$8 sps:$4 sm:$0xff]  }
  0x16   : > { %1301 = vmatprep.subr.bf16.mxu0 %v1831_v17  ;;  %v1870_v43 = vld [vmem:[%s2527_s1 + $0x2a0] ss:$8 sps:$4 sm:$0xff]   ;;  %v1873_v45 = vld [vmem:[%s2527_s1 + $0x2b4] ss:$8 sps:$4 sm:$0xff]   ;;  %v1875_v46 = vld [vmem:[%s2527_s1 + $0xb0] ss:$8 sps:$4 sm:$0xff]  }
  0x17   : > { %v1876_v47 = vld [vmem:[%s2527_s1 + $0x2b0] ss:$8 sps:$4 sm:$0xff]   ;;  %v311_v48 = vld [vmem:[%s2205_s22] sm:$0xff]  ;;  %v1883_v58 = vld [vmem:[%s2527_s1 + $0xd4] ss:$8 sps:$4 sm:$0xff]  }
  0x18   : > { %1196 = vmatpush1.bf16.msra.mxu1 %v1833_v18  ;;  %v315_v49 = vld [vmem:[%s2205_s22 + $0x20] sm:$0xff]  ;;  %v313_v53 = vld [vmem:[%s2205_s22 + $0x10] sm:$0xff] }
  0x19   : > { %1302 = vmatpush1.bf16.msra.mxu0 %v1834_v19  ;;  %1197 = vmatprep.subr.bf16.mxu1 %v1835_v20  ;;  %v1877_v50 = vld [vmem:[%s2527_s1 + $0xc4] ss:$8 sps:$4 sm:$0xff]   ;;  %v1593_v52 = vcombine.high %v311_v48, %v315_v49  ;;  %v317_v54 = vld [vmem:[%s2205_s22 + $0x30] sm:$0xff]  ;;  %v1881_v56 = vld [vmem:[%s2527_s1 + $0xc0] ss:$8 sps:$4 sm:$0xff]   ;;  %v1592_v8 = vcombine.low %v311_v48, %v315_v49 }
  0x1a   : > { %1303 = vmatprep.subr.bf16.mxu0 %v1837_v21  ;;  %v1879_v51 = vld [vmem:[%s2527_s1 + $0x2c4] ss:$8 sps:$4 sm:$0xff]   ;;  %v1597_v55 = vcombine.high %v313_v53, %v317_v54  ;;  %v1882_v57 = vld [vmem:[%s2527_s1 + $0x2c0] ss:$8 sps:$4 sm:$0xff]   ;;  %v1885_v59 = vld [vmem:[%s2527_s1 + $0x2d4] ss:$8 sps:$4 sm:$0xff]   ;;  %v1596_v10 = vcombine.low %v313_v53, %v317_v54 }
  0x1b   : > { %1219 = vmatprep.mubr.bf16.mxu1 %v1593_v52  ;;  %v1887_v60 = vld [vmem:[%s2527_s1 + $0xd0] ss:$8 sps:$4 sm:$0xff]   ;;  %v1889_v62 = vld [vmem:[%s2527_s1 + $0xe4] ss:$8 sps:$4 sm:$0xff]   ;;  %v1893_v0 = vld [vmem:[%s2527_s1 + $0xe0] ss:$8 sps:$4 sm:$0xff]  }
  0x1c   : > { %1198 = vmatpush1.bf16.msra.mxu1 %v1839_v22  ;;  %1325 = vmatprep.mubr.bf16.mxu0 %v1597_v55  ;;  %v1888_v61 = vld [vmem:[%s2527_s1 + $0x2d0] ss:$8 sps:$4 sm:$0xff]   ;;  %v1891_v63 = vld [vmem:[%s2527_s1 + $0x2e4] ss:$8 sps:$4 sm:$0xff]   ;;  %v1894_v1 = vld [vmem:[%s2527_s1 + $0x2e0] ss:$8 sps:$4 sm:$0xff]  }
  0x1d   : > { %1304 = vmatpush1.bf16.msra.mxu0 %v1840_v23  ;;  %1199 = vmatprep.subr.bf16.mxu1 %v1841_v24  ;;  %v1895_v2 = vld [vmem:[%s2527_s1 + $0xf4] ss:$8 sps:$4 sm:$0xff]   ;;  %v1899_v4 = vld [vmem:[%s2527_s1 + $0xf0] ss:$8 sps:$4 sm:$0xff]   ;;  %v1903_v6 = vld [vmem:[%s2527_s1 + $0x104] ss:$8 sps:$4 sm:$0xff]  }
  0x1e   : > { %1305 = vmatprep.subr.bf16.mxu0 %v1843_v25  ;;  %v1897_v3 = vld [vmem:[%s2527_s1 + $0x2f4] ss:$8 sps:$4 sm:$0xff]   ;;  %v1900_v5 = vld [vmem:[%s2527_s1 + $0x2f0] ss:$8 sps:$4 sm:$0xff]   ;;  %v1906_v7 = vld [vmem:[%s2527_s1 + $0x304] ss:$8 sps:$4 sm:$0xff]  }
  0x1f   : > { %v1901_v9 = vld [vmem:[%s2527_s1 + $0x100] ss:$8 sps:$4 sm:$0xff]   ;;  %v1909_v12 = vld [vmem:[%s2527_s1 + $0x114] ss:$8 sps:$4 sm:$0xff]   ;;  %v1907_v14 = vld [vmem:[%s2527_s1 + $0x110] ss:$8 sps:$4 sm:$0xff]  }
  0x20   : > { %1200 = vmatpush1.bf16.msra.mxu1 %v1845_v26  ;;  %v1904_v11 = vld [vmem:[%s2527_s1 + $0x300] ss:$8 sps:$4 sm:$0xff]   ;;  %v1912_v13 = vld [vmem:[%s2527_s1 + $0x314] ss:$8 sps:$4 sm:$0xff]   ;;  %v1910_v15 = vld [vmem:[%s2527_s1 + $0x310] ss:$8 sps:$4 sm:$0xff]  }
  0x21   : > { %1306 = vmatpush1.bf16.msra.mxu0 %v1846_v27  ;;  %1201 = vmatprep.subr.bf16.mxu1 %v1847_v28  ;;  %v1915_v16 = vld [vmem:[%s2527_s1 + $0x124] ss:$8 sps:$4 sm:$0xff]   ;;  %v1913_v18 = vld [vmem:[%s2527_s1 + $0x120] ss:$8 sps:$4 sm:$0xff]   ;;  %v1921_v20 = vld [vmem:[%s2527_s1 + $0x134] ss:$8 sps:$4 sm:$0xff]  }
  0x22   : > { %1307 = vmatprep.subr.bf16.mxu0 %v1849_v29  ;;  %v1918_v17 = vld [vmem:[%s2527_s1 + $0x324] ss:$8 sps:$4 sm:$0xff]   ;;  %v1916_v19 = vld [vmem:[%s2527_s1 + $0x320] ss:$8 sps:$4 sm:$0xff]   ;;  %v1924_v21 = vld [vmem:[%s2527_s1 + $0x334] ss:$8 sps:$4 sm:$0xff]  }
  0x23   : > { %v1919_v22 = vld [vmem:[%s2527_s1 + $0x130] ss:$8 sps:$4 sm:$0xff]   ;;  %v1927_v24 = vld [vmem:[%s2527_s1 + $0x144] ss:$8 sps:$4 sm:$0xff]   ;;  %v1925_v26 = vld [vmem:[%s2527_s1 + $0x140] ss:$8 sps:$4 sm:$0xff]  }
  0x24   : > { %1202 = vmatpush1.bf16.msra.mxu1 %v1851_v30  ;;  %v1922_v23 = vld [vmem:[%s2527_s1 + $0x330] ss:$8 sps:$4 sm:$0xff]   ;;  %v1930_v25 = vld [vmem:[%s2527_s1 + $0x344] ss:$8 sps:$4 sm:$0xff]   ;;  %v1928_v27 = vld [vmem:[%s2527_s1 + $0x340] ss:$8 sps:$4 sm:$0xff]  }
  0x25   : > { %1308 = vmatpush1.bf16.msra.mxu0 %v1852_v31  ;;  %1203 = vmatprep.subr.bf16.mxu1 %v1853_v32  ;;  %v1933_v28 = vld [vmem:[%s2527_s1 + $0x154] ss:$8 sps:$4 sm:$0xff]   ;;  %v319_v30 = vld [vmem:[%s2205_s22 + $0x40] sm:$0xff]  ;;  %v1943_v52 = vld [vmem:[%s2527_s1 + $0x170] ss:$8 sps:$4 sm:$0xff]  }
  0x26   : > { %1309 = vmatprep.subr.bf16.mxu0 %v1855_v33  ;;  %v1936_v29 = vld [vmem:[%s2527_s1 + $0x354] ss:$8 sps:$4 sm:$0xff]   ;;  %v323_v31 = vld [vmem:[%s2205_s22 + $0x60] sm:$0xff]  ;;  %v1946_v53 = vld [vmem:[%s2527_s1 + $0x370] ss:$8 sps:$4 sm:$0xff]  }
  0x27   : > { %v1601_v32 = vcombine.high %v319_v30, %v323_v31  ;;  %v321_v33 = vld [vmem:[%s2205_s22 + $0x50] sm:$0xff]  ;;  %v1951_v54 = vld [vmem:[%s2527_s1 + $0x184] ss:$8 sps:$4 sm:$0xff]  }
  0x28   : > { %1204 = vmatpush1.bf16.msra.mxu1 %v1857_v34  ;;  %v325_v34 = vld [vmem:[%s2205_s22 + $0x70] sm:$0xff]  ;;  %v1954_v55 = vld [vmem:[%s2527_s1 + $0x384] ss:$8 sps:$4 sm:$0xff]  }
  0x29   : > { %1310 = vmatpush1.bf16.msra.mxu0 %v1858_v35  ;;  %1205 = vmatprep.subr.bf16.mxu1 %v1859_v36  ;;  %v1931_v35 = vld [vmem:[%s2527_s1 + $0x150] ss:$8 sps:$4 sm:$0xff]   ;;  %v1948_v48 = vld [vmem:[%s2527_s1 + $0x374] ss:$8 sps:$4 sm:$0xff]  }
  0x2a   : > { %1311 = vmatprep.subr.bf16.mxu0 %v1861_v37  ;;  %v1934_v36 = vld [vmem:[%s2527_s1 + $0x350] ss:$8 sps:$4 sm:$0xff]   ;;  %v1605_v37 = vcombine.high %v321_v33, %v325_v34 }
  0x2c   : > { %1206 = vmatpush1.bf16.msra.mxu1 %v1863_v38  ;;  %v1600_v38 = vcombine.low %v319_v30, %v323_v31 }
  0x2d   : > { %1312 = vmatpush1.bf16.msra.mxu0 %v1864_v39  ;;  %1207 = vmatprep.subr.bf16.mxu1 %v1865_v40  ;;  %v1604_v39 = vcombine.low %v321_v33, %v325_v34  ;;  %v1939_v40 = vld [vmem:[%s2527_s1 + $0x164] ss:$8 sps:$4 sm:$0xff]  }
  0x2e   : > { %1313 = vmatprep.subr.bf16.mxu0 %v1867_v41  ;;  %v1942_v41 = vld [vmem:[%s2527_s1 + $0x364] ss:$8 sps:$4 sm:$0xff]  }
  0x30   : > { %1208 = vmatpush1.bf16.msra.mxu1 %v1869_v42  ;;  %v1937_v42 = vld [vmem:[%s2527_s1 + $0x160] ss:$8 sps:$4 sm:$0xff]  }
  0x31   : > { %1314 = vmatpush1.bf16.msra.mxu0 %v1870_v43  ;;  %1209 = vmatprep.subr.bf16.mxu1 %v1871_v44  ;;  %v1940_v43 = vld [vmem:[%s2527_s1 + $0x360] ss:$8 sps:$4 sm:$0xff]  }
  0x32   : > { %1315 = vmatprep.subr.bf16.mxu0 %v1873_v45  ;;  %v2360_v44 = vld [vmem:[%s2205_s22 + $0x8] sm:$0xff] }
  0x33   : > { %v2363_v45 = vld [vmem:[%s2205_s22 + $0x28] sm:$0xff] }
  0x34   : > { %1210 = vmatpush1.bf16.msra.mxu1 %v1875_v46  ;;  %v2366_v46 = vld [vmem:[%s2205_s22 + $0x18] sm:$0xff]  ;;  %v1595_v49 = vcombine.high %v2360_v44, %v2363_v45 }
  0x35   : > { %1316 = vmatpush1.bf16.msra.mxu0 %v1876_v47  ;;  %1211 = vmatprep.subr.bf16.mxu1 %v1877_v50  ;;  %v1945_v47 = vld [vmem:[%s2527_s1 + $0x174] ss:$8 sps:$4 sm:$0xff]  }
  0x36   : > { %1317 = vmatprep.subr.bf16.mxu0 %v1879_v51  ;;  %v2377_v50 = vld [vmem:[%s2205_s22 + $0x38] sm:$0xff] }
  0x37   : > { %v1599_v51 = vcombine.high %v2366_v46, %v2377_v50 }
  0x38   : > { %1212 = vmatpush1.bf16.msra.mxu1 %v1881_v56  ;;  %v1949_v56 = vld [vmem:[%s2527_s1 + $0x180] ss:$8 sps:$4 sm:$0xff]  }
  0x39   : > { %1318 = vmatpush1.bf16.msra.mxu0 %v1882_v57  ;;  %1213 = vmatprep.subr.bf16.mxu1 %v1883_v58  ;;  %v1952_v57 = vld [vmem:[%s2527_s1 + $0x380] ss:$8 sps:$4 sm:$0xff]   ;;  %v1957_v58 = vld [vmem:[%s2527_s1 + $0x194] ss:$8 sps:$4 sm:$0xff]  }
  0x3a   : > { %1319 = vmatprep.subr.bf16.mxu0 %v1885_v59  ;;  %v1960_v59 = vld [vmem:[%s2527_s1 + $0x394] ss:$8 sps:$4 sm:$0xff]  }
  0x3c   : > { %1214 = vmatpush1.bf16.msra.mxu1 %v1887_v60  ;;  %v1955_v60 = vld [vmem:[%s2527_s1 + $0x190] ss:$8 sps:$4 sm:$0xff]  }
  0x3d   : > { %1320 = vmatpush1.bf16.msra.mxu0 %v1888_v61  ;;  %1215 = vmatprep.subr.bf16.mxu1 %v1889_v62  ;;  %v1958_v61 = vld [vmem:[%s2527_s1 + $0x390] ss:$8 sps:$4 sm:$0xff]   ;;  %v1963_v62 = vld [vmem:[%s2527_s1 + $0x1a4] ss:$8 sps:$4 sm:$0xff]  }
  0x3e   : > { %1321 = vmatprep.subr.bf16.mxu0 %v1891_v63  ;;  %v1966_v63 = vld [vmem:[%s2527_s1 + $0x3a4] ss:$8 sps:$4 sm:$0xff]  }
  0x40   : > { %1216 = vmatpush1.bf16.msra.mxu1 %v1893_v0  ;;  %v1961_v0 = vld [vmem:[%s2527_s1 + $0x1a0] ss:$8 sps:$4 sm:$0xff]  }
  0x41   : > { %1322 = vmatpush1.bf16.msra.mxu0 %v1894_v1  ;;  %1217 = vmatprep.subr.bf16.mxu1 %v1895_v2  ;;  %v1964_v1 = vld [vmem:[%s2527_s1 + $0x3a0] ss:$8 sps:$4 sm:$0xff]   ;;  %v1969_v2 = vld [vmem:[%s2527_s1 + $0x1b4] ss:$8 sps:$4 sm:$0xff]  }
  0x42   : > { %1323 = vmatprep.subr.bf16.mxu0 %v1897_v3  ;;  %v1972_v3 = vld [vmem:[%s2527_s1 + $0x3b4] ss:$8 sps:$4 sm:$0xff]  }
  0x44   : > { %1218 = vmatpush1.bf16.msra.mxu1 %v1899_v4  ;;  %v1967_v4 = vld [vmem:[%s2527_s1 + $0x1b0] ss:$8 sps:$4 sm:$0xff]  }
  0x45   : > { %1324 = vmatpush1.bf16.msra.mxu0 %v1900_v5  ;;  %1240 = vmatprep.subr.bf16.mxu1 %v1903_v6  ;;  %v1970_v5 = vld [vmem:[%s2527_s1 + $0x3b0] ss:$8 sps:$4 sm:$0xff]   ;;  %v1975_v6 = vld [vmem:[%s2527_s1 + $0x1c4] ss:$8 sps:$4 sm:$0xff]  }
  0x46   : > { %1346 = vmatprep.subr.bf16.mxu0 %v1906_v7  ;;  %v1978_v7 = vld [vmem:[%s2527_s1 + $0x3c4] ss:$8 sps:$4 sm:$0xff]  }
  0x47   : > { %1220 = vmatmul.mubr.bf16.vlgmr.msra.gmra.mrb[0].mxu1 %v1592_v8  ;;  %v1973_v8 = vld [vmem:[%s2527_s1 + $0x1c0] ss:$8 sps:$4 sm:$0xff]  }
  0x48   : > { %1326 = vmatmul.mubr.bf16.vlgmr.msra.gmra.mrb[0].mxu0 %v1596_v10  ;;  %1241 = vmatpush1.bf16.msra.mxu1 %v1901_v9  ;;  %v1976_v9 = vld [vmem:[%s2527_s1 + $0x3c0] ss:$8 sps:$4 sm:$0xff]   ;;  %v1981_v10 = vld [vmem:[%s2527_s1 + $0x1d4] ss:$8 sps:$4 sm:$0xff]  }
  0x49   : > { %1347 = vmatpush1.bf16.msra.mxu0 %v1904_v11  ;;  %1242 = vmatprep.subr.bf16.mxu1 %v1909_v12  ;;  %v1984_v11 = vld [vmem:[%s2527_s1 + $0x3d4] ss:$8 sps:$4 sm:$0xff]   ;;  %v1979_v12 = vld [vmem:[%s2527_s1 + $0x1d0] ss:$8 sps:$4 sm:$0xff]  }
  0x4a   : > { %1348 = vmatprep.subr.bf16.mxu0 %v1912_v13  ;;  %1229 = vmatprep.mubr.bf16.mxu1 %v1601_v32  ;;  %v1982_v13 = vld [vmem:[%s2527_s1 + $0x3d0] ss:$8 sps:$4 sm:$0xff]   ;;  %v457_v32 = vlaneseq }
  0x4b   : > { %1335 = vmatprep.mubr.bf16.mxu0 %v1605_v37 }
  0x4c   : > { %1243 = vmatpush1.bf16.msra.mxu1 %v1907_v14  ;;  %v1987_v14 = vld [vmem:[%s2527_s1 + $0x1e4] ss:$8 sps:$4 sm:$0xff]   ;;  %v458_v33 = vshrl.u32 %v457_v32, 7 }
  0x4d   : > { %1349 = vmatpush1.bf16.msra.mxu0 %v1910_v15  ;;  %1244 = vmatprep.subr.bf16.mxu1 %v1915_v16  ;;  %v1990_v15 = vld [vmem:[%s2527_s1 + $0x3e4] ss:$8 sps:$4 sm:$0xff]   ;;  %v1985_v16 = vld [vmem:[%s2527_s1 + $0x1e0] ss:$8 sps:$4 sm:$0xff]  }
  0x4e   : > { %1350 = vmatprep.subr.bf16.mxu0 %v1918_v17  ;;  %v1988_v17 = vld [vmem:[%s2527_s1 + $0x3e0] ss:$8 sps:$4 sm:$0xff]   ;;  %v459_v34 = vsub.s32 0, %v458_v33 }
  0x4f   : > { %1230 = vmatmul.mubr.bf16.gmra.mrb[4].mxu1 %v1600_v38 }
  0x50   : > { %1245 = vmatpush1.bf16.msra.mxu1 %v1913_v18  ;;  %1336 = vmatmul.mubr.bf16.gmra.mrb[4].mxu0 %v1604_v39  ;;  %v1993_v18 = vld [vmem:[%s2527_s1 + $0x1f4] ss:$8 sps:$4 sm:$0xff]  }
  0x51   : > { %1351 = vmatpush1.bf16.msra.mxu0 %v1916_v19  ;;  %1246 = vmatprep.subr.bf16.mxu1 %v1921_v20  ;;  %v1996_v19 = vld [vmem:[%s2527_s1 + $0x3f4] ss:$8 sps:$4 sm:$0xff]   ;;  %v1991_v20 = vld [vmem:[%s2527_s1 + $0x1f0] ss:$8 sps:$4 sm:$0xff]  }
  0x52   : > { %1352 = vmatprep.subr.bf16.mxu0 %v1924_v21  ;;  %1272 = vmatprep.mubr.bf16.mxu1 %v1595_v49  ;;  %v1994_v21 = vld [vmem:[%s2527_s1 + $0x3f0] ss:$8 sps:$4 sm:$0xff]  }
  0x53   : > { %1378 = vmatprep.mubr.bf16.mxu0 %v1599_v51 }
  0x54   : > { %1247 = vmatpush1.bf16.msra.mxu1 %v1919_v22  ;;  %v320_v22 = vld [vmem:[%s2205_s22 + $0x48] sm:$0xff] }
  0x55   : > { %1353 = vmatpush1.bf16.msra.mxu0 %v1922_v23  ;;  %1248 = vmatprep.subr.bf16.mxu1 %v1927_v24  ;;  %v324_v23 = vld [vmem:[%s2205_s22 + $0x68] sm:$0xff]  ;;  %v322_v24 = vld [vmem:[%s2205_s22 + $0x58] sm:$0xff] }
  0x56   : > { %1354 = vmatprep.subr.bf16.mxu0 %v1930_v25  ;;  %v326_v25 = vld [vmem:[%s2205_s22 + $0x78] sm:$0xff]  ;;  %v1602_v30 = vcombine.low %v320_v22, %v324_v23  ;;  %s1743_s22 = sshll.u32 %s2536_s9, 3 }
  0x57   : > { %v1606_v31 = vcombine.low %v322_v24, %v326_v25  ;;  %s2500_s27 = scalar_lea.vmem %s2529_s3, %s1743_s22  ;;  %s2510_s30 = scalar_lea.vmem %s2530_s4, %s1743_s22 }
  0x58   : > { %1249 = vmatpush1.bf16.msra.mxu1 %v1925_v26  ;;  %v1594_v26 = vcombine.low %v2360_v44, %v2363_v45  ;;  %v1399_v38 = vld [vmem:[%s2500_s27] sm:$0xff] }
  0x59   : > { %1355 = vmatpush1.bf16.msra.mxu0 %v1928_v27  ;;  %1250 = vmatprep.subr.bf16.mxu1 %v1933_v28  ;;  %v1598_v27 = vcombine.low %v2366_v46, %v2377_v50  ;;  %v1603_v28 = vcombine.high %v320_v22, %v324_v23  ;;  %v1403_v44 = vunpack.c.l.bf16 %v1399_v38 }
  0x5a   : > { %1356 = vmatprep.subr.bf16.mxu0 %v1936_v29  ;;  %v1607_v29 = vcombine.high %v322_v24, %v326_v25 }
  0x5c   : > { %1251 = vmatpush1.bf16.msra.mxu1 %v1931_v35  ;;  %v455_v35 = vld [vmem:[%s2528_s2] sm:$0x3] }
  0x5d   : > { %1357 = vmatpush1.bf16.msra.mxu0 %v1934_v36  ;;  %1252 = vmatprep.subr.bf16.mxu1 %v1939_v40  ;;  %v463_v36 = vsub.s32 1, %v458_v33  ;;  %v460_v37 = vrot.slane %v455_v35, %v459_v34 }
  0x5e   : > { %1358 = vmatprep.subr.bf16.mxu0 %v1942_v41 }
  0x5f   : > { %v464_v39 = vrot.slane %v455_v35, %v463_v36 }
  0x60   : > { %1253 = vmatpush1.bf16.msra.mxu1 %v1937_v42  ;;  %v1400_v42 = vld [vmem:[%s2500_s27 + $0x8] sm:$0xff] }
  0x61   : > { %1359 = vmatpush1.bf16.msra.mxu0 %v1940_v43  ;;  %1254 = vmatprep.subr.bf16.mxu1 %v1945_v47 }
  0x62   : > { %1360 = vmatprep.subr.bf16.mxu0 %v1948_v48  ;;  %v1404_v48 = vunpack.c.h.bf16 %v1399_v38 }
  0x64   : > { %1255 = vmatpush1.bf16.msra.mxu1 %v1943_v52 }
  0x65   : > { %1361 = vmatpush1.bf16.msra.mxu0 %v1946_v53  ;;  %1256 = vmatprep.subr.bf16.mxu1 %v1951_v54  ;;  %v1405_v53 = vunpack.c.l.bf16 %v1400_v42 }
  0x66   : > { %1362 = vmatprep.subr.bf16.mxu0 %v1954_v55 }
  0x68   : > { %1257 = vmatpush1.bf16.msra.mxu1 %v1949_v56 }
  0x69   : > { %1363 = vmatpush1.bf16.msra.mxu0 %v1952_v57  ;;  %1258 = vmatprep.subr.bf16.mxu1 %v1957_v58  ;;  %v1406_v58 = vunpack.c.h.bf16 %v1400_v42 }
  0x6a   : > { %1364 = vmatprep.subr.bf16.mxu0 %v1960_v59 }
  0x6c   : > { %1259 = vmatpush1.bf16.msra.mxu1 %v1955_v60 }
  0x6d   : > { %1365 = vmatpush1.bf16.msra.mxu0 %v1958_v61  ;;  %1260 = vmatprep.subr.bf16.mxu1 %v1963_v62 }
  0x6e   : > { %1366 = vmatprep.subr.bf16.mxu0 %v1966_v63  ;;  %v1401_v63 = vld [vmem:[%s2500_s27 + $0x10] sm:$0xff] }
  0x70   : > { %1261 = vmatpush1.bf16.msra.mxu1 %v1961_v0 }
  0x71   : > { %1367 = vmatpush1.bf16.msra.mxu0 %v1964_v1  ;;  %1262 = vmatprep.subr.bf16.mxu1 %v1969_v2 }
  0x72   : > { %1368 = vmatprep.subr.bf16.mxu0 %v1972_v3 }
  0x74   : > { %1263 = vmatpush1.bf16.msra.mxu1 %v1967_v4 }
  0x75   : > { %1369 = vmatpush1.bf16.msra.mxu0 %v1970_v5  ;;  %1264 = vmatprep.subr.bf16.mxu1 %v1975_v6  ;;  %v1402_v5 = vld [vmem:[%s2500_s27 + $0x18] sm:$0xff] }
  0x76   : > { %1370 = vmatprep.subr.bf16.mxu0 %v1978_v7  ;;  %v1407_v7 = vunpack.c.l.bf16 %v1401_v63  ;;  %v1410_v22 = vunpack.c.h.bf16 %v1402_v5 }
  0x78   : > { %1265 = vmatpush1.bf16.msra.mxu1 %v1973_v8 }
  0x79   : > { %1371 = vmatpush1.bf16.msra.mxu0 %v1976_v9  ;;  %1266 = vmatprep.subr.bf16.mxu1 %v1981_v10 }
  0x7a   : > { %1372 = vmatprep.subr.bf16.mxu0 %v1984_v11 }
  0x7c   : > { %1267 = vmatpush1.bf16.msra.mxu1 %v1979_v12  ;;  %v1408_v12 = vunpack.c.h.bf16 %v1401_v63 }
  0x7d   : > { %1373 = vmatpush1.bf16.msra.mxu0 %v1982_v13  ;;  %1268 = vmatprep.subr.bf16.mxu1 %v1987_v14 }
  0x7e   : > { %1374 = vmatprep.subr.bf16.mxu0 %v1990_v15 }
  0x80   : > { %1269 = vmatpush1.bf16.msra.mxu1 %v1985_v16 }
  0x81   : > { %1375 = vmatpush1.bf16.msra.mxu0 %v1988_v17  ;;  %1270 = vmatprep.subr.bf16.mxu1 %v1993_v18  ;;  %v1409_v17 = vunpack.c.l.bf16 %v1402_v5 }
  0x82   : > { %1376 = vmatprep.subr.bf16.mxu0 %v1996_v19 }
  0x84   : > { %1271 = vmatpush1.bf16.msra.mxu1 %v1991_v20 }
  0x85   : > { %1377 = vmatpush1.bf16.msra.mxu0 %v1994_v21 }
  0x87   : > { %1273 = vmatmul.mubr.bf16.vlgmr.msra.gmra.mrb[0].mxu1 %v1594_v26 }
  0x88   : > { %1379 = vmatmul.mubr.bf16.vlgmr.msra.gmra.mrb[0].mxu0 %v1598_v27  ;;  %1282 = vmatprep.mubr.bf16.mxu1 %v1603_v28 }
  0x89   : > { %1388 = vmatprep.mubr.bf16.mxu0 %v1607_v29 }
  0x8f   : > { %1283 = vmatmul.mubr.bf16.gmra.mrb[4].mxu1 %v1602_v30 }
  0x90   : > { %1389 = vmatmul.mubr.bf16.gmra.mrb[4].mxu0 %v1606_v31 }
 0x15a   : > { %v1274_v40 = vpop.f32.mrb[0].mxu1 }
 0x15b   : > { %v1380_v41 = vpop.f32.mrb[0].mxu0  ;;  %v1749_v43 = vadd.f32 %v1274_v40, %v460_v37  ;;  %v1276_v45 = vpop.f32.mrb[1].mxu1 }
 0x15c   : > { %v1382_v46 = vpop.f32.mrb[1].mxu0  ;;  %v1751_v47 = vadd.f32 %v1276_v45, %v464_v39  ;;  %v1278_v49 = vpop.f32.mrb[2].mxu1 }
 0x15d   : > { %v1384_v50 = vpop.f32.mrb[2].mxu0  ;;  %v1750_v51 = vadd.f32 %v1749_v43, %v1380_v41  ;;  %v1753_v52 = vadd.f32 %v1278_v49, %v460_v37  ;;  %v1280_v54 = vpop.f32.mrb[3].mxu1 }
 0x15e   : > { %v1386_v55 = vpop.f32.mrb[3].mxu0  ;;  %v1752_v56 = vadd.f32 %v1751_v47, %v1382_v46  ;;  %v1755_v57 = vadd.f32 %v1280_v54, %v464_v39 }
 0x15f   : > { %v1411_v59 = vadd.f32 %v1750_v51, %v1403_v44  ;;  %v1754_v60 = vadd.f32 %v1753_v52, %v1384_v50 }
 0x160   : > { %v1412_v61 = vadd.f32 %v1752_v56, %v1404_v48  ;;  %v1756_v62 = vadd.f32 %v1755_v57, %v1386_v55 }
 0x161   : > { %v1413_v0 = vadd.f32 %v1754_v60, %v1405_v53 }
 0x162   : > { %v1745_v1 = vpack.c.bf16 %v1412_v61, %v1411_v59  ;;  %v1414_v2 = vadd.f32 %v1756_v62, %v1406_v58  ;;  %v1284_v3 = vpop.f32.mrb[4].mxu1 }
 0x163   : > { %v1390_v4 = vpop.f32.mrb[4].mxu0  ;;  %v1757_v6 = vadd.f32 %v1284_v3, %v460_v37  ;;  %v1286_v8 = vpop.f32.mrb[5].mxu1 }
 0x164   : > { %v1392_v9 = vpop.f32.mrb[5].mxu0  ;;  %1443 = vst [vmem:[%s2510_s30] sm:$0xff] %v1745_v1  ;;  %v1746_v10 = vpack.c.bf16 %v1414_v2, %v1413_v0  ;;  %v1759_v11 = vadd.f32 %v1286_v8, %v464_v39  ;;  %v1288_v13 = vpop.f32.mrb[6].mxu1 }
 0x165   : > { %v1394_v14 = vpop.f32.mrb[6].mxu0  ;;  %v1758_v15 = vadd.f32 %v1757_v6, %v1390_v4  ;;  %v1761_v16 = vadd.f32 %v1288_v13, %v460_v37  ;;  %v1290_v18 = vpop.f32.mrb[7].mxu1 }
 0x166   : > { %v1396_v19 = vpop.f32.mrb[7].mxu0  ;;  %1444 = vst [vmem:[%s2510_s30 + $0x8] sm:$0xff] %v1746_v10  ;;  %v1760_v20 = vadd.f32 %v1759_v11, %v1392_v9  ;;  %v1763_v21 = vadd.f32 %v1290_v18, %v464_v39 }
 0x167   : > { %v1415_v23 = vadd.f32 %v1758_v15, %v1407_v7  ;;  %v1762_v24 = vadd.f32 %v1761_v16, %v1394_v14 }
 0x168   : > { %v1416_v25 = vadd.f32 %v1760_v20, %v1408_v12  ;;  %v1764_v26 = vadd.f32 %v1763_v21, %v1396_v19 }
 0x169   : > { %v1417_v27 = vadd.f32 %v1762_v24, %v1409_v17 }
 0x16a   : > { %v1747_v28 = vpack.c.bf16 %v1416_v25, %v1415_v23  ;;  %v1418_v29 = vadd.f32 %v1764_v26, %v1410_v22 }
 0x16c   : > { %1445 = vst [vmem:[%s2510_s30 + $0x10] sm:$0xff] %v1747_v28  ;;  %v1748_v30 = vpack.c.bf16 %v1418_v29, %v1417_v27 }
 0x16e   : > { %1446 = vst [vmem:[%s2510_s30 + $0x18] sm:$0xff] %v1748_v30 }
 0x16f PF: > { %s14_s17 = sadd.s32 1, %s2019_s17   ;;  %s2531_s15 = smov %s2015_s16 }
 0x170   : > { %p11_p5 = scmp.ge.s32.totalorder %s14_s17, 4   ;;  %s2532_s16 = smov %s2534_s18 }
 0x172   :  { %13 = sbr.rel (!%p11_p5) target bundleno = 2 (0x2), region = 75 }

</bundles_post_ra>
